<compile_context>
chip_gen: v7x
topology: tpu7x:2x2x1
jax: 0.10.0
libtpu: 0.0.40
codegen_flags: <defaults>
</compile_context>

<pallas_src>
import functools

import jax
import jax.numpy as jnp
from jax import lax
from jax.experimental import pallas as pl
from jax.experimental.pallas import tpu as pltpu

KH = KW = 3
EPS = 1e-5


def _resblock_kernel(xp_ref, w1_ref, b1_ref, w2_ref, b2_ref, o_ref, y1p_ref,
                     *, H, W):
    """Fused ResBlock for one batch element.

    xp_ref : (1, HpWp_pad, C)  zero-padded input, flattened (row stride Wp)
    w*_ref : (9, Cin, Cout)    3x3 taps as matmul weights, BN scale folded in
    b*_ref : (1, C)            folded BatchNorm bias (f32)
    o_ref  : (1, H*Wp, C)      flat output (columns wp >= W are garbage,
                               discarded by the wrapper)
    y1p_ref: (HpWp_pad, C)     VMEM scratch in matmul dtype: zero-padded conv1
                               activations
    """
    Wp = W + 2
    R = H * Wp                       # rows of the flat conv-output slab
    C = o_ref.shape[-1]
    hpwp_pad = y1p_ref.shape[0]
    sc_dtype = y1p_ref.dtype

    def conv_taps(load_patch, w_ref):
        # Sum over the 9 taps; each tap is one (R, C) x (C, C) MXU matmul.
        acc = None
        for dy in range(KH):
            for dx in range(KW):
                off = dy * Wp + dx
                t = jnp.dot(load_patch(off), w_ref[dy * KW + dx],
                            preferred_element_type=jnp.float32)
                acc = t if acc is None else acc + t
        return acc                   # (R, C) float32

    # ---- conv1 (BN scale pre-folded) -> +bias -> ReLU ----
    acc1 = conv_taps(lambda off: xp_ref[0, off:off + R, :], w1_ref)

    # Columns wp >= W of the flat slab are row-wrap garbage; zero them so they
    # land as zeros in the left/right halo of the padded intermediate.
    row = lax.broadcasted_iota(jnp.int32, (R, 1), 0)
    col_ok = (row % Wp) < W
    y1 = jnp.where(col_ok, jnp.maximum(acc1 + b1_ref[...], 0.0), 0.0)

    # ---- build zero-padded conv1 output in VMEM scratch (matmul dtype) ----
    # Only the top / bottom halo strips are not covered by the interior store
    # (the left/right halo columns receive the masked zeros above).
    y1p_ref[0:Wp + 1, :] = jnp.zeros((Wp + 1, C), sc_dtype)
    bot = (H + 1) * Wp + 1
    y1p_ref[bot:hpwp_pad, :] = jnp.zeros((hpwp_pad - bot, C), sc_dtype)
    y1p_ref[Wp + 1:Wp + 1 + R, :] = y1.astype(sc_dtype)   # single slab store

    # ---- conv2 (BN scale pre-folded) -> +bias -> ReLU ----
    acc2 = conv_taps(lambda off: y1p_ref[off:off + R, :], w2_ref)
    y2 = jnp.maximum(acc2 + b2_ref[...], 0.0)

    # ---- residual add: x[h, w] lives at flat offset Wp + 1 in the padded slab
    resid = xp_ref[0, Wp + 1:Wp + 1 + R, :].astype(jnp.float32)
    o_ref[0, :, :] = (resid + y2).astype(o_ref.dtype)


def resblock_pallas(x_nchw, w1, g1, be1, m1, v1, w2, g2, be2, m2, v2,
                    *, matmul_dtype=jnp.float32):
    """x_nchw: (N, C, H, W); conv weights in torch layout (Cout, Cin, 3, 3)."""
    N, C, H, W = x_nchw.shape
    Hp, Wp = H + 2, W + 2
    R = H * Wp
    # flat padded length: largest tap offset (2*Wp + 2) + R, rounded to 8 rows
    hpwp_pad = ((2 * Wp + 2 + R + 7) // 8) * 8

    x = jnp.transpose(x_nchw, (0, 2, 3, 1))                  # NHWC
    xp = jnp.pad(x, ((0, 0), (1, 1), (1, 1), (0, 0)))        # SAME halo
    xpf = xp.reshape(N, Hp * Wp, C)
    xpf = jnp.pad(xpf, ((0, 0), (0, hpwp_pad - Hp * Wp), (0, 0)))
    xpf = xpf.astype(matmul_dtype)

    def fold(w_t, g, b, m, v):
        # torch (Cout, Cin, kh, kw) -> (kh*kw, Cin, Cout); fold BN scale in.
        wk = jnp.transpose(w_t, (2, 3, 1, 0)).reshape(KH * KW, C, C)
        s = g / jnp.sqrt(v + EPS)
        wk = (wk * s[None, None, :]).astype(matmul_dtype)
        return wk, (b - m * s)[None, :].astype(jnp.float32)

    w1k, b1 = fold(w1, g1, be1, m1, v1)
    w2k, b2 = fold(w2, g2, be2, m2, v2)

    itemsize = jnp.dtype(matmul_dtype).itemsize
    out_itemsize = jnp.dtype(x_nchw.dtype).itemsize
    block_bytes = (hpwp_pad * C * itemsize              # input block
                   + R * C * out_itemsize               # output block
                   + 2 * KH * KW * C * C * itemsize     # weights
                   + 2 * C * 4)                         # biases
    vmem_limit = int(min(64 * 2 ** 20,
                         max(8 * 2 ** 20,
                             4 * block_bytes + hpwp_pad * C * itemsize)))

    kernel = functools.partial(_resblock_kernel, H=H, W=W)

    out_flat = pl.pallas_call(
        kernel,
        out_shape=jax.ShapeDtypeStruct((N, R, C), x_nchw.dtype),
        grid_spec=pltpu.PrefetchScalarGridSpec(
            num_scalar_prefetch=0,
            grid=(N,),
            in_specs=[
                pl.BlockSpec((1, hpwp_pad, C), lambda n: (n, 0, 0)),
                pl.BlockSpec((KH * KW, C, C), lambda n: (0, 0, 0)),
                pl.BlockSpec((1, C), lambda n: (0, 0)),
                pl.BlockSpec((KH * KW, C, C), lambda n: (0, 0, 0)),
                pl.BlockSpec((1, C), lambda n: (0, 0)),
            ],
            out_specs=pl.BlockSpec((1, R, C), lambda n: (n, 0, 0)),
            scratch_shapes=[pltpu.VMEM((hpwp_pad, C), matmul_dtype)],
        ),
        compiler_params=pltpu.CompilerParams(
            dimension_semantics=("parallel",),
            vmem_limit_bytes=vmem_limit),
    )(xpf, w1k, b1, w2k, b2)

    out = out_flat.reshape(N, H, Wp, C)[:, :, :W, :]          # drop garbage cols
    return jnp.transpose(out, (0, 3, 1, 2))                   # back to NCHW


def resblock_ref(x_nchw, w1, g1, be1, m1, v1, w2, g2, be2, m2, v2):
    """Pure-JAX reference (inference-mode BN), NCHW like PyTorch."""
    def block(x, w, g, b, m, v):
        y = lax.conv_general_dilated(
            x, w, window_strides=(1, 1), padding="SAME",
            dimension_numbers=("NCHW", "OIHW", "NCHW"))
        s = g / jnp.sqrt(v + EPS)
        y = y * s[None, :, None, None] + (b - m * s)[None, :, None, None]
        return jnp.maximum(y, 0.0)

    return x_nchw + block(block(x_nchw, w1, g1, be1, m1, v1),
                          w2, g2, be2, m2, v2)


if __name__ == "__main__":
    N, C, H, W = 2, 4, 16, 16
    key = jax.random.PRNGKey(0)
    ks = jax.random.split(key, 11)

    x = jax.random.normal(ks[0], (N, C, H, W), jnp.float32)
    # conv weights, torch layout (Cout, Cin, kh, kw), bias=False
    w1 = 0.2 * jax.random.normal(ks[1], (C, C, KH, KW), jnp.float32)
    w2 = 0.2 * jax.random.normal(ks[2], (C, C, KH, KW), jnp.float32)
    # BatchNorm params + running stats
    g1 = 1.0 + 0.1 * jax.random.normal(ks[3], (C,), jnp.float32)
    be1 = 0.1 * jax.random.normal(ks[4], (C,), jnp.float32)
    m1 = 0.1 * jax.random.normal(ks[5], (C,), jnp.float32)
    v1 = 1.0 + 0.1 * jnp.abs(jax.random.normal(ks[6], (C,), jnp.float32))
    g2 = 1.0 + 0.1 * jax.random.normal(ks[7], (C,), jnp.float32)
    be2 = 0.1 * jax.random.normal(ks[8], (C,), jnp.float32)
    m2 = 0.1 * jax.random.normal(ks[9], (C,), jnp.float32)
    v2 = 1.0 + 0.1 * jnp.abs(jax.random.normal(ks[10], (C,), jnp.float32))

    out = resblock_pallas(x, w1, g1, be1, m1, v1, w2, g2, be2, m2, v2)
    out = jax.block_until_ready(out)

    ref = resblock_ref(x, w1, g1, be1, m1, v1, w2, g2, be2, m2, v2)
    err = float(jnp.max(jnp.abs(out - ref)))
    assert err < 1e-3, f"Pallas ResBlock mismatch vs reference: max|diff|={err}"
    print("KERNEL_OK")
</pallas_src>

<mosaic_0001>
module attributes {stable_mosaic.version = 11 : i64} {
  func.func @_resblock_kernel(%arg0: i32, %arg1: memref<1x328x4xf32, #tpu.memory_space<vmem>>, %arg2: memref<9x4x4xf32, #tpu.memory_space<vmem>>, %arg3: memref<1x4xf32, #tpu.memory_space<vmem>>, %arg4: memref<9x4x4xf32, #tpu.memory_space<vmem>>, %arg5: memref<1x4xf32, #tpu.memory_space<vmem>>, %arg6: memref<1x288x4xf32, #tpu.memory_space<vmem>>, %arg7: memref<328x4xf32, #tpu.memory_space<vmem>>) attributes {dimension_semantics = [#tpu.dimension_semantics<parallel>], iteration_bounds = array<i64: 2>, scalar_prefetch = 0 : i64, scratch_operands = 1 : i64, tpu.core_type = #tpu.core_type<tc>, window_params = [{transform_indices = @transform_0, window_bounds = array<i64: 1, 328, 4>}, {pipeline_mode = #tpu.pipeline_mode<synchronous>, transform_indices = @transform_1, window_bounds = array<i64: 9, 4, 4>}, {pipeline_mode = #tpu.pipeline_mode<synchronous>, transform_indices = @transform_2, window_bounds = array<i64: 1, 4>}, {pipeline_mode = #tpu.pipeline_mode<synchronous>, transform_indices = @transform_3, window_bounds = array<i64: 9, 4, 4>}, {pipeline_mode = #tpu.pipeline_mode<synchronous>, transform_indices = @transform_4, window_bounds = array<i64: 1, 4>}, {transform_indices = @transform_5, window_bounds = array<i64: 1, 288, 4>}]} {
    %c0 = arith.constant 0 : index
    %c0_0 = arith.constant 0 : index
    %c0_1 = arith.constant 0 : index
    %0 = vector.load %arg1[%c0, %c0_0, %c0_1] : memref<1x328x4xf32, #tpu.memory_space<vmem>>, vector<1x288x4xf32>
    %1 = vector.shape_cast %0 : vector<1x288x4xf32> to vector<288x4xf32>
    %c0_2 = arith.constant 0 : index
    %c0_3 = arith.constant 0 : index
    %c0_4 = arith.constant 0 : index
    %2 = vector.load %arg2[%c0_2, %c0_3, %c0_4] : memref<9x4x4xf32, #tpu.memory_space<vmem>>, vector<1x4x4xf32>
    %3 = vector.shape_cast %2 : vector<1x4x4xf32> to vector<4x4xf32>
    %cst = arith.constant dense<0.000000e+00> : vector<288x4xf32>
    %4 = tpu.matmul %1, %3, %cst {dimension_numbers = #tpu.dot_dimension_numbers<[1], [0], [0], [1], [0, 0, 1, 1], [], []>} : vector<288x4xf32>, vector<4x4xf32>, vector<288x4xf32> -> vector<288x4xf32>
    %c0_5 = arith.constant 0 : index
    %c1 = arith.constant 1 : index
    %c0_6 = arith.constant 0 : index
    %5 = vector.load %arg1[%c0_5, %c1, %c0_6] : memref<1x328x4xf32, #tpu.memory_space<vmem>>, vector<1x288x4xf32>
    %6 = vector.shape_cast %5 : vector<1x288x4xf32> to vector<288x4xf32>
    %c1_7 = arith.constant 1 : index
    %c0_8 = arith.constant 0 : index
    %c0_9 = arith.constant 0 : index
    %7 = vector.load %arg2[%c1_7, %c0_8, %c0_9] : memref<9x4x4xf32, #tpu.memory_space<vmem>>, vector<1x4x4xf32>
    %8 = vector.shape_cast %7 : vector<1x4x4xf32> to vector<4x4xf32>
    %cst_10 = arith.constant dense<0.000000e+00> : vector<288x4xf32>
    %9 = tpu.matmul %6, %8, %cst_10 {dimension_numbers = #tpu.dot_dimension_numbers<[1], [0], [0], [1], [0, 0, 1, 1], [], []>} : vector<288x4xf32>, vector<4x4xf32>, vector<288x4xf32> -> vector<288x4xf32>
    %10 = arith.addf %4, %9 : vector<288x4xf32>
    %c0_11 = arith.constant 0 : index
    %c2 = arith.constant 2 : index
    %c0_12 = arith.constant 0 : index
    %11 = vector.load %arg1[%c0_11, %c2, %c0_12] : memref<1x328x4xf32, #tpu.memory_space<vmem>>, vector<1x288x4xf32>
    %12 = vector.shape_cast %11 : vector<1x288x4xf32> to vector<288x4xf32>
    %c2_13 = arith.constant 2 : index
    %c0_14 = arith.constant 0 : index
    %c0_15 = arith.constant 0 : index
    %13 = vector.load %arg2[%c2_13, %c0_14, %c0_15] : memref<9x4x4xf32, #tpu.memory_space<vmem>>, vector<1x4x4xf32>
    %14 = vector.shape_cast %13 : vector<1x4x4xf32> to vector<4x4xf32>
    %cst_16 = arith.constant dense<0.000000e+00> : vector<288x4xf32>
    %15 = tpu.matmul %12, %14, %cst_16 {dimension_numbers = #tpu.dot_dimension_numbers<[1], [0], [0], [1], [0, 0, 1, 1], [], []>} : vector<288x4xf32>, vector<4x4xf32>, vector<288x4xf32> -> vector<288x4xf32>
    %16 = arith.addf %10, %15 : vector<288x4xf32>
    %c0_17 = arith.constant 0 : index
    %c18 = arith.constant 18 : index
    %c0_18 = arith.constant 0 : index
    %17 = vector.load %arg1[%c0_17, %c18, %c0_18] : memref<1x328x4xf32, #tpu.memory_space<vmem>>, vector<1x288x4xf32>
    %18 = vector.shape_cast %17 : vector<1x288x4xf32> to vector<288x4xf32>
    %c3 = arith.constant 3 : index
    %c0_19 = arith.constant 0 : index
    %c0_20 = arith.constant 0 : index
    %19 = vector.load %arg2[%c3, %c0_19, %c0_20] : memref<9x4x4xf32, #tpu.memory_space<vmem>>, vector<1x4x4xf32>
    %20 = vector.shape_cast %19 : vector<1x4x4xf32> to vector<4x4xf32>
    %cst_21 = arith.constant dense<0.000000e+00> : vector<288x4xf32>
    %21 = tpu.matmul %18, %20, %cst_21 {dimension_numbers = #tpu.dot_dimension_numbers<[1], [0], [0], [1], [0, 0, 1, 1], [], []>} : vector<288x4xf32>, vector<4x4xf32>, vector<288x4xf32> -> vector<288x4xf32>
    %22 = arith.addf %16, %21 : vector<288x4xf32>
    %c0_22 = arith.constant 0 : index
    %c19 = arith.constant 19 : index
    %c0_23 = arith.constant 0 : index
    %23 = vector.load %arg1[%c0_22, %c19, %c0_23] : memref<1x328x4xf32, #tpu.memory_space<vmem>>, vector<1x288x4xf32>
    %24 = vector.shape_cast %23 : vector<1x288x4xf32> to vector<288x4xf32>
    %c4 = arith.constant 4 : index
    %c0_24 = arith.constant 0 : index
    %c0_25 = arith.constant 0 : index
    %25 = vector.load %arg2[%c4, %c0_24, %c0_25] : memref<9x4x4xf32, #tpu.memory_space<vmem>>, vector<1x4x4xf32>
    %26 = vector.shape_cast %25 : vector<1x4x4xf32> to vector<4x4xf32>
    %cst_26 = arith.constant dense<0.000000e+00> : vector<288x4xf32>
    %27 = tpu.matmul %24, %26, %cst_26 {dimension_numbers = #tpu.dot_dimension_numbers<[1], [0], [0], [1], [0, 0, 1, 1], [], []>} : vector<288x4xf32>, vector<4x4xf32>, vector<288x4xf32> -> vector<288x4xf32>
    %28 = arith.addf %22, %27 : vector<288x4xf32>
    %c0_27 = arith.constant 0 : index
    %c20 = arith.constant 20 : index
    %c0_28 = arith.constant 0 : index
    %29 = vector.load %arg1[%c0_27, %c20, %c0_28] : memref<1x328x4xf32, #tpu.memory_space<vmem>>, vector<1x288x4xf32>
    %30 = vector.shape_cast %29 : vector<1x288x4xf32> to vector<288x4xf32>
    %c5 = arith.constant 5 : index
    %c0_29 = arith.constant 0 : index
    %c0_30 = arith.constant 0 : index
    %31 = vector.load %arg2[%c5, %c0_29, %c0_30] : memref<9x4x4xf32, #tpu.memory_space<vmem>>, vector<1x4x4xf32>
    %32 = vector.shape_cast %31 : vector<1x4x4xf32> to vector<4x4xf32>
    %cst_31 = arith.constant dense<0.000000e+00> : vector<288x4xf32>
    %33 = tpu.matmul %30, %32, %cst_31 {dimension_numbers = #tpu.dot_dimension_numbers<[1], [0], [0], [1], [0, 0, 1, 1], [], []>} : vector<288x4xf32>, vector<4x4xf32>, vector<288x4xf32> -> vector<288x4xf32>
    %34 = arith.addf %28, %33 : vector<288x4xf32>
    %c0_32 = arith.constant 0 : index
    %c36 = arith.constant 36 : index
    %c0_33 = arith.constant 0 : index
    %35 = vector.load %arg1[%c0_32, %c36, %c0_33] : memref<1x328x4xf32, #tpu.memory_space<vmem>>, vector<1x288x4xf32>
    %36 = vector.shape_cast %35 : vector<1x288x4xf32> to vector<288x4xf32>
    %c6 = arith.constant 6 : index
    %c0_34 = arith.constant 0 : index
    %c0_35 = arith.constant 0 : index
    %37 = vector.load %arg2[%c6, %c0_34, %c0_35] : memref<9x4x4xf32, #tpu.memory_space<vmem>>, vector<1x4x4xf32>
    %38 = vector.shape_cast %37 : vector<1x4x4xf32> to vector<4x4xf32>
    %cst_36 = arith.constant dense<0.000000e+00> : vector<288x4xf32>
    %39 = tpu.matmul %36, %38, %cst_36 {dimension_numbers = #tpu.dot_dimension_numbers<[1], [0], [0], [1], [0, 0, 1, 1], [], []>} : vector<288x4xf32>, vector<4x4xf32>, vector<288x4xf32> -> vector<288x4xf32>
    %40 = arith.addf %34, %39 : vector<288x4xf32>
    %c0_37 = arith.constant 0 : index
    %c37 = arith.constant 37 : index
    %c0_38 = arith.constant 0 : index
    %41 = vector.load %arg1[%c0_37, %c37, %c0_38] : memref<1x328x4xf32, #tpu.memory_space<vmem>>, vector<1x288x4xf32>
    %42 = vector.shape_cast %41 : vector<1x288x4xf32> to vector<288x4xf32>
    %c7 = arith.constant 7 : index
    %c0_39 = arith.constant 0 : index
    %c0_40 = arith.constant 0 : index
    %43 = vector.load %arg2[%c7, %c0_39, %c0_40] : memref<9x4x4xf32, #tpu.memory_space<vmem>>, vector<1x4x4xf32>
    %44 = vector.shape_cast %43 : vector<1x4x4xf32> to vector<4x4xf32>
    %cst_41 = arith.constant dense<0.000000e+00> : vector<288x4xf32>
    %45 = tpu.matmul %42, %44, %cst_41 {dimension_numbers = #tpu.dot_dimension_numbers<[1], [0], [0], [1], [0, 0, 1, 1], [], []>} : vector<288x4xf32>, vector<4x4xf32>, vector<288x4xf32> -> vector<288x4xf32>
    %46 = arith.addf %40, %45 : vector<288x4xf32>
    %c0_42 = arith.constant 0 : index
    %c38 = arith.constant 38 : index
    %c0_43 = arith.constant 0 : index
    %47 = vector.load %arg1[%c0_42, %c38, %c0_43] : memref<1x328x4xf32, #tpu.memory_space<vmem>>, vector<1x288x4xf32>
    %48 = vector.shape_cast %47 : vector<1x288x4xf32> to vector<288x4xf32>
    %c8 = arith.constant 8 : index
    %c0_44 = arith.constant 0 : index
    %c0_45 = arith.constant 0 : index
    %49 = vector.load %arg2[%c8, %c0_44, %c0_45] : memref<9x4x4xf32, #tpu.memory_space<vmem>>, vector<1x4x4xf32>
    %50 = vector.shape_cast %49 : vector<1x4x4xf32> to vector<4x4xf32>
    %cst_46 = arith.constant dense<0.000000e+00> : vector<288x4xf32>
    %51 = tpu.matmul %48, %50, %cst_46 {dimension_numbers = #tpu.dot_dimension_numbers<[1], [0], [0], [1], [0, 0, 1, 1], [], []>} : vector<288x4xf32>, vector<4x4xf32>, vector<288x4xf32> -> vector<288x4xf32>
    %52 = arith.addf %46, %51 : vector<288x4xf32>
    %53 = tpu.iota {dimensions = array<i32: 0>} : vector<288x1xi32>
    %c18_i32 = arith.constant 18 : i32
    %c0_i32 = arith.constant 0 : i32
    %54 = arith.cmpi eq, %c18_i32, %c0_i32 : i32
    %c1_i32 = arith.constant 1 : i32
    %55 = arith.select %54, %c1_i32, %c18_i32 : i32
    %56 = vector.broadcast %55 : i32 to vector<288x1xi32>
    %57 = arith.remsi %53, %56 : vector<288x1xi32>
    %c0_i32_47 = arith.constant 0 : i32
    %58 = vector.broadcast %c0_i32_47 : i32 to vector<288x1xi32>
    %59 = arith.cmpi ne, %57, %58 : vector<288x1xi32>
    %c0_i32_48 = arith.constant 0 : i32
    %60 = vector.broadcast %c0_i32_48 : i32 to vector<288x1xi32>
    %61 = arith.cmpi slt, %57, %60 : vector<288x1xi32>
    %c0_i32_49 = arith.constant 0 : i32
    %62 = arith.cmpi slt, %55, %c0_i32_49 : i32
    %63 = vector.broadcast %62 : i1 to vector<288x1xi1>
    %64 = vector.broadcast %63 : vector<288x1xi1> to vector<288x1xi1>
    %65 = arith.xori %61, %64 : vector<288x1xi1>
    %66 = arith.andi %65, %59 : vector<288x1xi1>
    %67 = vector.broadcast %55 : i32 to vector<288x1xi32>
    %68 = arith.addi %57, %67 : vector<288x1xi32>
    %69 = arith.select %66, %68, %57 : vector<288x1xi1>, vector<288x1xi32>
    %c16_i32 = arith.constant 16 : i32
    %70 = vector.broadcast %c16_i32 : i32 to vector<288x1xi32>
    %71 = arith.cmpi slt, %69, %70 : vector<288x1xi32>
    %c0_50 = arith.constant 0 : index
    %c0_51 = arith.constant 0 : index
    %72 = vector.load %arg3[%c0_50, %c0_51] : memref<1x4xf32, #tpu.memory_space<vmem>>, vector<1x4xf32>
    %73 = vector.broadcast %72 : vector<1x4xf32> to vector<288x4xf32>
    %74 = arith.addf %52, %73 : vector<288x4xf32>
    %cst_52 = arith.constant 0.000000e+00 : f32
    %75 = vector.broadcast %cst_52 : f32 to vector<288x4xf32>
    %76 = arith.maximumf %74, %75 : vector<288x4xf32>
    %cst_53 = arith.constant 0.000000e+00 : f32
    %77 = vector.shape_cast %71 : vector<288x1xi1> to vector<288x1xi1>
    %78 = vector.broadcast %77 : vector<288x1xi1> to vector<288x4xi1>
    %79 = vector.broadcast %cst_53 : f32 to vector<288x4xf32>
    %80 = arith.select %78, %76, %79 : vector<288x4xi1>, vector<288x4xf32>
    %cst_54 = arith.constant 0.000000e+00 : f32
    %81 = vector.broadcast %cst_54 : f32 to vector<19x4xf32>
    %c0_55 = arith.constant 0 : index
    %c0_56 = arith.constant 0 : index
    %82 = vector.load %arg7[%c0_55, %c0_56] : memref<328x4xf32, #tpu.memory_space<vmem>>, vector<19x4xf32>
    tpu.vector_store %arg7[%c0_55, %c0_56], %81 {strides = array<i32>} : memref<328x4xf32, #tpu.memory_space<vmem>>, vector<19x4xf32>,
    %cst_57 = arith.constant 0.000000e+00 : f32
    %83 = vector.broadcast %cst_57 : f32 to vector<21x4xf32>
    %c307 = arith.constant 307 : index
    %c0_58 = arith.constant 0 : index
    %84 = vector.load %arg7[%c307, %c0_58] : memref<328x4xf32, #tpu.memory_space<vmem>>, vector<21x4xf32>
    tpu.vector_store %arg7[%c307, %c0_58], %83 {strides = array<i32>} : memref<328x4xf32, #tpu.memory_space<vmem>>, vector<21x4xf32>,
    %c19_59 = arith.constant 19 : index
    %c0_60 = arith.constant 0 : index
    %85 = vector.load %arg7[%c19_59, %c0_60] : memref<328x4xf32, #tpu.memory_space<vmem>>, vector<288x4xf32>
    tpu.vector_store %arg7[%c19_59, %c0_60], %80 {strides = array<i32>} : memref<328x4xf32, #tpu.memory_space<vmem>>, vector<288x4xf32>,
    %c0_61 = arith.constant 0 : index
    %c0_62 = arith.constant 0 : index
    %86 = vector.load %arg7[%c0_61, %c0_62] : memref<328x4xf32, #tpu.memory_space<vmem>>, vector<288x4xf32>
    %c0_63 = arith.constant 0 : index
    %c0_64 = arith.constant 0 : index
    %c0_65 = arith.constant 0 : index
    %87 = vector.load %arg4[%c0_63, %c0_64, %c0_65] : memref<9x4x4xf32, #tpu.memory_space<vmem>>, vector<1x4x4xf32>
    %88 = vector.shape_cast %87 : vector<1x4x4xf32> to vector<4x4xf32>
    %cst_66 = arith.constant dense<0.000000e+00> : vector<288x4xf32>
    %89 = tpu.matmul %86, %88, %cst_66 {dimension_numbers = #tpu.dot_dimension_numbers<[1], [0], [0], [1], [0, 0, 1, 1], [], []>} : vector<288x4xf32>, vector<4x4xf32>, vector<288x4xf32> -> vector<288x4xf32>
    %c1_67 = arith.constant 1 : index
    %c0_68 = arith.constant 0 : index
    %90 = vector.load %arg7[%c1_67, %c0_68] : memref<328x4xf32, #tpu.memory_space<vmem>>, vector<288x4xf32>
    %c1_69 = arith.constant 1 : index
    %c0_70 = arith.constant 0 : index
    %c0_71 = arith.constant 0 : index
    %91 = vector.load %arg4[%c1_69, %c0_70, %c0_71] : memref<9x4x4xf32, #tpu.memory_space<vmem>>, vector<1x4x4xf32>
    %92 = vector.shape_cast %91 : vector<1x4x4xf32> to vector<4x4xf32>
    %cst_72 = arith.constant dense<0.000000e+00> : vector<288x4xf32>
    %93 = tpu.matmul %90, %92, %cst_72 {dimension_numbers = #tpu.dot_dimension_numbers<[1], [0], [0], [1], [0, 0, 1, 1], [], []>} : vector<288x4xf32>, vector<4x4xf32>, vector<288x4xf32> -> vector<288x4xf32>
    %94 = arith.addf %89, %93 : vector<288x4xf32>
    %c2_73 = arith.constant 2 : index
    %c0_74 = arith.constant 0 : index
    %95 = vector.load %arg7[%c2_73, %c0_74] : memref<328x4xf32, #tpu.memory_space<vmem>>, vector<288x4xf32>
    %c2_75 = arith.constant 2 : index
    %c0_76 = arith.constant 0 : index
    %c0_77 = arith.constant 0 : index
    %96 = vector.load %arg4[%c2_75, %c0_76, %c0_77] : memref<9x4x4xf32, #tpu.memory_space<vmem>>, vector<1x4x4xf32>
    %97 = vector.shape_cast %96 : vector<1x4x4xf32> to vector<4x4xf32>
    %cst_78 = arith.constant dense<0.000000e+00> : vector<288x4xf32>
    %98 = tpu.matmul %95, %97, %cst_78 {dimension_numbers = #tpu.dot_dimension_numbers<[1], [0], [0], [1], [0, 0, 1, 1], [], []>} : vector<288x4xf32>, vector<4x4xf32>, vector<288x4xf32> -> vector<288x4xf32>
    %99 = arith.addf %94, %98 : vector<288x4xf32>
    %c18_79 = arith.constant 18 : index
    %c0_80 = arith.constant 0 : index
    %100 = vector.load %arg7[%c18_79, %c0_80] : memref<328x4xf32, #tpu.memory_space<vmem>>, vector<288x4xf32>
    %c3_81 = arith.constant 3 : index
    %c0_82 = arith.constant 0 : index
    %c0_83 = arith.constant 0 : index
    %101 = vector.load %arg4[%c3_81, %c0_82, %c0_83] : memref<9x4x4xf32, #tpu.memory_space<vmem>>, vector<1x4x4xf32>
    %102 = vector.shape_cast %101 : vector<1x4x4xf32> to vector<4x4xf32>
    %cst_84 = arith.constant dense<0.000000e+00> : vector<288x4xf32>
    %103 = tpu.matmul %100, %102, %cst_84 {dimension_numbers = #tpu.dot_dimension_numbers<[1], [0], [0], [1], [0, 0, 1, 1], [], []>} : vector<288x4xf32>, vector<4x4xf32>, vector<288x4xf32> -> vector<288x4xf32>
    %104 = arith.addf %99, %103 : vector<288x4xf32>
    %c19_85 = arith.constant 19 : index
    %c0_86 = arith.constant 0 : index
    %105 = vector.load %arg7[%c19_85, %c0_86] : memref<328x4xf32, #tpu.memory_space<vmem>>, vector<288x4xf32>
    %c4_87 = arith.constant 4 : index
    %c0_88 = arith.constant 0 : index
    %c0_89 = arith.constant 0 : index
    %106 = vector.load %arg4[%c4_87, %c0_88, %c0_89] : memref<9x4x4xf32, #tpu.memory_space<vmem>>, vector<1x4x4xf32>
    %107 = vector.shape_cast %106 : vector<1x4x4xf32> to vector<4x4xf32>
    %cst_90 = arith.constant dense<0.000000e+00> : vector<288x4xf32>
    %108 = tpu.matmul %105, %107, %cst_90 {dimension_numbers = #tpu.dot_dimension_numbers<[1], [0], [0], [1], [0, 0, 1, 1], [], []>} : vector<288x4xf32>, vector<4x4xf32>, vector<288x4xf32> -> vector<288x4xf32>
    %109 = arith.addf %104, %108 : vector<288x4xf32>
    %c20_91 = arith.constant 20 : index
    %c0_92 = arith.constant 0 : index
    %110 = vector.load %arg7[%c20_91, %c0_92] : memref<328x4xf32, #tpu.memory_space<vmem>>, vector<288x4xf32>
    %c5_93 = arith.constant 5 : index
    %c0_94 = arith.constant 0 : index
    %c0_95 = arith.constant 0 : index
    %111 = vector.load %arg4[%c5_93, %c0_94, %c0_95] : memref<9x4x4xf32, #tpu.memory_space<vmem>>, vector<1x4x4xf32>
    %112 = vector.shape_cast %111 : vector<1x4x4xf32> to vector<4x4xf32>
    %cst_96 = arith.constant dense<0.000000e+00> : vector<288x4xf32>
    %113 = tpu.matmul %110, %112, %cst_96 {dimension_numbers = #tpu.dot_dimension_numbers<[1], [0], [0], [1], [0, 0, 1, 1], [], []>} : vector<288x4xf32>, vector<4x4xf32>, vector<288x4xf32> -> vector<288x4xf32>
    %114 = arith.addf %109, %113 : vector<288x4xf32>
    %c36_97 = arith.constant 36 : index
    %c0_98 = arith.constant 0 : index
    %115 = vector.load %arg7[%c36_97, %c0_98] : memref<328x4xf32, #tpu.memory_space<vmem>>, vector<288x4xf32>
    %c6_99 = arith.constant 6 : index
    %c0_100 = arith.constant 0 : index
    %c0_101 = arith.constant 0 : index
    %116 = vector.load %arg4[%c6_99, %c0_100, %c0_101] : memref<9x4x4xf32, #tpu.memory_space<vmem>>, vector<1x4x4xf32>
    %117 = vector.shape_cast %116 : vector<1x4x4xf32> to vector<4x4xf32>
    %cst_102 = arith.constant dense<0.000000e+00> : vector<288x4xf32>
    %118 = tpu.matmul %115, %117, %cst_102 {dimension_numbers = #tpu.dot_dimension_numbers<[1], [0], [0], [1], [0, 0, 1, 1], [], []>} : vector<288x4xf32>, vector<4x4xf32>, vector<288x4xf32> -> vector<288x4xf32>
    %119 = arith.addf %114, %118 : vector<288x4xf32>
    %c37_103 = arith.constant 37 : index
    %c0_104 = arith.constant 0 : index
    %120 = vector.load %arg7[%c37_103, %c0_104] : memref<328x4xf32, #tpu.memory_space<vmem>>, vector<288x4xf32>
    %c7_105 = arith.constant 7 : index
    %c0_106 = arith.constant 0 : index
    %c0_107 = arith.constant 0 : index
    %121 = vector.load %arg4[%c7_105, %c0_106, %c0_107] : memref<9x4x4xf32, #tpu.memory_space<vmem>>, vector<1x4x4xf32>
    %122 = vector.shape_cast %121 : vector<1x4x4xf32> to vector<4x4xf32>
    %cst_108 = arith.constant dense<0.000000e+00> : vector<288x4xf32>
    %123 = tpu.matmul %120, %122, %cst_108 {dimension_numbers = #tpu.dot_dimension_numbers<[1], [0], [0], [1], [0, 0, 1, 1], [], []>} : vector<288x4xf32>, vector<4x4xf32>, vector<288x4xf32> -> vector<288x4xf32>
    %124 = arith.addf %119, %123 : vector<288x4xf32>
    %c38_109 = arith.constant 38 : index
    %c0_110 = arith.constant 0 : index
    %125 = vector.load %arg7[%c38_109, %c0_110] : memref<328x4xf32, #tpu.memory_space<vmem>>, vector<288x4xf32>
    %c8_111 = arith.constant 8 : index
    %c0_112 = arith.constant 0 : index
    %c0_113 = arith.constant 0 : index
    %126 = vector.load %arg4[%c8_111, %c0_112, %c0_113] : memref<9x4x4xf32, #tpu.memory_space<vmem>>, vector<1x4x4xf32>
    %127 = vector.shape_cast %126 : vector<1x4x4xf32> to vector<4x4xf32>
    %cst_114 = arith.constant dense<0.000000e+00> : vector<288x4xf32>
    %128 = tpu.matmul %125, %127, %cst_114 {dimension_numbers = #tpu.dot_dimension_numbers<[1], [0], [0], [1], [0, 0, 1, 1], [], []>} : vector<288x4xf32>, vector<4x4xf32>, vector<288x4xf32> -> vector<288x4xf32>
    %129 = arith.addf %124, %128 : vector<288x4xf32>
    %c0_115 = arith.constant 0 : index
    %c0_116 = arith.constant 0 : index
    %130 = vector.load %arg5[%c0_115, %c0_116] : memref<1x4xf32, #tpu.memory_space<vmem>>, vector<1x4xf32>
    %131 = vector.broadcast %130 : vector<1x4xf32> to vector<288x4xf32>
    %132 = arith.addf %129, %131 : vector<288x4xf32>
    %cst_117 = arith.constant 0.000000e+00 : f32
    %133 = vector.broadcast %cst_117 : f32 to vector<288x4xf32>
    %134 = arith.maximumf %132, %133 : vector<288x4xf32>
    %c0_118 = arith.constant 0 : index
    %c19_119 = arith.constant 19 : index
    %c0_120 = arith.constant 0 : index
    %135 = vector.load %arg1[%c0_118, %c19_119, %c0_120] : memref<1x328x4xf32, #tpu.memory_space<vmem>>, vector<1x288x4xf32>
    %136 = vector.shape_cast %135 : vector<1x288x4xf32> to vector<288x4xf32>
    %137 = arith.addf %136, %134 : vector<288x4xf32>
    %c0_121 = arith.constant 0 : index
    %c0_122 = arith.constant 0 : index
    %c0_123 = arith.constant 0 : index
    %138 = vector.load %arg6[%c0_121, %c0_122, %c0_123] : memref<1x288x4xf32, #tpu.memory_space<vmem>>, vector<1x288x4xf32>
    %139 = vector.shape_cast %138 : vector<1x288x4xf32> to vector<288x4xf32>
    %140 = vector.shape_cast %137 : vector<288x4xf32> to vector<1x288x4xf32>
    tpu.vector_store %arg6[%c0_121, %c0_122, %c0_123], %140 {strides = array<i32>} : memref<1x288x4xf32, #tpu.memory_space<vmem>>, vector<1x288x4xf32>,
    return
  }
  func.func @transform_0(%arg0: i32) -> (i32, i32, i32) {
    %c0_i32 = arith.constant 0 : i32
    %c0_i32_0 = arith.constant 0 : i32
    %c0_i32_1 = arith.constant 0 : i32
    return %arg0, %c0_i32, %c0_i32_0 : i32, i32, i32
  }
  func.func @transform_1(%arg0: i32) -> (i32, i32, i32) {
    %c0_i32 = arith.constant 0 : i32
    %c0_i32_0 = arith.constant 0 : i32
    %c0_i32_1 = arith.constant 0 : i32
    %c0_i32_2 = arith.constant 0 : i32
    return %c0_i32, %c0_i32_0, %c0_i32_1 : i32, i32, i32
  }
  func.func @transform_2(%arg0: i32) -> (i32, i32) {
    %c0_i32 = arith.constant 0 : i32
    %c0_i32_0 = arith.constant 0 : i32
    %c0_i32_1 = arith.constant 0 : i32
    return %c0_i32, %c0_i32_0 : i32, i32
  }
  func.func @transform_3(%arg0: i32) -> (i32, i32, i32) {
    %c0_i32 = arith.constant 0 : i32
    %c0_i32_0 = arith.constant 0 : i32
    %c0_i32_1 = arith.constant 0 : i32
    %c0_i32_2 = arith.constant 0 : i32
    return %c0_i32, %c0_i32_0, %c0_i32_1 : i32, i32, i32
  }
  func.func @transform_4(%arg0: i32) -> (i32, i32) {
    %c0_i32 = arith.constant 0 : i32
    %c0_i32_0 = arith.constant 0 : i32
    %c0_i32_1 = arith.constant 0 : i32
    return %c0_i32, %c0_i32_0 : i32, i32
  }
  func.func @transform_5(%arg0: i32) -> (i32, i32, i32) {
    %c0_i32 = arith.constant 0 : i32
    %c0_i32_0 = arith.constant 0 : i32
    %c0_i32_1 = arith.constant 0 : i32
    return %arg0, %c0_i32, %c0_i32_0 : i32, i32, i32
  }
}

</mosaic_0001>

<bundles_post_ra>
// kernel: tpu_custom_call.1
= control target key start
LH: loop header
LB: loop body
LE: loop exit
PB: predicated region body
PF: predicated region fallthrough
CT: control target
= control target key end

     0   :  { %s12009_s18 = smov 0   ;;  %s14706_s0 = inlined_call_operand.vmem [shape: f32[2,328,4], index: 0, kind: input, shape index: {}]   ;;  %s14707_s1 = inlined_call_operand.vmem [shape: f32[9,4,4], index: 1, kind: input, shape index: {}]   ;;  %s14708_s2 = inlined_call_operand.vmem [shape: f32[1,4], index: 2, kind: input, shape index: {}]   ;;  %s14709_s3 = inlined_call_operand.vmem [shape: f32[9,4,4], index: 3, kind: input, shape index: {}]   ;;  %s14710_s4 = inlined_call_operand.vmem [shape: f32[1,4], index: 4, kind: input, shape index: {}]   ;;  %s14711_s5 = inlined_call_operand.vmem [shape: f32[2,288,4], index: 5, kind: output, shape index: {}]  }
   0x1 LB: > { %s8943_s19 = sadd.s32 4294967295, %s11976_s18   ;;  %p8947_p0 = scmp.ge.s32.totalorder %s11976_s18, 1  ;;  %s11976_s18 = sphi %s12009_s18, %s15_s18  }
   0x2   : > { %p187_p1 = scmp.lt.s32.totalorder %s11976_s18, 3 }
   0x4   : > { %p188_p2 = pnand %p8947_p0, %p187_p1 }
   0x6   : > { %191 = sbr.rel (%p188_p2) target bundleno = 1698 (0x6a2), region = 40 }
   0xd   : > { %v8950_v0 = vld [vmem:[%s14707_s1 + $0x4] sm:$0xf]  ;;  %vm14712_vm0 = vcmask 1043456   ;;  %p215_p3 = scmp.lt.s32.totalorder %s8943_s19, 1  ;;  %v261_v1 = vld [vmem:[%s14707_s1] sm:$0xf] }
   0xe   : > { %10302 = vmatprep.subr.msk.mxu0 %vm14712_vm0, %v8950_v0  ;;  %vm14713_vm1 = vcmask 31744   ;;  %v12041_v5 = vld [vmem:[%s14707_s1 + $0x8] sm:$0xf]  ;;  %v12121_v42 = vld [vmem:[%s14707_s1 + $0xc] sm:$0xf]  ;;  %vm4862_vm2 = vcmask 26624  }
   0xf   : > { %10303 = vmatpush3.msk.msra.mxu0 %vm14712_vm0, %v8950_v0  ;;  %s15297_s19 = smov (!%p215_p3, %s8943_s19), 1 }
  0x10   : > { %10358 = vmatprep.subr.msk.mxu0 %vm14712_vm0, %v261_v1  ;;  %s11886_s24 = smul.u32 328, %s15297_s19 }
  0x11   : > { %s11887_s21 = smul.u32 288, %s15297_s19 }
  0x12   : > { %s12032_s27 = scalar_lea.vmem %s14706_s0, %s11886_s24 }
  0x13   : > { %v262_v2 = vld [vmem:[%s12032_s27 + $0x1] sm:$0xff]  ;;  %v263_v3 = vld [vmem:[%s12032_s27 + $0x9] sm:$0xff]  ;;  %v264_v4 = vld [vmem:[%s12032_s27 + $0x11] sm:$0xff]  ;;  %s14561_s24 = scalar_lea.vmem %s14711_s5, %s11887_s21 }
  0x14   : > { %10304 = vmatprep.mubr.msk.f32.mxu0 %vm14713_vm1, %v262_v2  ;;  %v265_v6 = vld [vmem:[%s12032_s27 + $0x19] sm:$0xff]  ;;  %v266_v7 = vld [vmem:[%s12032_s27 + $0x21] sm:$0xff]  ;;  %v267_v8 = vld [vmem:[%s12032_s27 + $0x29] sm:$0xff] }
  0x15   : > { %10305 = vmatmul.mubr.msk.f32.vlgmr.msra.gmra.mrb[0].mxu0 %vm14713_vm1, %v263_v3  ;;  %v268_v9 = vld [vmem:[%s12032_s27 + $0x31] sm:$0xff]  ;;  %v269_v10 = vld [vmem:[%s12032_s27 + $0x39] sm:$0xff]  ;;  %v270_v11 = vld [vmem:[%s12032_s27 + $0x41] sm:$0xff] }
  0x16   : > { %10359 = vmatpush3.msk.msra.mxu0 %vm14712_vm0, %v261_v1  ;;  %10307 = vmatprep.mubr.msk.f32.mxu0 %vm14713_vm1, %v264_v4  ;;  %v271_v12 = vld [vmem:[%s12032_s27 + $0x49] sm:$0xff]  ;;  %v272_v13 = vld [vmem:[%s12032_s27 + $0x51] sm:$0xff]  ;;  %v273_v14 = vld [vmem:[%s12032_s27 + $0x59] sm:$0xff] }
  0x17   : > { %10414 = vmatprep.subr.msk.mxu0 %vm14712_vm0, %v12041_v5  ;;  %v274_v15 = vld [vmem:[%s12032_s27 + $0x61] sm:$0xff]  ;;  %v275_v16 = vld [vmem:[%s12032_s27 + $0x69] sm:$0xff]  ;;  %v276_v17 = vld [vmem:[%s12032_s27 + $0x71] sm:$0xff] }
  0x18   : > { %v277_v18 = vld [vmem:[%s12032_s27 + $0x79] sm:$0xff]  ;;  %v278_v19 = vld [vmem:[%s12032_s27 + $0x81] sm:$0xff]  ;;  %v279_v20 = vld [vmem:[%s12032_s27 + $0x89] sm:$0xff] }
  0x19   : > { %10308 = vmatmul.mubr.msk.f32.gmra.mrb[2].mxu0 %vm14713_vm1, %v265_v6  ;;  %v280_v21 = vld [vmem:[%s12032_s27 + $0x91] sm:$0xff]  ;;  %v281_v22 = vld [vmem:[%s12032_s27 + $0x99] sm:$0xff]  ;;  %v282_v23 = vld [vmem:[%s12032_s27 + $0xa1] sm:$0xff] }
  0x1a   : > { %10310 = vmatprep.mubr.msk.f32.mxu0 %vm14713_vm1, %v266_v7  ;;  %v283_v24 = vld [vmem:[%s12032_s27 + $0xa9] sm:$0xff]  ;;  %v284_v25 = vld [vmem:[%s12032_s27 + $0xb1] sm:$0xff]  ;;  %v285_v26 = vld [vmem:[%s12032_s27 + $0xb9] sm:$0xff] }
  0x1b   : > { %v286_v27 = vld [vmem:[%s12032_s27 + $0xc1] sm:$0xff]  ;;  %v287_v28 = vld [vmem:[%s12032_s27 + $0xc9] sm:$0xff]  ;;  %v288_v29 = vld [vmem:[%s12032_s27 + $0xd1] sm:$0xff] }
  0x1c   : > { %v289_v30 = vld [vmem:[%s12032_s27 + $0xd9] sm:$0xff]  ;;  %v290_v31 = vld [vmem:[%s12032_s27 + $0xe1] sm:$0xff]  ;;  %v291_v32 = vld [vmem:[%s12032_s27 + $0xe9] sm:$0xff] }
  0x1d   : > { %10311 = vmatmul.mubr.msk.f32.gmra.mrb[4].mxu0 %vm14713_vm1, %v267_v8  ;;  %v292_v33 = vld [vmem:[%s12032_s27 + $0xf1] sm:$0xff]  ;;  %v293_v34 = vld [vmem:[%s12032_s27 + $0xf9] sm:$0xff]  ;;  %v294_v35 = vld [vmem:[%s12032_s27 + $0x101] sm:$0xff] }
  0x1e   : > { %10313 = vmatprep.mubr.msk.f32.mxu0 %vm14713_vm1, %v268_v9  ;;  %v295_v36 = vld [vmem:[%s12032_s27 + $0x109] sm:$0xff]  ;;  %v296_v37 = vld [vmem:[%s12032_s27 + $0x111] sm:$0xff]  ;;  %v297_v38 = vld [vmem:[%s12032_s27 + $0x119] sm:$0xff] }
  0x1f   : > { %v225_v39 = vld [vmem:[%s12032_s27] sm:$0xff]  ;;  %v226_v40 = vld [vmem:[%s12032_s27 + $0x8] sm:$0xff]  ;;  %v227_v41 = vld [vmem:[%s12032_s27 + $0x10] sm:$0xff] }
  0x20   : > { %v228_v43 = vld [vmem:[%s12032_s27 + $0x18] sm:$0xff]  ;;  %v229_v44 = vld [vmem:[%s12032_s27 + $0x20] sm:$0xff]  ;;  %v230_v45 = vld [vmem:[%s12032_s27 + $0x28] sm:$0xff] }
  0x21   : > { %10314 = vmatmul.mubr.msk.f32.gmra.mrb[6].mxu0 %vm14713_vm1, %v269_v10  ;;  %v231_v46 = vld [vmem:[%s12032_s27 + $0x30] sm:$0xff]  ;;  %v232_v47 = vld [vmem:[%s12032_s27 + $0x38] sm:$0xff]  ;;  %v233_v48 = vld [vmem:[%s12032_s27 + $0x40] sm:$0xff] }
  0x22   : > { %10316 = vmatprep.mubr.msk.f32.mxu0 %vm14713_vm1, %v270_v11  ;;  %v234_v49 = vld [vmem:[%s12032_s27 + $0x48] sm:$0xff]  ;;  %v235_v50 = vld [vmem:[%s12032_s27 + $0x50] sm:$0xff]  ;;  %v236_v51 = vld [vmem:[%s12032_s27 + $0x58] sm:$0xff] }
  0x23   : > { %v237_v52 = vld [vmem:[%s12032_s27 + $0x60] sm:$0xff]  ;;  %v238_v53 = vld [vmem:[%s12032_s27 + $0x68] sm:$0xff]  ;;  %v239_v54 = vld [vmem:[%s12032_s27 + $0x70] sm:$0xff] }
  0x24   : > { %v240_v55 = vld [vmem:[%s12032_s27 + $0x78] sm:$0xff]  ;;  %v241_v56 = vld [vmem:[%s12032_s27 + $0x80] sm:$0xff]  ;;  %v242_v57 = vld [vmem:[%s12032_s27 + $0x88] sm:$0xff] }
  0x25   : > { %10317 = vmatmul.mubr.msk.f32.gmra.mrb[8].mxu0 %vm14713_vm1, %v271_v12  ;;  %v243_v58 = vld [vmem:[%s12032_s27 + $0x90] sm:$0xff]  ;;  %v244_v59 = vld [vmem:[%s12032_s27 + $0x98] sm:$0xff]  ;;  %v245_v60 = vld [vmem:[%s12032_s27 + $0xa0] sm:$0xff] }
  0x26   : > { %10319 = vmatprep.mubr.msk.f32.mxu0 %vm14713_vm1, %v272_v13  ;;  %v246_v61 = vld [vmem:[%s12032_s27 + $0xa8] sm:$0xff]  ;;  %v247_v62 = vld [vmem:[%s12032_s27 + $0xb0] sm:$0xff]  ;;  %v248_v63 = vld [vmem:[%s12032_s27 + $0xb8] sm:$0xff] }
  0x27   : > { %v249_v0 = vld [vmem:[%s12032_s27 + $0xc0] sm:$0xff]  ;;  %v250_v1 = vld [vmem:[%s12032_s27 + $0xc8] sm:$0xff]  ;;  %v251_v2 = vld [vmem:[%s12032_s27 + $0xd0] sm:$0xff] }
  0x28   : > { %v252_v3 = vld [vmem:[%s12032_s27 + $0xd8] sm:$0xff]  ;;  %v253_v4 = vld [vmem:[%s12032_s27 + $0xe0] sm:$0xff]  ;;  %v255_v6 = vld [vmem:[%s12032_s27 + $0xf0] sm:$0xff] }
  0x29   : > { %10320 = vmatmul.mubr.msk.f32.gmra.mrb[10].mxu0 %vm14713_vm1, %v273_v14  ;;  %v256_v7 = vld [vmem:[%s12032_s27 + $0xf8] sm:$0xff]  ;;  %v257_v8 = vld [vmem:[%s12032_s27 + $0x100] sm:$0xff]  ;;  %v258_v9 = vld [vmem:[%s12032_s27 + $0x108] sm:$0xff] }
  0x2a   : > { %10322 = vmatprep.mubr.msk.f32.mxu0 %vm14713_vm1, %v274_v15  ;;  %v259_v10 = vld [vmem:[%s12032_s27 + $0x110] sm:$0xff]  ;;  %v260_v11 = vld [vmem:[%s12032_s27 + $0x118] sm:$0xff]  ;;  %v1014_v12 = vld [vmem:[%s12032_s27 + $0x2] sm:$0xff] }
  0x2b   : > { %v1015_v13 = vld [vmem:[%s12032_s27 + $0xa] sm:$0xff]  ;;  %v12199_v14 = vld [vmem:[%s12032_s27 + $0x12] sm:$0xff] }
  0x2c   : > { %v12204_v15 = vld [vmem:[%s14707_s1 + $0x10] sm:$0xf] }
  0x2d   : > { %10323 = vmatmul.mubr.msk.f32.gmra.mrb[12].mxu0 %vm14713_vm1, %v275_v16  ;;  %v12212_v16 = vld [vmem:[%s12032_s27 + $0x1a] sm:$0xff] }
  0x2e   : > { %10325 = vmatprep.mubr.msk.f32.mxu0 %vm14713_vm1, %v276_v17  ;;  %v12215_v17 = vld [vmem:[%s12032_s27 + $0x22] sm:$0xff] }
  0x31   : > { %10326 = vmatmul.mubr.msk.f32.gmra.mrb[14].mxu0 %vm14713_vm1, %v277_v18  ;;  %v12224_v18 = vld [vmem:[%s12032_s27 + $0x2a] sm:$0xff] }
  0x32   : > { %10328 = vmatprep.mubr.msk.f32.mxu0 %vm14713_vm1, %v278_v19  ;;  %v12227_v19 = vld [vmem:[%s12032_s27 + $0x32] sm:$0xff] }
  0x35   : > { %10329 = vmatmul.mubr.msk.f32.gmra.mrb[16].mxu0 %vm14713_vm1, %v279_v20  ;;  %v12234_v20 = vld [vmem:[%s12032_s27 + $0x3a] sm:$0xff] }
  0x36   : > { %10331 = vmatprep.mubr.msk.f32.mxu0 %vm14713_vm1, %v280_v21  ;;  %v12237_v21 = vld [vmem:[%s12032_s27 + $0x42] sm:$0xff] }
  0x39   : > { %10332 = vmatmul.mubr.msk.f32.gmra.mrb[18].mxu0 %vm14713_vm1, %v281_v22  ;;  %v12244_v22 = vld [vmem:[%s12032_s27 + $0x4a] sm:$0xff] }
  0x3a   : > { %10334 = vmatprep.mubr.msk.f32.mxu0 %vm14713_vm1, %v282_v23  ;;  %v12247_v23 = vld [vmem:[%s12032_s27 + $0x52] sm:$0xff] }
  0x3d   : > { %10335 = vmatmul.mubr.msk.f32.gmra.mrb[20].mxu0 %vm14713_vm1, %v283_v24  ;;  %v1025_v24 = vld [vmem:[%s12032_s27 + $0x5a] sm:$0xff] }
  0x3e   : > { %10337 = vmatprep.mubr.msk.f32.mxu0 %vm14713_vm1, %v284_v25  ;;  %v1026_v25 = vld [vmem:[%s12032_s27 + $0x62] sm:$0xff] }
  0x41   : > { %10338 = vmatmul.mubr.msk.f32.gmra.mrb[22].mxu0 %vm14713_vm1, %v285_v26  ;;  %v1027_v26 = vld [vmem:[%s12032_s27 + $0x6a] sm:$0xff] }
  0x42   : > { %10340 = vmatprep.mubr.msk.f32.mxu0 %vm14713_vm1, %v286_v27  ;;  %v1028_v27 = vld [vmem:[%s12032_s27 + $0x72] sm:$0xff] }
  0x45   : > { %10341 = vmatmul.mubr.msk.f32.gmra.mrb[24].mxu0 %vm14713_vm1, %v287_v28  ;;  %v1029_v28 = vld [vmem:[%s12032_s27 + $0x7a] sm:$0xff] }
  0x46   : > { %10343 = vmatprep.mubr.msk.f32.mxu0 %vm14713_vm1, %v288_v29  ;;  %v1030_v29 = vld [vmem:[%s12032_s27 + $0x82] sm:$0xff] }
  0x49   : > { %10344 = vmatmul.mubr.msk.f32.gmra.mrb[26].mxu0 %vm14713_vm1, %v289_v30  ;;  %v1031_v30 = vld [vmem:[%s12032_s27 + $0x8a] sm:$0xff] }
  0x4a   : > { %10346 = vmatprep.mubr.msk.f32.mxu0 %vm14713_vm1, %v290_v31  ;;  %v1032_v31 = vld [vmem:[%s12032_s27 + $0x92] sm:$0xff] }
  0x4d   : > { %10347 = vmatmul.mubr.msk.f32.gmra.mrb[28].mxu0 %vm14713_vm1, %v291_v32  ;;  %v1033_v32 = vld [vmem:[%s12032_s27 + $0x9a] sm:$0xff] }
  0x4e   : > { %10349 = vmatprep.mubr.msk.f32.mxu0 %vm14713_vm1, %v292_v33  ;;  %v1034_v33 = vld [vmem:[%s12032_s27 + $0xa2] sm:$0xff] }
  0x51   : > { %10350 = vmatmul.mubr.msk.f32.gmra.mrb[30].mxu0 %vm14713_vm1, %v293_v34  ;;  %v1035_v34 = vld [vmem:[%s12032_s27 + $0xaa] sm:$0xff] }
  0x52   : > { %10352 = vmatprep.mubr.msk.f32.mxu0 %vm14713_vm1, %v294_v35  ;;  %v1036_v35 = vld [vmem:[%s12032_s27 + $0xb2] sm:$0xff] }
  0x55   : > { %10353 = vmatmul.mubr.msk.f32.gmra.mrb[32].mxu0 %vm14713_vm1, %v295_v36  ;;  %v1037_v36 = vld [vmem:[%s12032_s27 + $0xba] sm:$0xff] }
  0x56   : > { %10355 = vmatprep.mubr.msk.f32.mxu0 %vm14713_vm1, %v296_v37  ;;  %v1038_v37 = vld [vmem:[%s12032_s27 + $0xc2] sm:$0xff] }
  0x59   : > { %10356 = vmatmul.mubr.msk.f32.gmra.mrb[34].mxu0 %vm14713_vm1, %v297_v38  ;;  %v1039_v38 = vld [vmem:[%s12032_s27 + $0xca] sm:$0xff] }
  0x5a   : > { %10360 = vmatprep.mubr.msk.f32.mxu0 %vm14713_vm1, %v225_v39  ;;  %v1040_v39 = vld [vmem:[%s12032_s27 + $0xd2] sm:$0xff] }
  0x5d   : > { %10361 = vmatmul.mubr.msk.f32.vlgmr.msra.gmra.mrb[0].mxu0 %vm14713_vm1, %v226_v40  ;;  %v1041_v40 = vld [vmem:[%s12032_s27 + $0xda] sm:$0xff] }
  0x5e   : > { %10415 = vmatpush3.msk.msra.mxu0 %vm14712_vm0, %v12041_v5  ;;  %10363 = vmatprep.mubr.msk.f32.mxu0 %vm14713_vm1, %v227_v41  ;;  %v254_v5 = vld [vmem:[%s12032_s27 + $0xe8] sm:$0xff] }
  0x5f   : > { %10470 = vmatprep.subr.msk.mxu0 %vm14712_vm0, %v12121_v42  ;;  %v1042_v41 = vld [vmem:[%s12032_s27 + $0xe2] sm:$0xff] }
  0x61   : > { %10364 = vmatmul.mubr.msk.f32.gmra.mrb[2].mxu0 %vm14713_vm1, %v228_v43  ;;  %v1044_v43 = vld [vmem:[%s12032_s27 + $0xf2] sm:$0xff] }
  0x62   : > { %10366 = vmatprep.mubr.msk.f32.mxu0 %vm14713_vm1, %v229_v44  ;;  %v1045_v44 = vld [vmem:[%s12032_s27 + $0xfa] sm:$0xff] }
  0x65   : > { %10367 = vmatmul.mubr.msk.f32.gmra.mrb[4].mxu0 %vm14713_vm1, %v230_v45  ;;  %v1046_v45 = vld [vmem:[%s12032_s27 + $0x102] sm:$0xff] }
  0x66   : > { %10369 = vmatprep.mubr.msk.f32.mxu0 %vm14713_vm1, %v231_v46  ;;  %v1047_v46 = vld [vmem:[%s12032_s27 + $0x10a] sm:$0xff] }
  0x69   : > { %10370 = vmatmul.mubr.msk.f32.gmra.mrb[6].mxu0 %vm14713_vm1, %v232_v47  ;;  %v1048_v47 = vld [vmem:[%s12032_s27 + $0x112] sm:$0xff] }
  0x6a   : > { %10372 = vmatprep.mubr.msk.f32.mxu0 %vm14713_vm1, %v233_v48  ;;  %v1049_v48 = vld [vmem:[%s12032_s27 + $0x11a] sm:$0xff] }
  0x6d   : > { %10373 = vmatmul.mubr.msk.f32.gmra.mrb[8].mxu0 %vm14713_vm1, %v234_v49  ;;  %v9139_v49 = vld [vmem:[%s14707_s1 + $0x14] sm:$0xf] }
  0x6e   : > { %10375 = vmatprep.mubr.msk.f32.mxu0 %vm14713_vm1, %v235_v50  ;;  %v1478_v50 = vld [vmem:[%s12032_s27 + $0x122] sm:$0xff] }
  0x71   : > { %10376 = vmatmul.mubr.msk.f32.gmra.mrb[10].mxu0 %vm14713_vm1, %v236_v51  ;;  %v1479_v51 = vld [vmem:[%s12032_s27 + $0x12a] sm:$0xff] }
  0x72   : > { %10378 = vmatprep.mubr.msk.f32.mxu0 %vm14713_vm1, %v237_v52  ;;  %v1874_v52 = vld [vmem:[%s12032_s27 + $0x13] sm:$0xff] }
  0x75   : > { %10379 = vmatmul.mubr.msk.f32.gmra.mrb[12].mxu0 %vm14713_vm1, %v238_v53  ;;  %v1875_v53 = vld [vmem:[%s12032_s27 + $0x1b] sm:$0xff] }
  0x76   : > { %10381 = vmatprep.mubr.msk.f32.mxu0 %vm14713_vm1, %v239_v54  ;;  %v1876_v54 = vld [vmem:[%s12032_s27 + $0x23] sm:$0xff] }
  0x79   : > { %10382 = vmatmul.mubr.msk.f32.gmra.mrb[14].mxu0 %vm14713_vm1, %v240_v55  ;;  %v12363_v55 = vld [vmem:[%s14707_s1 + $0x18] sm:$0xf] }
  0x7a   : > { %10384 = vmatprep.mubr.msk.f32.mxu0 %vm14713_vm1, %v241_v56  ;;  %v1877_v56 = vld [vmem:[%s12032_s27 + $0x2b] sm:$0xff] }
  0x7d   : > { %10385 = vmatmul.mubr.msk.f32.gmra.mrb[16].mxu0 %vm14713_vm1, %v242_v57  ;;  %v1878_v57 = vld [vmem:[%s12032_s27 + $0x33] sm:$0xff] }
  0x7e   : > { %10387 = vmatprep.mubr.msk.f32.mxu0 %vm14713_vm1, %v243_v58  ;;  %v1879_v58 = vld [vmem:[%s12032_s27 + $0x3b] sm:$0xff] }
  0x81   : > { %10388 = vmatmul.mubr.msk.f32.gmra.mrb[18].mxu0 %vm14713_vm1, %v244_v59  ;;  %v1880_v59 = vld [vmem:[%s12032_s27 + $0x43] sm:$0xff] }
  0x82   : > { %10390 = vmatprep.mubr.msk.f32.mxu0 %vm14713_vm1, %v245_v60  ;;  %v1881_v60 = vld [vmem:[%s12032_s27 + $0x4b] sm:$0xff] }
  0x85   : > { %10391 = vmatmul.mubr.msk.f32.gmra.mrb[20].mxu0 %vm14713_vm1, %v246_v61  ;;  %v1882_v61 = vld [vmem:[%s12032_s27 + $0x53] sm:$0xff] }
  0x86   : > { %10393 = vmatprep.mubr.msk.f32.mxu0 %vm14713_vm1, %v247_v62  ;;  %v1883_v62 = vld [vmem:[%s12032_s27 + $0x5b] sm:$0xff] }
  0x89   : > { %10394 = vmatmul.mubr.msk.f32.gmra.mrb[22].mxu0 %vm14713_vm1, %v248_v63  ;;  %v1884_v63 = vld [vmem:[%s12032_s27 + $0x63] sm:$0xff] }
  0x8a   : > { %10396 = vmatprep.mubr.msk.f32.mxu0 %vm14713_vm1, %v249_v0  ;;  %v1885_v0 = vld [vmem:[%s12032_s27 + $0x6b] sm:$0xff] }
  0x8d   : > { %10397 = vmatmul.mubr.msk.f32.gmra.mrb[24].mxu0 %vm14713_vm1, %v250_v1  ;;  %v1886_v1 = vld [vmem:[%s12032_s27 + $0x73] sm:$0xff] }
  0x8e   : > { %10399 = vmatprep.mubr.msk.f32.mxu0 %vm14713_vm1, %v251_v2  ;;  %v1887_v2 = vld [vmem:[%s12032_s27 + $0x7b] sm:$0xff] }
  0x91   : > { %10400 = vmatmul.mubr.msk.f32.gmra.mrb[26].mxu0 %vm14713_vm1, %v252_v3  ;;  %v1888_v3 = vld [vmem:[%s12032_s27 + $0x83] sm:$0xff] }
  0x92   : > { %10402 = vmatprep.mubr.msk.f32.mxu0 %vm14713_vm1, %v253_v4  ;;  %v1889_v4 = vld [vmem:[%s12032_s27 + $0x8b] sm:$0xff] }
  0x95   : > { %10403 = vmatmul.mubr.msk.f32.gmra.mrb[28].mxu0 %vm14713_vm1, %v254_v5  ;;  %v1890_v5 = vld [vmem:[%s12032_s27 + $0x93] sm:$0xff] }
  0x96   : > { %10405 = vmatprep.mubr.msk.f32.mxu0 %vm14713_vm1, %v255_v6  ;;  %v1891_v6 = vld [vmem:[%s12032_s27 + $0x9b] sm:$0xff] }
  0x99   : > { %10406 = vmatmul.mubr.msk.f32.gmra.mrb[30].mxu0 %vm14713_vm1, %v256_v7  ;;  %v1892_v7 = vld [vmem:[%s12032_s27 + $0xa3] sm:$0xff] }
  0x9a   : > { %10408 = vmatprep.mubr.msk.f32.mxu0 %vm14713_vm1, %v257_v8  ;;  %v1893_v8 = vld [vmem:[%s12032_s27 + $0xab] sm:$0xff] }
  0x9d   : > { %10409 = vmatmul.mubr.msk.f32.gmra.mrb[32].mxu0 %vm14713_vm1, %v258_v9  ;;  %v1894_v9 = vld [vmem:[%s12032_s27 + $0xb3] sm:$0xff] }
  0x9e   : > { %10411 = vmatprep.mubr.msk.f32.mxu0 %vm14713_vm1, %v259_v10  ;;  %v1895_v10 = vld [vmem:[%s12032_s27 + $0xbb] sm:$0xff] }
  0xa1   : > { %10412 = vmatmul.mubr.msk.f32.gmra.mrb[34].mxu0 %vm14713_vm1, %v260_v11  ;;  %v1896_v11 = vld [vmem:[%s12032_s27 + $0xc3] sm:$0xff] }
  0xa2   : > { %10416 = vmatprep.mubr.msk.f32.mxu0 %vm14713_vm1, %v1014_v12  ;;  %v1897_v12 = vld [vmem:[%s12032_s27 + $0xcb] sm:$0xff] }
  0xa5   : > { %10417 = vmatmul.mubr.msk.f32.vlgmr.msra.gmra.mrb[0].mxu0 %vm14713_vm1, %v1015_v13  ;;  %v1898_v13 = vld [vmem:[%s12032_s27 + $0xd3] sm:$0xff] }
  0xa6   : > { %10471 = vmatpush3.msk.msra.mxu0 %vm14712_vm0, %v12121_v42  ;;  %10419 = vmatprep.mubr.msk.f32.mxu0 %vm14713_vm1, %v12199_v14  ;;  %v1043_v42 = vld [vmem:[%s12032_s27 + $0xea] sm:$0xff] }
  0xa7   : > { %10526 = vmatprep.subr.msk.mxu0 %vm14712_vm0, %v12204_v15 }
  0xa9   : > { %10420 = vmatmul.mubr.msk.f32.gmra.mrb[2].mxu0 %vm14713_vm1, %v12212_v16 }
  0xaa   : > { %10422 = vmatprep.mubr.msk.f32.mxu0 %vm14713_vm1, %v12215_v17 }
  0xad   : > { %10423 = vmatmul.mubr.msk.f32.gmra.mrb[4].mxu0 %vm14713_vm1, %v12224_v18 }
  0xae   : > { %10425 = vmatprep.mubr.msk.f32.mxu0 %vm14713_vm1, %v12227_v19 }
  0xb1   : > { %10426 = vmatmul.mubr.msk.f32.gmra.mrb[6].mxu0 %vm14713_vm1, %v12234_v20 }
  0xb2   : > { %10428 = vmatprep.mubr.msk.f32.mxu0 %vm14713_vm1, %v12237_v21 }
  0xb5   : > { %10429 = vmatmul.mubr.msk.f32.gmra.mrb[8].mxu0 %vm14713_vm1, %v12244_v22 }
  0xb6   : > { %10431 = vmatprep.mubr.msk.f32.mxu0 %vm14713_vm1, %v12247_v23 }
  0xb9   : > { %10432 = vmatmul.mubr.msk.f32.gmra.mrb[10].mxu0 %vm14713_vm1, %v1025_v24 }
  0xba   : > { %10434 = vmatprep.mubr.msk.f32.mxu0 %vm14713_vm1, %v1026_v25 }
  0xbd   : > { %10435 = vmatmul.mubr.msk.f32.gmra.mrb[12].mxu0 %vm14713_vm1, %v1027_v26 }
  0xbe   : > { %10437 = vmatprep.mubr.msk.f32.mxu0 %vm14713_vm1, %v1028_v27 }
  0xc1   : > { %10438 = vmatmul.mubr.msk.f32.gmra.mrb[14].mxu0 %vm14713_vm1, %v1029_v28 }
  0xc2   : > { %10440 = vmatprep.mubr.msk.f32.mxu0 %vm14713_vm1, %v1030_v29 }
  0xc5   : > { %10441 = vmatmul.mubr.msk.f32.gmra.mrb[16].mxu0 %vm14713_vm1, %v1031_v30 }
  0xc6   : > { %10443 = vmatprep.mubr.msk.f32.mxu0 %vm14713_vm1, %v1032_v31 }
  0xc9   : > { %10444 = vmatmul.mubr.msk.f32.gmra.mrb[18].mxu0 %vm14713_vm1, %v1033_v32 }
  0xca   : > { %10446 = vmatprep.mubr.msk.f32.mxu0 %vm14713_vm1, %v1034_v33 }
  0xcd   : > { %10447 = vmatmul.mubr.msk.f32.gmra.mrb[20].mxu0 %vm14713_vm1, %v1035_v34 }
  0xce   : > { %10449 = vmatprep.mubr.msk.f32.mxu0 %vm14713_vm1, %v1036_v35 }
  0xd1   : > { %10450 = vmatmul.mubr.msk.f32.gmra.mrb[22].mxu0 %vm14713_vm1, %v1037_v36 }
  0xd2   : > { %10452 = vmatprep.mubr.msk.f32.mxu0 %vm14713_vm1, %v1038_v37 }
  0xd5   : > { %10453 = vmatmul.mubr.msk.f32.gmra.mrb[24].mxu0 %vm14713_vm1, %v1039_v38 }
  0xd6   : > { %10455 = vmatprep.mubr.msk.f32.mxu0 %vm14713_vm1, %v1040_v39 }
  0xd9   : > { %10456 = vmatmul.mubr.msk.f32.gmra.mrb[26].mxu0 %vm14713_vm1, %v1041_v40 }
  0xda   : > { %10458 = vmatprep.mubr.msk.f32.mxu0 %vm14713_vm1, %v1042_v41 }
  0xdd   : > { %10459 = vmatmul.mubr.msk.f32.gmra.mrb[28].mxu0 %vm14713_vm1, %v1043_v42 }
  0xde   : > { %10461 = vmatprep.mubr.msk.f32.mxu0 %vm14713_vm1, %v1044_v43 }
  0xe1   : > { %10462 = vmatmul.mubr.msk.f32.gmra.mrb[30].mxu0 %vm14713_vm1, %v1045_v44 }
  0xe2   : > { %10464 = vmatprep.mubr.msk.f32.mxu0 %vm14713_vm1, %v1046_v45 }
  0xe5   : > { %10465 = vmatmul.mubr.msk.f32.gmra.mrb[32].mxu0 %vm14713_vm1, %v1047_v46 }
  0xe6   : > { %10467 = vmatprep.mubr.msk.f32.mxu0 %vm14713_vm1, %v1048_v47 }
  0xe9   : > { %10468 = vmatmul.mubr.msk.f32.gmra.mrb[34].mxu0 %vm14713_vm1, %v1049_v48 }
  0xea   : > { %10472 = vmatprep.mubr.msk.f32.mxu0 %vm14713_vm1, %v12199_v14  ;;  %v1899_v14 = vld [vmem:[%s12032_s27 + $0xdb] sm:$0xff] }
  0xed   : > { %10473 = vmatmul.mubr.msk.f32.vlgmr.msra.gmra.mrb[0].mxu0 %vm14713_vm1, %v12212_v16  ;;  %v1901_v16 = vld [vmem:[%s12032_s27 + $0xeb] sm:$0xff] }
  0xee   : > { %10527 = vmatpush3.msk.msra.mxu0 %vm14712_vm0, %v12204_v15  ;;  %10475 = vmatprep.mubr.msk.f32.mxu0 %vm14713_vm1, %v12215_v17  ;;  %v1900_v15 = vld [vmem:[%s12032_s27 + $0xe3] sm:$0xff]  ;;  %v1902_v17 = vld [vmem:[%s12032_s27 + $0xf3] sm:$0xff] }
  0xef   : > { %10582 = vmatprep.subr.msk.mxu0 %vm14712_vm0, %v9139_v49 }
  0xf1   : > { %10476 = vmatmul.mubr.msk.f32.gmra.mrb[2].mxu0 %vm14713_vm1, %v12224_v18  ;;  %v1903_v18 = vld [vmem:[%s12032_s27 + $0xfb] sm:$0xff] }
  0xf2   : > { %10478 = vmatprep.mubr.msk.f32.mxu0 %vm14713_vm1, %v12227_v19  ;;  %v1904_v19 = vld [vmem:[%s12032_s27 + $0x103] sm:$0xff] }
  0xf5   : > { %10479 = vmatmul.mubr.msk.f32.gmra.mrb[4].mxu0 %vm14713_vm1, %v12234_v20  ;;  %v1905_v20 = vld [vmem:[%s12032_s27 + $0x10b] sm:$0xff] }
  0xf6   : > { %10481 = vmatprep.mubr.msk.f32.mxu0 %vm14713_vm1, %v12237_v21  ;;  %v1906_v21 = vld [vmem:[%s12032_s27 + $0x113] sm:$0xff] }
  0xf9   : > { %10482 = vmatmul.mubr.msk.f32.gmra.mrb[6].mxu0 %vm14713_vm1, %v12244_v22  ;;  %v1907_v22 = vld [vmem:[%s12032_s27 + $0x11b] sm:$0xff] }
  0xfa   : > { %10484 = vmatprep.mubr.msk.f32.mxu0 %vm14713_vm1, %v12247_v23  ;;  %v1908_v23 = vld [vmem:[%s12032_s27 + $0x123] sm:$0xff] }
  0xfd   : > { %10485 = vmatmul.mubr.msk.f32.gmra.mrb[8].mxu0 %vm14713_vm1, %v1025_v24  ;;  %v1909_v24 = vld [vmem:[%s12032_s27 + $0x12b] sm:$0xff] }
  0xfe   : > { %10487 = vmatprep.mubr.msk.f32.mxu0 %vm14713_vm1, %v1026_v25  ;;  %v2304_v25 = vld [vmem:[%s12032_s27 + $0x14] sm:$0xff] }
 0x101   : > { %10488 = vmatmul.mubr.msk.f32.gmra.mrb[10].mxu0 %vm14713_vm1, %v1027_v26  ;;  %v2305_v26 = vld [vmem:[%s12032_s27 + $0x1c] sm:$0xff] }
 0x102   : > { %10490 = vmatprep.mubr.msk.f32.mxu0 %vm14713_vm1, %v1028_v27  ;;  %v12440_v27 = vld [vmem:[%s12032_s27 + $0x24] sm:$0xff] }
 0x105   : > { %10491 = vmatmul.mubr.msk.f32.gmra.mrb[12].mxu0 %vm14713_vm1, %v1029_v28  ;;  %v12445_v28 = vld [vmem:[%s14707_s1 + $0x1c] sm:$0xf] }
 0x106   : > { %10493 = vmatprep.mubr.msk.f32.mxu0 %vm14713_vm1, %v1030_v29  ;;  %v12453_v29 = vld [vmem:[%s12032_s27 + $0x2c] sm:$0xff] }
 0x109   : > { %10494 = vmatmul.mubr.msk.f32.gmra.mrb[14].mxu0 %vm14713_vm1, %v1031_v30  ;;  %v12456_v30 = vld [vmem:[%s12032_s27 + $0x34] sm:$0xff] }
 0x10a   : > { %10496 = vmatprep.mubr.msk.f32.mxu0 %vm14713_vm1, %v1032_v31  ;;  %v12465_v31 = vld [vmem:[%s12032_s27 + $0x3c] sm:$0xff] }
 0x10d   : > { %10497 = vmatmul.mubr.msk.f32.gmra.mrb[16].mxu0 %vm14713_vm1, %v1033_v32  ;;  %v12468_v32 = vld [vmem:[%s12032_s27 + $0x44] sm:$0xff] }
 0x10e   : > { %10499 = vmatprep.mubr.msk.f32.mxu0 %vm14713_vm1, %v1034_v33  ;;  %v12475_v33 = vld [vmem:[%s12032_s27 + $0x4c] sm:$0xff] }
 0x111   : > { %10500 = vmatmul.mubr.msk.f32.gmra.mrb[18].mxu0 %vm14713_vm1, %v1035_v34  ;;  %v12478_v34 = vld [vmem:[%s12032_s27 + $0x54] sm:$0xff] }
 0x112   : > { %10502 = vmatprep.mubr.msk.f32.mxu0 %vm14713_vm1, %v1036_v35  ;;  %v12485_v35 = vld [vmem:[%s12032_s27 + $0x5c] sm:$0xff] }
 0x115   : > { %10503 = vmatmul.mubr.msk.f32.gmra.mrb[20].mxu0 %vm14713_vm1, %v1037_v36  ;;  %v12488_v36 = vld [vmem:[%s12032_s27 + $0x64] sm:$0xff] }
 0x116   : > { %10505 = vmatprep.mubr.msk.f32.mxu0 %vm14713_vm1, %v1038_v37  ;;  %v2315_v37 = vld [vmem:[%s12032_s27 + $0x6c] sm:$0xff] }
 0x119   : > { %10506 = vmatmul.mubr.msk.f32.gmra.mrb[22].mxu0 %vm14713_vm1, %v1039_v38  ;;  %v2316_v38 = vld [vmem:[%s12032_s27 + $0x74] sm:$0xff] }
 0x11a   : > { %10508 = vmatprep.mubr.msk.f32.mxu0 %vm14713_vm1, %v1040_v39  ;;  %v2317_v39 = vld [vmem:[%s12032_s27 + $0x7c] sm:$0xff] }
 0x11d   : > { %10509 = vmatmul.mubr.msk.f32.gmra.mrb[24].mxu0 %vm14713_vm1, %v1041_v40  ;;  %v2318_v40 = vld [vmem:[%s12032_s27 + $0x84] sm:$0xff] }
 0x11e   : > { %10511 = vmatprep.mubr.msk.f32.mxu0 %vm14713_vm1, %v1042_v41  ;;  %v2319_v41 = vld [vmem:[%s12032_s27 + $0x8c] sm:$0xff] }
 0x121   : > { %10512 = vmatmul.mubr.msk.f32.gmra.mrb[26].mxu0 %vm14713_vm1, %v1043_v42  ;;  %v2320_v42 = vld [vmem:[%s12032_s27 + $0x94] sm:$0xff] }
 0x122   : > { %10514 = vmatprep.mubr.msk.f32.mxu0 %vm14713_vm1, %v1044_v43  ;;  %v2321_v43 = vld [vmem:[%s12032_s27 + $0x9c] sm:$0xff] }
 0x125   : > { %10515 = vmatmul.mubr.msk.f32.gmra.mrb[28].mxu0 %vm14713_vm1, %v1045_v44  ;;  %v2322_v44 = vld [vmem:[%s12032_s27 + $0xa4] sm:$0xff] }
 0x126   : > { %10517 = vmatprep.mubr.msk.f32.mxu0 %vm14713_vm1, %v1046_v45  ;;  %v2323_v45 = vld [vmem:[%s12032_s27 + $0xac] sm:$0xff] }
 0x129   : > { %10518 = vmatmul.mubr.msk.f32.gmra.mrb[30].mxu0 %vm14713_vm1, %v1047_v46  ;;  %v2324_v46 = vld [vmem:[%s12032_s27 + $0xb4] sm:$0xff] }
 0x12a   : > { %10520 = vmatprep.mubr.msk.f32.mxu0 %vm14713_vm1, %v1048_v47  ;;  %v2325_v47 = vld [vmem:[%s12032_s27 + $0xbc] sm:$0xff] }
 0x12d   : > { %10521 = vmatmul.mubr.msk.f32.gmra.mrb[32].mxu0 %vm14713_vm1, %v1049_v48  ;;  %v2326_v48 = vld [vmem:[%s12032_s27 + $0xc4] sm:$0xff] }
 0x12e   : > { %10523 = vmatprep.mubr.msk.f32.mxu0 %vm14713_vm1, %v1478_v50  ;;  %v2328_v50 = vld [vmem:[%s12032_s27 + $0xd4] sm:$0xff] }
 0x131   : > { %10524 = vmatmul.mubr.msk.f32.gmra.mrb[34].mxu0 %vm14713_vm1, %v1479_v51  ;;  %v2329_v51 = vld [vmem:[%s12032_s27 + $0xdc] sm:$0xff] }
 0x132   : > { %10528 = vmatprep.mubr.msk.f32.mxu0 %vm14713_vm1, %v1874_v52  ;;  %v2330_v52 = vld [vmem:[%s12032_s27 + $0xe4] sm:$0xff] }
 0x135   : > { %10529 = vmatmul.mubr.msk.f32.vlgmr.msra.gmra.mrb[0].mxu0 %vm14713_vm1, %v1875_v53  ;;  %v2331_v53 = vld [vmem:[%s12032_s27 + $0xec] sm:$0xff] }
 0x136   : > { %10583 = vmatpush3.msk.msra.mxu0 %vm14712_vm0, %v9139_v49  ;;  %10531 = vmatprep.mubr.msk.f32.mxu0 %vm14713_vm1, %v1876_v54  ;;  %v2327_v49 = vld [vmem:[%s12032_s27 + $0xcc] sm:$0xff]  ;;  %v2332_v54 = vld [vmem:[%s12032_s27 + $0xf4] sm:$0xff] }
 0x137   : > { %10638 = vmatprep.subr.msk.mxu0 %vm14712_vm0, %v12363_v55 }
 0x139   : > { %10532 = vmatmul.mubr.msk.f32.gmra.mrb[2].mxu0 %vm14713_vm1, %v1877_v56  ;;  %v2334_v56 = vld [vmem:[%s12032_s27 + $0x104] sm:$0xff] }
 0x13a   : > { %10534 = vmatprep.mubr.msk.f32.mxu0 %vm14713_vm1, %v1878_v57  ;;  %v2335_v57 = vld [vmem:[%s12032_s27 + $0x10c] sm:$0xff] }
 0x13d   : > { %10535 = vmatmul.mubr.msk.f32.gmra.mrb[4].mxu0 %vm14713_vm1, %v1879_v58  ;;  %v2336_v58 = vld [vmem:[%s12032_s27 + $0x114] sm:$0xff] }
 0x13e   : > { %10537 = vmatprep.mubr.msk.f32.mxu0 %vm14713_vm1, %v1880_v59  ;;  %v2337_v59 = vld [vmem:[%s12032_s27 + $0x11c] sm:$0xff] }
 0x141   : > { %10538 = vmatmul.mubr.msk.f32.gmra.mrb[6].mxu0 %vm14713_vm1, %v1881_v60  ;;  %v2338_v60 = vld [vmem:[%s12032_s27 + $0x124] sm:$0xff] }
 0x142   : > { %10540 = vmatprep.mubr.msk.f32.mxu0 %vm14713_vm1, %v1882_v61  ;;  %v2339_v61 = vld [vmem:[%s12032_s27 + $0x12c] sm:$0xff] }
 0x145   : > { %10541 = vmatmul.mubr.msk.f32.gmra.mrb[8].mxu0 %vm14713_vm1, %v1883_v62  ;;  %v9253_v62 = vld [vmem:[%s14707_s1 + $0x20] sm:$0xf] }
 0x146   : > { %10543 = vmatprep.mubr.msk.f32.mxu0 %vm14713_vm1, %v1884_v63  ;;  %v2768_v63 = vld [vmem:[%s12032_s27 + $0x134] sm:$0xff] }
 0x149   : > { %10544 = vmatmul.mubr.msk.f32.gmra.mrb[10].mxu0 %vm14713_vm1, %v1885_v0  ;;  %v2769_v0 = vld [vmem:[%s12032_s27 + $0x13c] sm:$0xff] }
 0x14a   : > { %10546 = vmatprep.mubr.msk.f32.mxu0 %vm14713_vm1, %v1886_v1  ;;  %v3164_v1 = vld [vmem:[%s12032_s27 + $0x25] sm:$0xff] }
 0x14d   : > { %10547 = vmatmul.mubr.msk.f32.gmra.mrb[12].mxu0 %vm14713_vm1, %v1887_v2  ;;  %v3165_v2 = vld [vmem:[%s12032_s27 + $0x2d] sm:$0xff] }
 0x14e   : > { %10549 = vmatprep.mubr.msk.f32.mxu0 %vm14713_vm1, %v1888_v3  ;;  %v3166_v3 = vld [vmem:[%s12032_s27 + $0x35] sm:$0xff] }
 0x151   : > { %10550 = vmatmul.mubr.msk.f32.gmra.mrb[14].mxu0 %vm14713_vm1, %v1889_v4  ;;  %v3167_v4 = vld [vmem:[%s12032_s27 + $0x3d] sm:$0xff] }
 0x152   : > { %10552 = vmatprep.mubr.msk.f32.mxu0 %vm14713_vm1, %v1890_v5  ;;  %v3168_v5 = vld [vmem:[%s12032_s27 + $0x45] sm:$0xff] }
 0x155   : > { %10553 = vmatmul.mubr.msk.f32.gmra.mrb[16].mxu0 %vm14713_vm1, %v1891_v6  ;;  %v3169_v6 = vld [vmem:[%s12032_s27 + $0x4d] sm:$0xff] }
 0x156   : > { %10555 = vmatprep.mubr.msk.f32.mxu0 %vm14713_vm1, %v1892_v7  ;;  %v3170_v7 = vld [vmem:[%s12032_s27 + $0x55] sm:$0xff] }
 0x159   : > { %10556 = vmatmul.mubr.msk.f32.gmra.mrb[18].mxu0 %vm14713_vm1, %v1893_v8  ;;  %v3171_v8 = vld [vmem:[%s12032_s27 + $0x5d] sm:$0xff] }
 0x15a   : > { %10558 = vmatprep.mubr.msk.f32.mxu0 %vm14713_vm1, %v1894_v9  ;;  %v3172_v9 = vld [vmem:[%s12032_s27 + $0x65] sm:$0xff] }
 0x15d   : > { %10559 = vmatmul.mubr.msk.f32.gmra.mrb[20].mxu0 %vm14713_vm1, %v1895_v10  ;;  %v3173_v10 = vld [vmem:[%s12032_s27 + $0x6d] sm:$0xff] }
 0x15e   : > { %10561 = vmatprep.mubr.msk.f32.mxu0 %vm14713_vm1, %v1896_v11  ;;  %v3174_v11 = vld [vmem:[%s12032_s27 + $0x75] sm:$0xff] }
 0x161   : > { %10562 = vmatmul.mubr.msk.f32.gmra.mrb[22].mxu0 %vm14713_vm1, %v1897_v12  ;;  %v3175_v12 = vld [vmem:[%s12032_s27 + $0x7d] sm:$0xff] }
 0x162   : > { %10564 = vmatprep.mubr.msk.f32.mxu0 %vm14713_vm1, %v1898_v13  ;;  %v3176_v13 = vld [vmem:[%s12032_s27 + $0x85] sm:$0xff] }
 0x165   : > { %10565 = vmatmul.mubr.msk.f32.gmra.mrb[24].mxu0 %vm14713_vm1, %v1899_v14  ;;  %v3177_v14 = vld [vmem:[%s12032_s27 + $0x8d] sm:$0xff] }
 0x166   : > { %10567 = vmatprep.mubr.msk.f32.mxu0 %vm14713_vm1, %v1900_v15  ;;  %v3178_v15 = vld [vmem:[%s12032_s27 + $0x95] sm:$0xff] }
 0x169   : > { %10568 = vmatmul.mubr.msk.f32.gmra.mrb[26].mxu0 %vm14713_vm1, %v1901_v16  ;;  %v3179_v16 = vld [vmem:[%s12032_s27 + $0x9d] sm:$0xff] }
 0x16a   : > { %10570 = vmatprep.mubr.msk.f32.mxu0 %vm14713_vm1, %v1902_v17  ;;  %v3180_v17 = vld [vmem:[%s12032_s27 + $0xa5] sm:$0xff] }
 0x16d   : > { %10571 = vmatmul.mubr.msk.f32.gmra.mrb[28].mxu0 %vm14713_vm1, %v1903_v18  ;;  %v3181_v18 = vld [vmem:[%s12032_s27 + $0xad] sm:$0xff] }
 0x16e   : > { %10573 = vmatprep.mubr.msk.f32.mxu0 %vm14713_vm1, %v1904_v19  ;;  %v3182_v19 = vld [vmem:[%s12032_s27 + $0xb5] sm:$0xff] }
 0x171   : > { %10574 = vmatmul.mubr.msk.f32.gmra.mrb[30].mxu0 %vm14713_vm1, %v1905_v20  ;;  %v3183_v20 = vld [vmem:[%s12032_s27 + $0xbd] sm:$0xff] }
 0x172   : > { %10576 = vmatprep.mubr.msk.f32.mxu0 %vm14713_vm1, %v1906_v21  ;;  %v3184_v21 = vld [vmem:[%s12032_s27 + $0xc5] sm:$0xff] }
 0x175   : > { %10577 = vmatmul.mubr.msk.f32.gmra.mrb[32].mxu0 %vm14713_vm1, %v1907_v22  ;;  %v3185_v22 = vld [vmem:[%s12032_s27 + $0xcd] sm:$0xff] }
 0x176   : > { %10579 = vmatprep.mubr.msk.f32.mxu0 %vm14713_vm1, %v1908_v23  ;;  %v3186_v23 = vld [vmem:[%s12032_s27 + $0xd5] sm:$0xff] }
 0x179   : > { %10580 = vmatmul.mubr.msk.f32.gmra.mrb[34].mxu0 %vm14713_vm1, %v1909_v24  ;;  %v3187_v24 = vld [vmem:[%s12032_s27 + $0xdd] sm:$0xff] }
 0x17a   : > { %10584 = vmatprep.mubr.msk.f32.mxu0 %vm14713_vm1, %v2304_v25  ;;  %v3188_v25 = vld [vmem:[%s12032_s27 + $0xe5] sm:$0xff] }
 0x17d   : > { %10585 = vmatmul.mubr.msk.f32.vlgmr.msra.gmra.mrb[0].mxu0 %vm14713_vm1, %v2305_v26  ;;  %v3189_v26 = vld [vmem:[%s12032_s27 + $0xed] sm:$0xff] }
 0x17e   : > { %10639 = vmatpush3.msk.msra.mxu0 %vm14712_vm0, %v12363_v55  ;;  %10587 = vmatprep.mubr.msk.f32.mxu0 %vm14713_vm1, %v12440_v27  ;;  %v2333_v55 = vld [vmem:[%s12032_s27 + $0xfc] sm:$0xff] }
 0x17f   : > { %10694 = vmatprep.subr.msk.mxu0 %vm14712_vm0, %v12445_v28 }
 0x181   : > { %10588 = vmatmul.mubr.msk.f32.gmra.mrb[2].mxu0 %vm14713_vm1, %v12453_v29 }
 0x182   : > { %10590 = vmatprep.mubr.msk.f32.mxu0 %vm14713_vm1, %v12456_v30 }
 0x185   : > { %10591 = vmatmul.mubr.msk.f32.gmra.mrb[4].mxu0 %vm14713_vm1, %v12465_v31 }
 0x186   : > { %10593 = vmatprep.mubr.msk.f32.mxu0 %vm14713_vm1, %v12468_v32 }
 0x189   : > { %10594 = vmatmul.mubr.msk.f32.gmra.mrb[6].mxu0 %vm14713_vm1, %v12475_v33 }
 0x18a   : > { %10596 = vmatprep.mubr.msk.f32.mxu0 %vm14713_vm1, %v12478_v34 }
 0x18d   : > { %10597 = vmatmul.mubr.msk.f32.gmra.mrb[8].mxu0 %vm14713_vm1, %v12485_v35 }
 0x18e   : > { %10599 = vmatprep.mubr.msk.f32.mxu0 %vm14713_vm1, %v12488_v36 }
 0x191   : > { %10600 = vmatmul.mubr.msk.f32.gmra.mrb[10].mxu0 %vm14713_vm1, %v2315_v37 }
 0x192   : > { %10602 = vmatprep.mubr.msk.f32.mxu0 %vm14713_vm1, %v2316_v38 }
 0x195   : > { %10603 = vmatmul.mubr.msk.f32.gmra.mrb[12].mxu0 %vm14713_vm1, %v2317_v39 }
 0x196   : > { %10605 = vmatprep.mubr.msk.f32.mxu0 %vm14713_vm1, %v2318_v40 }
 0x199   : > { %10606 = vmatmul.mubr.msk.f32.gmra.mrb[14].mxu0 %vm14713_vm1, %v2319_v41 }
 0x19a   : > { %10608 = vmatprep.mubr.msk.f32.mxu0 %vm14713_vm1, %v2320_v42 }
 0x19d   : > { %10609 = vmatmul.mubr.msk.f32.gmra.mrb[16].mxu0 %vm14713_vm1, %v2321_v43 }
 0x19e   : > { %10611 = vmatprep.mubr.msk.f32.mxu0 %vm14713_vm1, %v2322_v44 }
 0x1a1   : > { %10612 = vmatmul.mubr.msk.f32.gmra.mrb[18].mxu0 %vm14713_vm1, %v2323_v45 }
 0x1a2   : > { %10614 = vmatprep.mubr.msk.f32.mxu0 %vm14713_vm1, %v2324_v46 }
 0x1a5   : > { %10615 = vmatmul.mubr.msk.f32.gmra.mrb[20].mxu0 %vm14713_vm1, %v2325_v47 }
 0x1a6   : > { %10617 = vmatprep.mubr.msk.f32.mxu0 %vm14713_vm1, %v2326_v48 }
 0x1a9   : > { %10618 = vmatmul.mubr.msk.f32.gmra.mrb[22].mxu0 %vm14713_vm1, %v2327_v49 }
 0x1aa   : > { %10620 = vmatprep.mubr.msk.f32.mxu0 %vm14713_vm1, %v2328_v50 }
 0x1ad   : > { %10621 = vmatmul.mubr.msk.f32.gmra.mrb[24].mxu0 %vm14713_vm1, %v2329_v51 }
 0x1ae   : > { %10623 = vmatprep.mubr.msk.f32.mxu0 %vm14713_vm1, %v2330_v52 }
 0x1b1   : > { %10624 = vmatmul.mubr.msk.f32.gmra.mrb[26].mxu0 %vm14713_vm1, %v2331_v53 }
 0x1b2   : > { %10626 = vmatprep.mubr.msk.f32.mxu0 %vm14713_vm1, %v2332_v54 }
 0x1b5   : > { %10627 = vmatmul.mubr.msk.f32.gmra.mrb[28].mxu0 %vm14713_vm1, %v2333_v55 }
 0x1b6   : > { %10629 = vmatprep.mubr.msk.f32.mxu0 %vm14713_vm1, %v2334_v56 }
 0x1b9   : > { %10630 = vmatmul.mubr.msk.f32.gmra.mrb[30].mxu0 %vm14713_vm1, %v2335_v57 }
 0x1ba   : > { %10632 = vmatprep.mubr.msk.f32.mxu0 %vm14713_vm1, %v2336_v58 }
 0x1bd   : > { %10633 = vmatmul.mubr.msk.f32.gmra.mrb[32].mxu0 %vm14713_vm1, %v2337_v59 }
 0x1be   : > { %10635 = vmatprep.mubr.msk.f32.mxu0 %vm14713_vm1, %v2338_v60 }
 0x1c1   : > { %10636 = vmatmul.mubr.msk.f32.gmra.mrb[34].mxu0 %vm14713_vm1, %v2339_v61 }
 0x1c2   : > { %10640 = vmatprep.mubr.msk.f32.mxu0 %vm14713_vm1, %v12440_v27  ;;  %v3190_v27 = vld [vmem:[%s12032_s27 + $0xf5] sm:$0xff] }
 0x1c5   : > { %10641 = vmatmul.mubr.msk.f32.vlgmr.msra.gmra.mrb[0].mxu0 %vm14713_vm1, %v12453_v29  ;;  %v3192_v29 = vld [vmem:[%s12032_s27 + $0x105] sm:$0xff] }
 0x1c6   : > { %10695 = vmatpush3.msk.msra.mxu0 %vm14712_vm0, %v12445_v28  ;;  %10643 = vmatprep.mubr.msk.f32.mxu0 %vm14713_vm1, %v12456_v30  ;;  %v3191_v28 = vld [vmem:[%s12032_s27 + $0xfd] sm:$0xff]  ;;  %v3193_v30 = vld [vmem:[%s12032_s27 + $0x10d] sm:$0xff] }
 0x1c7   : > { %10750 = vmatprep.subr.msk.mxu0 %vm14712_vm0, %v9253_v62 }
 0x1c9   : > { %10644 = vmatmul.mubr.msk.f32.gmra.mrb[2].mxu0 %vm14713_vm1, %v12465_v31  ;;  %v3194_v31 = vld [vmem:[%s12032_s27 + $0x115] sm:$0xff] }
 0x1ca   : > { %10646 = vmatprep.mubr.msk.f32.mxu0 %vm14713_vm1, %v12468_v32  ;;  %v3195_v32 = vld [vmem:[%s12032_s27 + $0x11d] sm:$0xff] }
 0x1cd   : > { %10647 = vmatmul.mubr.msk.f32.gmra.mrb[4].mxu0 %vm14713_vm1, %v12475_v33  ;;  %v3196_v33 = vld [vmem:[%s12032_s27 + $0x125] sm:$0xff] }
 0x1ce   : > { %10649 = vmatprep.mubr.msk.f32.mxu0 %vm14713_vm1, %v12478_v34  ;;  %v3197_v34 = vld [vmem:[%s12032_s27 + $0x12d] sm:$0xff] }
 0x1d1   : > { %10650 = vmatmul.mubr.msk.f32.gmra.mrb[6].mxu0 %vm14713_vm1, %v12485_v35  ;;  %v3198_v35 = vld [vmem:[%s12032_s27 + $0x135] sm:$0xff] }
 0x1d2   : > { %10652 = vmatprep.mubr.msk.f32.mxu0 %vm14713_vm1, %v12488_v36  ;;  %v3199_v36 = vld [vmem:[%s12032_s27 + $0x13d] sm:$0xff] }
 0x1d5   : > { %10653 = vmatmul.mubr.msk.f32.gmra.mrb[8].mxu0 %vm14713_vm1, %v2315_v37  ;;  %v3594_v37 = vld [vmem:[%s12032_s27 + $0x26] sm:$0xff] }
 0x1d6   : > { %10655 = vmatprep.mubr.msk.f32.mxu0 %vm14713_vm1, %v2316_v38  ;;  %v3595_v38 = vld [vmem:[%s12032_s27 + $0x2e] sm:$0xff] }
 0x1d9   : > { %10656 = vmatmul.mubr.msk.f32.gmra.mrb[10].mxu0 %vm14713_vm1, %v2317_v39  ;;  %v3596_v39 = vld [vmem:[%s12032_s27 + $0x36] sm:$0xff] }
 0x1da   : > { %10658 = vmatprep.mubr.msk.f32.mxu0 %vm14713_vm1, %v2318_v40  ;;  %v3597_v40 = vld [vmem:[%s12032_s27 + $0x3e] sm:$0xff] }
 0x1dd   : > { %10659 = vmatmul.mubr.msk.f32.gmra.mrb[12].mxu0 %vm14713_vm1, %v2319_v41  ;;  %v3598_v41 = vld [vmem:[%s12032_s27 + $0x46] sm:$0xff] }
 0x1de   : > { %10661 = vmatprep.mubr.msk.f32.mxu0 %vm14713_vm1, %v2320_v42  ;;  %v3599_v42 = vld [vmem:[%s12032_s27 + $0x4e] sm:$0xff] }
 0x1e1   : > { %10662 = vmatmul.mubr.msk.f32.gmra.mrb[14].mxu0 %vm14713_vm1, %v2321_v43  ;;  %v3600_v43 = vld [vmem:[%s12032_s27 + $0x56] sm:$0xff] }
 0x1e2   : > { %10664 = vmatprep.mubr.msk.f32.mxu0 %vm14713_vm1, %v2322_v44  ;;  %v3601_v44 = vld [vmem:[%s12032_s27 + $0x5e] sm:$0xff] }
 0x1e5   : > { %10665 = vmatmul.mubr.msk.f32.gmra.mrb[16].mxu0 %vm14713_vm1, %v2323_v45  ;;  %v3602_v45 = vld [vmem:[%s12032_s27 + $0x66] sm:$0xff] }
 0x1e6   : > { %10667 = vmatprep.mubr.msk.f32.mxu0 %vm14713_vm1, %v2324_v46  ;;  %v3603_v46 = vld [vmem:[%s12032_s27 + $0x6e] sm:$0xff] }
 0x1e9   : > { %10668 = vmatmul.mubr.msk.f32.gmra.mrb[18].mxu0 %vm14713_vm1, %v2325_v47  ;;  %v3604_v47 = vld [vmem:[%s12032_s27 + $0x76] sm:$0xff] }
 0x1ea   : > { %10670 = vmatprep.mubr.msk.f32.mxu0 %vm14713_vm1, %v2326_v48  ;;  %v3605_v48 = vld [vmem:[%s12032_s27 + $0x7e] sm:$0xff] }
 0x1ed   : > { %10671 = vmatmul.mubr.msk.f32.gmra.mrb[20].mxu0 %vm14713_vm1, %v2327_v49  ;;  %v3606_v49 = vld [vmem:[%s12032_s27 + $0x86] sm:$0xff] }
 0x1ee   : > { %10673 = vmatprep.mubr.msk.f32.mxu0 %vm14713_vm1, %v2328_v50  ;;  %v3607_v50 = vld [vmem:[%s12032_s27 + $0x8e] sm:$0xff] }
 0x1f1   : > { %10674 = vmatmul.mubr.msk.f32.gmra.mrb[22].mxu0 %vm14713_vm1, %v2329_v51  ;;  %v3608_v51 = vld [vmem:[%s12032_s27 + $0x96] sm:$0xff] }
 0x1f2   : > { %10676 = vmatprep.mubr.msk.f32.mxu0 %vm14713_vm1, %v2330_v52  ;;  %v3609_v52 = vld [vmem:[%s12032_s27 + $0x9e] sm:$0xff] }
 0x1f5   : > { %10677 = vmatmul.mubr.msk.f32.gmra.mrb[24].mxu0 %vm14713_vm1, %v2331_v53  ;;  %v3610_v53 = vld [vmem:[%s12032_s27 + $0xa6] sm:$0xff] }
 0x1f6   : > { %10679 = vmatprep.mubr.msk.f32.mxu0 %vm14713_vm1, %v2332_v54  ;;  %v3611_v54 = vld [vmem:[%s12032_s27 + $0xae] sm:$0xff] }
 0x1f9   : > { %10680 = vmatmul.mubr.msk.f32.gmra.mrb[26].mxu0 %vm14713_vm1, %v2333_v55  ;;  %v3612_v55 = vld [vmem:[%s12032_s27 + $0xb6] sm:$0xff] }
 0x1fa   : > { %10682 = vmatprep.mubr.msk.f32.mxu0 %vm14713_vm1, %v2334_v56  ;;  %v3613_v56 = vld [vmem:[%s12032_s27 + $0xbe] sm:$0xff] }
 0x1fd   : > { %10683 = vmatmul.mubr.msk.f32.gmra.mrb[28].mxu0 %vm14713_vm1, %v2335_v57  ;;  %v3614_v57 = vld [vmem:[%s12032_s27 + $0xc6] sm:$0xff] }
 0x1fe   : > { %10685 = vmatprep.mubr.msk.f32.mxu0 %vm14713_vm1, %v2336_v58  ;;  %v3615_v58 = vld [vmem:[%s12032_s27 + $0xce] sm:$0xff] }
 0x201   : > { %10686 = vmatmul.mubr.msk.f32.gmra.mrb[30].mxu0 %vm14713_vm1, %v2337_v59  ;;  %v3616_v59 = vld [vmem:[%s12032_s27 + $0xd6] sm:$0xff] }
 0x202   : > { %10688 = vmatprep.mubr.msk.f32.mxu0 %vm14713_vm1, %v2338_v60  ;;  %v3617_v60 = vld [vmem:[%s12032_s27 + $0xde] sm:$0xff] }
 0x205   : > { %10689 = vmatmul.mubr.msk.f32.gmra.mrb[32].mxu0 %vm14713_vm1, %v2339_v61  ;;  %v3618_v61 = vld [vmem:[%s12032_s27 + $0xe6] sm:$0xff] }
 0x206   : > { %10691 = vmatprep.mubr.msk.f32.mxu0 %vm14713_vm1, %v2768_v63  ;;  %v3620_v63 = vld [vmem:[%s12032_s27 + $0xf6] sm:$0xff] }
 0x209   : > { %10692 = vmatmul.mubr.msk.f32.gmra.mrb[34].mxu0 %vm14713_vm1, %v2769_v0  ;;  %v3621_v0 = vld [vmem:[%s12032_s27 + $0xfe] sm:$0xff] }
 0x20a   : > { %10696 = vmatprep.mubr.msk.f32.mxu0 %vm14713_vm1, %v3164_v1  ;;  %v3622_v1 = vld [vmem:[%s12032_s27 + $0x106] sm:$0xff] }
 0x20d   : > { %10697 = vmatmul.mubr.msk.f32.vlgmr.msra.gmra.mrb[0].mxu0 %vm14713_vm1, %v3165_v2  ;;  %v3623_v2 = vld [vmem:[%s12032_s27 + $0x10e] sm:$0xff] }
 0x20e   : > { %10751 = vmatpush3.msk.msra.mxu0 %vm14712_vm0, %v9253_v62  ;;  %10699 = vmatprep.mubr.msk.f32.mxu0 %vm14713_vm1, %v3166_v3  ;;  %v3619_v62 = vld [vmem:[%s12032_s27 + $0xee] sm:$0xff]  ;;  %v3624_v3 = vld [vmem:[%s12032_s27 + $0x116] sm:$0xff] }
 0x211   : > { %10700 = vmatmul.mubr.msk.f32.gmra.mrb[2].mxu0 %vm14713_vm1, %v3167_v4  ;;  %v3625_v4 = vld [vmem:[%s12032_s27 + $0x11e] sm:$0xff] }
 0x212   : > { %10702 = vmatprep.mubr.msk.f32.mxu0 %vm14713_vm1, %v3168_v5  ;;  %v3626_v5 = vld [vmem:[%s12032_s27 + $0x126] sm:$0xff] }
 0x215   : > { %10703 = vmatmul.mubr.msk.f32.gmra.mrb[4].mxu0 %vm14713_vm1, %v3169_v6  ;;  %v3627_v6 = vld [vmem:[%s12032_s27 + $0x12e] sm:$0xff] }
 0x216   : > { %10705 = vmatprep.mubr.msk.f32.mxu0 %vm14713_vm1, %v3170_v7  ;;  %v3628_v7 = vld [vmem:[%s12032_s27 + $0x136] sm:$0xff] }
 0x219   : > { %10706 = vmatmul.mubr.msk.f32.gmra.mrb[6].mxu0 %vm14713_vm1, %v3171_v8  ;;  %v3629_v8 = vld [vmem:[%s12032_s27 + $0x13e] sm:$0xff] }
 0x21a   : > { %10708 = vmatprep.mubr.msk.f32.mxu0 %vm14713_vm1, %v3172_v9  ;;  %v14717_v9 = vmov 0.0  }
 0x21b   : > { %4860 = vst.msk [vmem:[#allocation2] sm:$0xff] %vm14713_vm1, %v14717_v9  ;;  %4861 = vst.msk [vmem:[#allocation2 + $0x8] sm:$0xff] %vm14713_vm1, %v14717_v9 }
 0x21c   : > { %4864 = vst.msk [vmem:[#allocation2 + $0x133] sm:$0xff] %vm14713_vm1, %v14717_v9  ;;  %4865 = vst.msk [vmem:[#allocation2 + $0x13b] sm:$0xff] %vm14713_vm1, %v14717_v9 }
 0x21d   : > { %10709 = vmatmul.mubr.msk.f32.gmra.mrb[8].mxu0 %vm14713_vm1, %v3173_v10  ;;  %4863 = vst.msk [vmem:[#allocation2 + $0x10] sm:$0x7] %vm4862_vm2, %v14717_v9  ;;  %v9292_v10 = vld [vmem:[%s14709_s3 + $0x4] sm:$0xf] }
 0x21e   : > { %10711 = vmatprep.mubr.msk.f32.mxu0 %vm14713_vm1, %v3174_v11  ;;  %10806 = vmatprep.subr.msk.mxu1 %vm14712_vm0, %v9292_v10 }
 0x21f   : > { %10807 = vmatpush3.msk.msra.mxu1 %vm14712_vm0, %v9292_v10 }
 0x221   : > { %10712 = vmatmul.mubr.msk.f32.gmra.mrb[10].mxu0 %vm14713_vm1, %v3175_v12  ;;  %v4940_v12 = vld [vmem:[%s14709_s3] sm:$0xf] }
 0x222   : > { %10714 = vmatprep.mubr.msk.f32.mxu0 %vm14713_vm1, %v3176_v13  ;;  %v4941_v11 = vld [vmem:[#allocation2 + $0x1] sm:$0xff]  ;;  %10862 = vmatprep.subr.msk.mxu1 %vm14712_vm0, %v4940_v12 }
 0x223   : > { %10808 = vmatprep.mubr.msk.f32.mxu1 %vm14713_vm1, %v4941_v11 }
 0x224   : > { %v4942_v13 = vld [vmem:[#allocation2 + $0x9] sm:$0xff] }
 0x225   : > { %10715 = vmatmul.mubr.msk.f32.gmra.mrb[12].mxu0 %vm14713_vm1, %v3177_v14  ;;  %10809 = vmatmul.mubr.msk.f32.vlgmr.msra.gmra.mrb[0].mxu1 %vm14713_vm1, %v4942_v13  ;;  %v4024_v14 = vlaneseq }
 0x226   : > { %10717 = vmatprep.mubr.msk.f32.mxu0 %vm14713_vm1, %v3178_v15  ;;  %10863 = vmatpush3.msk.msra.mxu1 %vm14712_vm0, %v4940_v12 }
 0x227   : > { %v12763_v15 = vshrl.u32 %v4024_v14, 7 }
 0x229   : > { %10718 = vmatmul.mubr.msk.f32.gmra.mrb[14].mxu0 %vm14713_vm1, %v3179_v16  ;;  %v4026_v16 = vadd.s32 8, %v12763_v15  ;;  %v12894_v13 = vadd.s32 104, %v12763_v15  ;;  %v13156_v9 = vadd.s32 184, %v12763_v15 }
 0x22a   : > { %10720 = vmatprep.mubr.msk.f32.mxu0 %vm14713_vm1, %v3180_v17  ;;  %v4028_v17 = vadd.s32 24, %v12763_v15 }
 0x22d   : > { %10721 = vmatmul.mubr.msk.f32.gmra.mrb[16].mxu0 %vm14713_vm1, %v3181_v18  ;;  %v4027_v18 = vadd.s32 16, %v12763_v15 }
 0x22e   : > { %10723 = vmatprep.mubr.msk.f32.mxu0 %vm14713_vm1, %v3182_v19 }
 0x231   : > { %10724 = vmatmul.mubr.msk.f32.gmra.mrb[18].mxu0 %vm14713_vm1, %v3183_v20  ;;  %v12768_v19 = vmul.u32.u64.low 3817748708, %v4026_v16  ;;  %v12769_v20 = vmul.u32.u64.high 3817748708, %v4026_v16, %v12768_v19 }
 0x232   : > { %10726 = vmatprep.mubr.msk.f32.mxu0 %vm14713_vm1, %v3184_v21 }
 0x235   : > { %10727 = vmatmul.mubr.msk.f32.gmra.mrb[20].mxu0 %vm14713_vm1, %v3185_v22  ;;  %v12772_v21 = vmul.u32.u64.low 3817748708, %v12763_v15  ;;  %v12773_v22 = vmul.u32.u64.high 3817748708, %v12763_v15, %v12772_v21 }
 0x236   : > { %10729 = vmatprep.mubr.msk.f32.mxu0 %vm14713_vm1, %v3186_v23  ;;  %v12914_v21 = vadd.s32 120, %v12763_v15 }
 0x239   : > { %10730 = vmatmul.mubr.msk.f32.gmra.mrb[22].mxu0 %vm14713_vm1, %v3187_v24  ;;  %v12775_v23 = vmul.u32.u64.low 3817748708, %v4028_v17  ;;  %v12776_v24 = vmul.u32.u64.high 3817748708, %v4028_v17, %v12775_v23 }
 0x23a   : > { %10732 = vmatprep.mubr.msk.f32.mxu0 %vm14713_vm1, %v3188_v25  ;;  %v13857_v23 = vadd.s32 272, %v12763_v15 }
 0x23d   : > { %10733 = vmatmul.mubr.msk.f32.gmra.mrb[24].mxu0 %vm14713_vm1, %v3189_v26  ;;  %v12778_v25 = vmul.u32.u64.low 3817748708, %v4027_v18  ;;  %v12779_v26 = vmul.u32.u64.high 3817748708, %v4027_v18, %v12778_v25 }
 0x23e   : > { %10735 = vmatprep.mubr.msk.f32.mxu0 %vm14713_vm1, %v3190_v27  ;;  %v4078_v27 = vshrl.u32 %v12769_v20, 4 }
 0x241   : > { %10736 = vmatmul.mubr.msk.f32.gmra.mrb[26].mxu0 %vm14713_vm1, %v3191_v28  ;;  %v4030_v28 = vadd.s32 40, %v12763_v15 }
 0x242   : > { %10738 = vmatprep.mubr.msk.f32.mxu0 %vm14713_vm1, %v3192_v29  ;;  %v4067_v29 = vshrl.u32 %v12773_v22, 4 }
 0x245   : > { %10739 = vmatmul.mubr.msk.f32.gmra.mrb[28].mxu0 %vm14713_vm1, %v3193_v30  ;;  %v4100_v30 = vshrl.u32 %v12776_v24, 4 }
 0x246   : > { %10741 = vmatprep.mubr.msk.f32.mxu0 %vm14713_vm1, %v3194_v31  ;;  %v12786_v31 = vadd.s32 32, %v12763_v15 }
 0x249   : > { %10742 = vmatmul.mubr.msk.f32.gmra.mrb[30].mxu0 %vm14713_vm1, %v3195_v32  ;;  %v4089_v32 = vshrl.u32 %v12779_v26, 4 }
 0x24a   : > { %10744 = vmatprep.mubr.msk.f32.mxu0 %vm14713_vm1, %v3196_v33  ;;  %v12790_v33 = vadd.s32 56, %v12763_v15 }
 0x24d   : > { %10745 = vmatmul.mubr.msk.f32.gmra.mrb[32].mxu0 %vm14713_vm1, %v3197_v34  ;;  %v4079_v34 = vmul.u32 18, %v4078_v27 }
 0x24e   : > { %10747 = vmatprep.mubr.msk.f32.mxu0 %vm14713_vm1, %v3198_v35 }
 0x251   : > { %10748 = vmatmul.mubr.msk.f32.gmra.mrb[34].mxu0 %vm14713_vm1, %v3199_v36  ;;  %v12792_v35 = vmul.u32.u64.low 3817748708, %v4030_v28  ;;  %v12793_v36 = vmul.u32.u64.high 3817748708, %v4030_v28, %v12792_v35 }
 0x252   : > { %10752 = vmatprep.mubr.msk.f32.mxu0 %vm14713_vm1, %v3594_v37  ;;  %v4068_v37 = vmul.u32 18, %v4067_v29 }
 0x255   : > { %10753 = vmatmul.mubr.msk.f32.vlgmr.msra.gmra.mrb[0].mxu0 %vm14713_vm1, %v3595_v38  ;;  %v12796_v38 = vadd.s32 48, %v12763_v15 }
 0x256   : > { %10755 = vmatprep.mubr.msk.f32.mxu0 %vm14713_vm1, %v3596_v39  ;;  %v4101_v39 = vmul.u32 18, %v4100_v30 }
 0x259   : > { %10756 = vmatmul.mubr.msk.f32.gmra.mrb[2].mxu0 %vm14713_vm1, %v3597_v40 }
 0x25a   : > { %10758 = vmatprep.mubr.msk.f32.mxu0 %vm14713_vm1, %v3598_v41  ;;  %v12799_v40 = vmul.u32.u64.low 3817748708, %v12786_v31  ;;  %v12800_v41 = vmul.u32.u64.high 3817748708, %v12786_v31, %v12799_v40 }
 0x25b   : > { %v12968_v40 = vadd.s32 112, %v12763_v15 }
 0x25d   : > { %10759 = vmatmul.mubr.msk.f32.gmra.mrb[4].mxu0 %vm14713_vm1, %v3599_v42  ;;  %v4090_v42 = vmul.u32 18, %v4089_v32 }
 0x25e   : > { %10761 = vmatprep.mubr.msk.f32.mxu0 %vm14713_vm1, %v3600_v43 }
 0x261   : > { %10762 = vmatmul.mubr.msk.f32.gmra.mrb[6].mxu0 %vm14713_vm1, %v3601_v44  ;;  %v12803_v43 = vmul.u32.u64.low 3817748708, %v12790_v33  ;;  %v12804_v44 = vmul.u32.u64.high 3817748708, %v12790_v33, %v12803_v43 }
 0x262   : > { %10764 = vmatprep.mubr.msk.f32.mxu0 %vm14713_vm1, %v3602_v45  ;;  %v9367_v45 = vld [vmem:[%s14709_s3 + $0x8] sm:$0xf]  ;;  %v12975_v43 = vadd.s32 136, %v12763_v15 }
 0x263   : > { %10918 = vmatprep.subr.msk.mxu1 %vm14712_vm0, %v9367_v45 }
 0x265   : > { %10765 = vmatmul.mubr.msk.f32.gmra.mrb[8].mxu0 %vm14713_vm1, %v3603_v46  ;;  %v12809_v46 = vsub.s32 %v4026_v16, %v4079_v34 }
 0x266   : > { %10767 = vmatprep.mubr.msk.f32.mxu0 %vm14713_vm1, %v3604_v47  ;;  %v12813_v47 = vsub.s32 %v12763_v15, %v4068_v37 }
 0x267   : > { %vm4458_vm3 = vcmp.ne.s32.totalorder %v12809_v46, 0  ;;  %vm4494_vm4 = vcmp.lt.s32.totalorder %v12809_v46, 0 }
 0x268   : > { %vm4457_vm5 = vcmp.ne.s32.totalorder %v12813_v47, 0  ;;  %vm4493_vm6 = vcmp.lt.s32.totalorder %v12813_v47, 0  ;;  %vm12857_vm11 = vmand %vm4494_vm4, %vm4458_vm3 }
 0x269   : > { %10768 = vmatmul.mubr.msk.f32.gmra.mrb[10].mxu0 %vm14713_vm1, %v3605_v48  ;;  %vm12873_vm12 = vmand %vm4493_vm6, %vm4457_vm5 }
 0x26a   : > { %10770 = vmatprep.mubr.msk.f32.mxu0 %vm14713_vm1, %v3606_v49  ;;  %v12816_v48 = vmul.u32.u64.low 3817748708, %v12796_v38  ;;  %v12817_v49 = vmul.u32.u64.high 3817748708, %v12796_v38, %v12816_v48 }
 0x26b   : > { %v12980_v48 = vadd.s32 128, %v12763_v15 }
 0x26d   : > { %10771 = vmatmul.mubr.msk.f32.gmra.mrb[12].mxu0 %vm14713_vm1, %v3607_v50  ;;  %v12819_v50 = vsub.s32 %v4028_v17, %v4101_v39  ;;  %v12907_v17 = vadd.s32 96, %v12763_v15 }
 0x26e   : > { %10773 = vmatprep.mubr.msk.f32.mxu0 %vm14713_vm1, %v3608_v51  ;;  %v12821_v51 = vsub.s32 %v4027_v18, %v4090_v42 }
 0x26f   : > { %vm4460_vm7 = vcmp.ne.s32.totalorder %v12819_v50, 0  ;;  %vm4496_vm8 = vcmp.lt.s32.totalorder %v12819_v50, 0 }
 0x270   : > { %vm4459_vm9 = vcmp.ne.s32.totalorder %v12821_v51, 0  ;;  %vm4495_vm10 = vcmp.lt.s32.totalorder %v12821_v51, 0  ;;  %vm12886_vm13 = vmand %vm4496_vm8, %vm4460_vm7  ;;  %v12891_v11 = vadd.s32 18, %v12821_v51 }
 0x271   : > { %10774 = vmatmul.mubr.msk.f32.gmra.mrb[14].mxu0 %vm14713_vm1, %v3609_v52  ;;  %v4122_v52 = vshrl.u32 %v12793_v36, 4  ;;  %vm12900_vm14 = vmand %vm4495_vm10, %vm4459_vm9 }
 0x272   : > { %10776 = vmatprep.mubr.msk.f32.mxu0 %vm14713_vm1, %v3610_v53  ;;  %v12826_v53 = vadd.s32 72, %v12763_v15  ;;  %v14780_v10 = vsel %vm12900_vm14, %v12891_v11, %v12821_v51  ;;  %v13305_v11 = vadd.s32 192, %v12763_v15 }
 0x275   : > { %10777 = vmatmul.mubr.msk.f32.gmra.mrb[16].mxu0 %vm14713_vm1, %v3611_v54  ;;  %v12830_v54 = vadd.s32 18, %v12809_v46 }
 0x276   : > { %10779 = vmatprep.mubr.msk.f32.mxu0 %vm14713_vm1, %v3612_v55  ;;  %v12834_v55 = vadd.s32 64, %v12763_v15 }
 0x277   : > { %v4602_v22 = vsel %vm12857_vm11, %v12830_v54, %v12809_v46 }
 0x279   : > { %10780 = vmatmul.mubr.msk.f32.gmra.mrb[18].mxu0 %vm14713_vm1, %v3613_v56  ;;  %v12838_v56 = vadd.s32 18, %v12813_v47 }
 0x27a   : > { %10782 = vmatprep.mubr.msk.f32.mxu0 %vm14713_vm1, %v3614_v57  ;;  %v4111_v57 = vshrl.u32 %v12800_v41, 4 }
 0x27d   : > { %10783 = vmatmul.mubr.msk.f32.gmra.mrb[20].mxu0 %vm14713_vm1, %v3615_v58  ;;  %v12842_v58 = vadd.s32 88, %v12763_v15 }
 0x27e   : > { %10785 = vmatprep.mubr.msk.f32.mxu0 %vm14713_vm1, %v3616_v59  ;;  %v4144_v59 = vshrl.u32 %v12804_v44, 4 }
 0x280   : > { %v4145_v12 = vmul.u32 18, %v4144_v59  ;;  %v12995_v59 = vadd.s32 152, %v12763_v15 }
 0x281   : > { %10786 = vmatmul.mubr.msk.f32.gmra.mrb[22].mxu0 %vm14713_vm1, %v3617_v60  ;;  %v4123_v60 = vmul.u32 18, %v4122_v52 }
 0x282   : > { %10788 = vmatprep.mubr.msk.f32.mxu0 %vm14713_vm1, %v3618_v61  ;;  %v12936_v27 = vsub.s32 %v12790_v33, %v4145_v12  ;;  %v12953_v33 = vmul.u32.u64.low 3817748708, %v12914_v21  ;;  %v12954_v36 = vmul.u32.u64.high 3817748708, %v12914_v21, %v12953_v33 }
 0x283   : > { %v12904_v16 = vsub.s32 %v4030_v28, %v4123_v60  ;;  %v12939_v28 = vmul.u32.u64.low 3817748708, %v12894_v13  ;;  %v12940_v29 = vmul.u32.u64.high 3817748708, %v12894_v13, %v12939_v28  ;;  %v14741_v60 = vmov 0 }
 0x284   : > { %vm4464_vm5 = vcmp.ne.s32.totalorder %v12936_v27, 0  ;;  %vm4500_vm6 = vcmp.lt.s32.totalorder %v12936_v27, 0  ;;  %v12972_v41 = vadd.s32 18, %v12936_v27 }
 0x285   : > { %10789 = vmatmul.mubr.msk.f32.gmra.mrb[24].mxu0 %vm14713_vm1, %v3619_v62  ;;  %v12850_v61 = vmul.u32.u64.low 3817748708, %v12826_v53  ;;  %v12851_v62 = vmul.u32.u64.high 3817748708, %v12826_v53, %v12850_v61  ;;  %vm4462_vm15 = vcmp.ne.s32.totalorder %v12904_v16, 0  ;;  %vm4498_vm2 = vcmp.lt.s32.totalorder %v12904_v16, 0 }
 0x286   : > { %10791 = vmatprep.mubr.msk.f32.mxu0 %vm14713_vm1, %v3620_v63  ;;  %v12958_v37 = vadd.s32 18, %v12904_v16  ;;  %vm12986_vm8 = vmand %vm4498_vm2, %vm4462_vm15  ;;  %v4210_v61 = vshrl.u32 %v12940_v29, 4  ;;  %v13037_v28 = vmul.u32.u64.low 3817748708, %v12980_v48  ;;  %v13038_v29 = vmul.u32.u64.high 3817748708, %v12980_v48, %v13037_v28 }
 0x287   : > { %v4166_v30 = vshrl.u32 %v12851_v62, 4  ;;  %vm13017_vm15 = vmand %vm4500_vm6, %vm4464_vm5 }
 0x288   : > { %v4211_v33 = vmul.u32 18, %v4210_v61 }
 0x289   : > { %10792 = vmatmul.mubr.msk.f32.gmra.mrb[26].mxu0 %vm14713_vm1, %v3621_v0  ;;  %v4133_v0 = vshrl.u32 %v12817_v49, 4  ;;  %v4167_v42 = vmul.u32 18, %v4166_v30 }
 0x28a   : > { %10794 = vmatprep.mubr.msk.f32.mxu0 %vm14713_vm1, %v3622_v1 }
 0x28b   : > { %v4134_v18 = vmul.u32 18, %v4133_v0  ;;  %v13007_v62 = vmul.u32.u64.low 3817748708, %v12968_v40  ;;  %v13008_v0 = vmul.u32.u64.high 3817748708, %v12968_v40, %v13007_v62 }
 0x28c   : > { %v13081_v62 = vadd.s32 168, %v12763_v15 }
 0x28d   : > { %10795 = vmatmul.mubr.msk.f32.gmra.mrb[28].mxu0 %vm14713_vm1, %v3623_v2  ;;  %v12863_v1 = vmul.u32.u64.low 3817748708, %v12834_v55  ;;  %v12864_v2 = vmul.u32.u64.high 3817748708, %v12834_v55, %v12863_v1  ;;  %v12949_v34 = vsub.s32 %v12796_v38, %v4134_v18  ;;  %v14745_v18 = vmov 0 }
 0x28e   : > { %10797 = vmatprep.mubr.msk.f32.mxu0 %vm14713_vm1, %v3624_v3  ;;  %v12867_v3 = vadd.s32 80, %v12763_v15  ;;  %v13011_v1 = vadd.s32 144, %v12763_v15 }
 0x28f   : > { %v4155_v35 = vshrl.u32 %v12864_v2, 4  ;;  %vm4463_vm7 = vcmp.ne.s32.totalorder %v12949_v34, 0  ;;  %vm4499_vm9 = vcmp.lt.s32.totalorder %v12949_v34, 0  ;;  %v12992_v52 = vadd.s32 18, %v12949_v34 }
 0x290   : > { %v12910_v19 = vmul.u32.u64.low 3817748708, %v12867_v3  ;;  %v12911_v20 = vmul.u32.u64.high 3817748708, %v12867_v3, %v12910_v19  ;;  %v14743_v2 = vmov 0  ;;  %vm13031_vm2 = vmand %vm4499_vm9, %vm4463_vm7 }
 0x291   : > { %10798 = vmatmul.mubr.msk.f32.gmra.mrb[30].mxu0 %vm14713_vm1, %v3625_v4  ;;  %v4156_v44 = vmul.u32 18, %v4155_v35  ;;  %v14744_v2 = vsel %vm13017_vm15, 4294967295, %v14743_v2  ;;  %v14746_v18 = vsel %vm13031_vm2, 4294967295, %v14745_v18 }
 0x292   : > { %10800 = vmatprep.mubr.msk.f32.mxu0 %vm14713_vm1, %v3626_v5  ;;  %v12878_v5 = vadd.s32 18, %v12819_v50  ;;  %v4177_v45 = vshrl.u32 %v12911_v20, 4  ;;  %v4232_v20 = vshrl.u32 %v12954_v36, 4 }
 0x293   : > { %v13045_v30 = vsub.s32 %v12834_v55, %v4156_v44 }
 0x294   : > { %v4178_v19 = vmul.u32 18, %v4177_v45 }
 0x295   : > { %10801 = vmatmul.mubr.msk.f32.gmra.mrb[32].mxu0 %vm14713_vm1, %v3627_v6  ;;  %v4112_v6 = vmul.u32 18, %v4111_v57  ;;  %vm4465_vm5 = vcmp.ne.s32.totalorder %v13045_v30, 0  ;;  %vm4501_vm6 = vcmp.lt.s32.totalorder %v13045_v30, 0 }
 0x296   : > { %10803 = vmatprep.mubr.msk.f32.mxu0 %vm14713_vm1, %v3628_v7  ;;  %v13073_v45 = vsub.s32 %v12867_v3, %v4178_v19  ;;  %v4221_v3 = vshrl.u32 %v13008_v0, 4 }
 0x297   : > { %v12929_v25 = vsub.s32 %v12786_v31, %v4112_v6  ;;  %v12945_v32 = vmul.u32.u64.low 3817748708, %v12907_v17  ;;  %v12946_v31 = vmul.u32.u64.high 3817748708, %v12907_v17, %v12945_v32  ;;  %v13022_v6 = vsub.s32 %v12826_v53, %v4167_v42 }
 0x298   : > { %vm14757_vm15 = vcmp.lt.s32.totalorder %v13073_v45, 0 }
 0x299   : > { %10804 = vmatmul.mubr.msk.f32.gmra.mrb[34].mxu0 %vm14713_vm1, %v3629_v8  ;;  %v12881_v7 = vmul.u32.u64.low 3817748708, %v12842_v58  ;;  %v12882_v8 = vmul.u32.u64.high 3817748708, %v12842_v58, %v12881_v7  ;;  %vm4461_vm3 = vcmp.ne.s32.totalorder %v12929_v25, 0  ;;  %vm4497_vm4 = vcmp.lt.s32.totalorder %v12929_v25, 0  ;;  %vm13125_vm1 = vmand %vm4501_vm6, %vm4465_vm5 }
 0x29a   : > { %v12964_v38 = vadd.s32 18, %v12929_v25  ;;  %vm13001_vm10 = vmand %vm4497_vm4, %vm4461_vm3  ;;  %v4199_v7 = vshrl.u32 %v12946_v31, 4  ;;  %v13048_v32 = vmul.u32.u64.low 3817748708, %v12995_v59  ;;  %v13049_v31 = vmul.u32.u64.high 3817748708, %v12995_v59, %v13048_v32 }
 0x29b   : > { %v4188_v39 = vshrl.u32 %v12882_v8, 4  ;;  %v14742_v60 = vsel %vm13001_vm10, 4294967295, %v14741_v60  ;;  %v13026_v8 = vmul.u32.u64.low 3817748708, %v12975_v43  ;;  %v13027_v12 = vmul.u32.u64.high 3817748708, %v12975_v43, %v13026_v8 }
 0x29c   : > { %v4200_v44 = vmul.u32 18, %v4199_v7  ;;  %vm4466_vm3 = vcmp.ne.s32.totalorder %v13022_v6, 0  ;;  %vm4502_vm4 = vcmp.lt.s32.totalorder %v13022_v6, 0  ;;  %v13076_v61 = vadd.s32 18, %v13022_v6 }
 0x29d   : > { %v4189_v57 = vmul.u32 18, %v4188_v39  ;;  %v13055_v36 = vmul.u32.u64.low 3817748708, %v13011_v1  ;;  %v13056_v39 = vmul.u32.u64.high 3817748708, %v13011_v1, %v13055_v36  ;;  %v13084_v7 = vadd.s32 18, %v13045_v30  ;;  %vm13109_vm9 = vmand %vm4502_vm4, %vm4466_vm3 }
 0x29e   : > { %v13088_v8 = vsub.s32 %v12894_v13, %v4211_v33  ;;  %v4254_v28 = vshrl.u32 %v13027_v12, 4  ;;  %v4243_v13 = vshrl.u32 %v13038_v29, 4  ;;  %v4276_v12 = vshrl.u32 %v13049_v31, 4 }
 0x29f   : > { %v13052_v35 = vsub.s32 %v12842_v58, %v4189_v57  ;;  %v4233_v57 = vmul.u32 18, %v4232_v20  ;;  %v13096_v20 = vsub.s32 %v12907_v17, %v4200_v44  ;;  %v13114_v17 = vadd.s32 18, %v13073_v45 }
 0x2a0   : > { %v13118_v33 = vmul.u32.u64.low 3817748708, %v13081_v62  ;;  %v13119_v36 = vmul.u32.u64.high 3817748708, %v13081_v62, %v13118_v33  ;;  %vm4506_vm4 = vcmp.lt.s32.totalorder %v13088_v8, 0  ;;  %v4222_v29 = vmul.u32 18, %v4221_v3 }
 0x2a1   : > { %vm4468_vm7 = vcmp.ne.s32.totalorder %v13052_v35, 0  ;;  %v13093_v19 = vadd.s32 18, %v13052_v35  ;;  %14747 = vst [vmem:[#allocation3_spill] sm:$0xff] %v13096_v20  ;;  %v13102_v32 = vsub.s32 %v12914_v21, %v4233_v57  ;;  %v4265_v44 = vshrl.u32 %v13056_v39, 4 }
 0x2a2   : > { %vm14753_vm0 = vcmp.lt.s32.totalorder %v13052_v35, 0  ;;  %v14754_v31 = vmov 0  ;;  %v4255_v57 = vmul.u32 18, %v4254_v28  ;;  %v13143_v33 = vadd.s32 160, %v12763_v15 }
 0x2a3   : > { %14748 = vst [vmem:[#allocation4_spill] sm:$0xff] %v13102_v32  ;;  %vm13136_vm2 = vmand %vm14753_vm0, %vm4468_vm7  ;;  %vm14756_vm3 = vcmp.ne.s32.totalorder %v13073_v45, 0  ;;  %v14758_v39 = vmov 0  ;;  %vm4472_vm0 = vcmp.ne.s32.totalorder %v13102_v32, 0  ;;  %vm4508_vm7 = vcmp.lt.s32.totalorder %v13102_v32, 0 }
 0x2a4   : > { %v14755_v31 = vsel %vm13136_vm2, 4294967295, %v14754_v31  ;;  %vm13149_vm10 = vmand %vm14757_vm15, %vm14756_vm3  ;;  %v4244_v3 = vmul.u32 18, %v4243_v13  ;;  %vm14760_vm6 = vcmp.ne.s32.totalorder %v13088_v8, 0  ;;  %v14761_v58 = vmov 0 }
 0x2a5   : > { %v14759_v39 = vsel %vm13149_vm10, 4294967295, %v14758_v39  ;;  %vm13164_vm5 = vmand %vm4506_vm4, %vm14760_vm6  ;;  %v13169_v55 = vadd.s32 18, %v13088_v8  ;;  %v13172_v42 = vadd.s32 18, %v13096_v20  ;;  %v4277_v13 = vmul.u32 18, %v4276_v12 }
 0x2a6   : > { %v14762_v58 = vsel %vm13164_vm5, 4294967295, %v14761_v58  ;;  %vm14763_vm15 = vcmp.ne.s32.totalorder %v13096_v20, 0  ;;  %vm14764_vm3 = vcmp.lt.s32.totalorder %v13096_v20, 0  ;;  %v14765_v28 = vmov 0 }
 0x2a7   : > { %vm13182_vm4 = vmand %vm14764_vm3, %vm14763_vm15  ;;  %v13187_v26 = vadd.s32 18, %v13102_v32  ;;  %v13190_v24 = vsub.s32 %v12968_v40, %v4222_v29  ;;  %v4266_v12 = vmul.u32 18, %v4265_v44  ;;  %vm13197_vm6 = vcmp.lt.s32.totalorder %v4602_v22, 16 }
 0x2a8   : > { %v14766_v28 = vsel %vm13182_vm4, 4294967295, %v14765_v28  ;;  %vm13209_vm15 = vmand %vm4508_vm7, %vm4472_vm0  ;;  %v14770_v40 = vmov 0  ;;  %v13214_v63 = vsub.s32 %v12975_v43, %v4255_v57  ;;  %v14773_v22 = vsel %vm12873_vm12, %v12838_v56, %v12813_v47 }
 0x2a9   : > { %14767 = vst [vmem:[#allocation5_spill] sm:$0xff] %v13187_v26  ;;  %v14771_v40 = vsel %vm13209_vm15, 4294967295, %v14770_v40  ;;  %v13217_v46 = vmul.u32.u64.low 3817748708, %v13143_v33  ;;  %v13218_v54 = vmul.u32.u64.high 3817748708, %v13143_v33, %v13217_v46  ;;  %vm13225_vm11 = vcmp.lt.s32.totalorder %v14773_v22, 16 }
 0x2aa   : > { %14772 = vst [vmem:[#allocation6_spill] sm:$0xff] %v14771_v40  ;;  %v13234_v43 = vsub.s32 %v12980_v48, %v4244_v3  ;;  %v13237_v57 = vmul.u32.u64.low 3817748708, %v13156_v9  ;;  %v13238_v46 = vmul.u32.u64.high 3817748708, %v13156_v9, %v13237_v57  ;;  %v13249_v4 = vsub.s32 %v12995_v59, %v4277_v13  ;;  %v13266_v59 = vld [vmem:[%s14708_s2] ss:$0 sm:$0xff] }
 0x2ab   : > { %v4298_v48 = vshrl.u32 %v13119_v36, 4  ;;  %v13258_v22 = vsub.s32 %v13011_v1, %v4266_v12  ;;  %v13261_v57 = vadd.s32 176, %v12763_v15  ;;  %v14777_v36 = vsel %vm12886_vm13, %v12878_v5, %v12819_v50 }
 0x2ac   : > { %vm13273_vm0 = vcmp.lt.s32.totalorder %v14777_v36, 16  ;;  %v13279_v1 = vadd.s32 18, %v13190_v24  ;;  %vm13288_vm15 = vcmp.lt.s32.totalorder %v14780_v10, 16  ;;  %v13293_v5 = vadd.s32 18, %v13214_v63 }
 0x2ad   : > { %14776 = vst [vmem:[#allocation7_spill] sm:$0xff] %v13261_v57  ;;  %v13298_v12 = vadd.s32 200, %v12763_v15  ;;  %v13301_v14 = vadd.s32 18, %v13234_v43  ;;  %v4299_v51 = vmul.u32 18, %v4298_v48  ;;  %vm14783_vm13 = vcmp.ne.s32.totalorder %v13190_v24, 0 }
 0x2ae   : > { %vm14784_vm7 = vcmp.lt.s32.totalorder %v13190_v24, 0  ;;  %v13318_v47 = vadd.s32 18, %v13249_v4  ;;  %v4287_v49 = vshrl.u32 %v13218_v54, 4  ;;  %v4320_v54 = vshrl.u32 %v13238_v46, 4 }
 0x2af   : > { %vm13312_vm12 = vmand %vm14784_vm7, %vm14783_vm13  ;;  %vm14790_vm7 = vcmp.ne.s32.totalorder %v13214_v63, 0  ;;  %vm14791_vm13 = vcmp.lt.s32.totalorder %v13214_v63, 0  ;;  %vm14803_vm10 = vcmp.lt.s32.totalorder %v13249_v4, 0  ;;  %v14808_v20 = vmov 0 }
 0x2b0   : > { %vm13335_vm3 = vmand %vm14791_vm13, %vm14790_vm7  ;;  %vm14798_vm7 = vcmp.ne.s32.totalorder %v13234_v43, 0  ;;  %vm14799_vm13 = vcmp.lt.s32.totalorder %v13234_v43, 0  ;;  %v13378_v40 = vmul.u32.u64.low 3817748708, %v13298_v12  ;;  %v13379_v46 = vmul.u32.u64.high 3817748708, %v13298_v12, %v13378_v40 }
 0x2b1   : > { %vm13357_vm14 = vmand %vm14799_vm13, %vm14798_vm7  ;;  %vm14806_vm7 = vcmp.ne.s32.totalorder %v13258_v22, 0  ;;  %v4321_v29 = vmul.u32 18, %v4320_v54  ;;  %v14821_v13 = vsel %vm13109_vm9, %v13076_v61, %v13022_v6  ;;  %v14824_v0 = vsel %vm13125_vm1, %v13084_v7, %v13045_v30 }
 0x2b2   : > { %v13493_v7 = vadd.s32 208, %v12763_v15 }
 0x2b3   : > { %v13477_v61 = vsub.s32 %v13156_v9, %v4321_v29  ;;  %v13496_v9 = vadd.s32 232, %v12763_v15 }
 0x328   : > { %v10754_v36 = vpop.f32.mrb[0].mxu0 }
 0x329   : > { %v4681_v10 = vadd.f32 %v10754_v36, %v13266_v59  ;;  %v3809_v3 = vpop.f32.mrb[1].mxu0  ;;  %v14787_v36 = vsel %vm12986_vm8, %v12958_v37, %v12904_v16  ;;  %vm14794_vm8 = vnez %v14742_v60 }
 0x32a   : > { %v4680_v48 = vadd.f32 %v13266_v59, %v3809_v3  ;;  %vm13327_vm4 = vcmp.lt.s32.totalorder %v14787_v36, 16  ;;  %v13341_v3 = vadd.s32 18, %v13258_v22  ;;  %v14795_v37 = vsel %vm14794_vm8, %v12964_v38, %v12929_v25 }
 0x32b   : > { %v4717_v16 = vmax.f32 %v4681_v10, 0.0  ;;  %vm13349_vm5 = vcmp.lt.s32.totalorder %v14795_v37, 16  ;;  %v13363_v10 = vmul.u32.u64.low 3817748708, %v13261_v57  ;;  %v13364_v60 = vmul.u32.u64.high 3817748708, %v13261_v57, %v13363_v10 }
 0x32c   : > { %v4716_v26 = vmax.f32 %v4680_v48, 0.0  ;;  %v10757_v25 = vpop.f32.mrb[2].mxu0  ;;  %vm14802_vm8 = vcmp.ne.s32.totalorder %v13249_v4, 0  ;;  %v13375_v37 = vsub.s32 %v13081_v62, %v4299_v51 }
 0x32d   : > { %vm13370_vm2 = vmand %vm14803_vm10, %vm14802_vm8  ;;  %v4825_v10 = vsel %vm13197_vm6, %v4717_v16, 0.0  ;;  %v4683_v48 = vadd.f32 %v10757_v25, %v13266_v59  ;;  %v3819_v57 = vpop.f32.mrb[3].mxu0  ;;  %vm14807_vm10 = vcmp.lt.s32.totalorder %v13258_v22, 0  ;;  %vm14810_vm8 = vcmask 31744  }
 0x32e   : > { %vm13388_vm13 = vmand %vm14807_vm10, %vm14806_vm7  ;;  %v13393_v62 = vmul.u32.u64.low 3817748708, %v13305_v11  ;;  %v13394_v51 = vmul.u32.u64.high 3817748708, %v13305_v11, %v13393_v62  ;;  %4869 = vst.msk [vmem:[#allocation2 + $0x1b] sm:$0xff] %vm14810_vm8, %v4825_v10  ;;  %v4824_v53 = vsel %vm13225_vm11, %v4716_v26, 0.0  ;;  %v4682_v40 = vadd.f32 %v13266_v59, %v3819_v57 }
 0x32f   : > { %v14809_v20 = vsel %vm13388_vm13, 4294967295, %v14808_v20  ;;  %vm14811_vm6 = vnez %v14744_v2  ;;  %v4615_v62 = vsel %vm13312_vm12, %v13279_v1, %v13190_v24  ;;  %v4288_v10 = vmul.u32 18, %v4287_v49  ;;  %vm14815_vm10 = vmmov %vm14810_vm8 }
 0x330   : > { %v14812_v16 = vsel %vm14811_vm6, %v12972_v41, %v12936_v27  ;;  %4868 = vst.msk [vmem:[#allocation2 + $0x13] sm:$0xff] %vm14815_vm10, %v4824_v53  ;;  %v4719_v26 = vmax.f32 %v4683_v48, 0.0  ;;  %vm14816_vm11 = vnez %v14746_v18  ;;  %v4618_v41 = vsel %vm13335_vm3, %v13293_v5, %v13214_v63  ;;  %v10760_v48 = vpop.f32.mrb[4].mxu0 }
 0x331   : > { %vm13405_vm7 = vcmp.lt.s32.totalorder %v14812_v16, 16  ;;  %v14817_v2 = vsel %vm14816_vm11, %v12992_v52, %v12949_v34  ;;  %v13428_v57 = vadd.s32 216, %v12763_v15  ;;  %v4718_v49 = vmax.f32 %v4682_v40, 0.0  ;;  %v3829_v40 = vpop.f32.mrb[5].mxu0 }
 0x332   : > { %vm13419_vm8 = vcmp.lt.s32.totalorder %v14817_v2, 16  ;;  %v4617_v34 = vsel %vm13357_vm14, %v13301_v14, %v13234_v43  ;;  %v4620_v52 = vsel %vm13370_vm2, %v13318_v47, %v13249_v4  ;;  %v4827_v54 = vsel %vm13273_vm0, %v4719_v26, 0.0 }
 0x333   : > { %v4685_v53 = vadd.f32 %v10760_v48, %v13266_v59  ;;  %vm4478_vm6 = vcmp.ne.s32.totalorder %v13375_v37, 0  ;;  %vm4514_vm10 = vcmp.lt.s32.totalorder %v13375_v37, 0  ;;  %vm14820_vm11 = vcmask 31744  }
 0x334   : > { %4871 = vst.msk [vmem:[#allocation2 + $0x2b] sm:$0xff] %vm14820_vm11, %v4827_v54  ;;  %v4826_v16 = vsel %vm13288_vm15, %v4718_v49, 0.0  ;;  %v4684_v2 = vadd.f32 %v13266_v59, %v3829_v40  ;;  %vm13456_vm0 = vcmp.lt.s32.totalorder %v14821_v13, 16  ;;  %v13461_v48 = vadd.s32 18, %v13375_v37  ;;  %vm13487_vm9 = vmand %vm4514_vm10, %vm4478_vm6 }
 0x335   : > { %v13464_v18 = vsub.s32 %v13143_v33, %v4288_v10  ;;  %4870 = vst.msk [vmem:[#allocation2 + $0x23] sm:$0xff] %vm14820_vm11, %v4826_v16  ;;  %v4721_v50 = vmax.f32 %v4685_v53, 0.0  ;;  %vm13472_vm15 = vcmp.lt.s32.totalorder %v14824_v0, 16  ;;  %v10763_v10 = vpop.f32.mrb[6].mxu0  ;;  %v4309_v30 = vshrl.u32 %v13364_v60, 4  ;;  %vm14829_vm1 = vmmov %vm14820_vm11 }
 0x336   : > { %v13480_v49 = vmul.u32.u64.low 3817748708, %v13428_v57  ;;  %v13481_v54 = vmul.u32.u64.high 3817748708, %v13428_v57, %v13480_v49  ;;  %v4720_v33 = vmax.f32 %v4684_v2, 0.0  ;;  %v4687_v53 = vadd.f32 %v10763_v10, %v13266_v59  ;;  %v3839_v40 = vpop.f32.mrb[7].mxu0 }
 0x337   : > { %v4829_v29 = vsel %vm13327_vm4, %v4721_v50, 0.0  ;;  %v4342_v16 = vshrl.u32 %v13379_v46, 4  ;;  %v4331_v2 = vshrl.u32 %v13394_v51, 4  ;;  %v4686_v13 = vadd.f32 %v13266_v59, %v3839_v40  ;;  %v4943_v0 = vld [vmem:[#allocation2 + $0x11] sm:$0xff]  ;;  %v4944_v49 = vld [vmem:[#allocation2 + $0x19] sm:$0xff] }
 0x338   : > { %4873 = vst.msk [vmem:[#allocation2 + $0x3b] sm:$0xff] %vm14829_vm1, %v4829_v29  ;;  %v4828_v60 = vsel %vm13349_vm5, %v4720_v33, 0.0  ;;  %vm14830_vm6 = vnez %v14755_v31  ;;  %vm4477_vm10 = vcmp.ne.s32.totalorder %v13464_v18, 0  ;;  %vm4513_vm11 = vcmp.lt.s32.totalorder %v13464_v18, 0  ;;  %vm14834_vm5 = vmmov %vm14829_vm1  ;;  %v10766_v51 = vpop.f32.mrb[8].mxu0 }
 0x339   : > { %v14831_v44 = vsel %vm14830_vm6, %v13093_v19, %v13052_v35  ;;  %4872 = vst.msk [vmem:[#allocation2 + $0x33] sm:$0xff] %vm14829_vm1, %v4828_v60  ;;  %v4723_v36 = vmax.f32 %v4687_v53, 0.0  ;;  %10811 = vmatprep.mubr.msk.f32.mxu1 %vm14834_vm5, %v4943_v0  ;;  %vm14835_vm13 = vnez %v14759_v39  ;;  %v4622_v19 = vsel %vm13487_vm9, %v13461_v48, %v13375_v37  ;;  %v3849_v29 = vpop.f32.mrb[9].mxu0 }
 0x33a   : > { %vm13512_vm4 = vcmp.lt.s32.totalorder %v14831_v44, 16  ;;  %v14836_v31 = vsel %vm14835_vm13, %v13114_v17, %v13073_v45  ;;  %vm4480_vm6 = vcmp.ne.s32.totalorder %v13477_v61, 0  ;;  %vm4516_vm1 = vcmp.lt.s32.totalorder %v13477_v61, 0  ;;  %10812 = vmatmul.mubr.msk.f32.gmra.mrb[2].mxu1 %vm14834_vm5, %v4944_v49  ;;  %vm13549_vm13 = vmand %vm4513_vm11, %vm4477_vm10 }
 0x33b   : > { %vm13525_vm2 = vcmp.lt.s32.totalorder %v14836_v31, 16  ;;  %v4722_v46 = vmax.f32 %v4686_v13, 0.0  ;;  %v13537_v39 = vadd.s32 18, %v13464_v18  ;;  %v13540_v45 = vadd.s32 18, %v13477_v61  ;;  %vm13570_vm11 = vmand %vm4516_vm1, %vm4480_vm6 }
 0x33c   : > { %v4310_v17 = vmul.u32 18, %v4309_v30  ;;  %v4831_v33 = vsel %vm13405_vm7, %v4723_v36, 0.0  ;;  %v4689_v10 = vadd.f32 %v10766_v51, %v13266_v59  ;;  %v4343_v40 = vmul.u32 18, %v4342_v16  ;;  %v4945_v13 = vld [vmem:[#allocation2 + $0x21] sm:$0xff]  ;;  %v4946_v0 = vld [vmem:[#allocation2 + $0x29] sm:$0xff]  ;;  %vm14853_vm6 = vmmov %vm14834_vm5 }
 0x33d   : > { %v4332_v60 = vmul.u32 18, %v4331_v2  ;;  %4875 = vst.msk [vmem:[#allocation2 + $0x4b] sm:$0xff] %vm14834_vm5, %v4831_v33  ;;  %v4830_v30 = vsel %vm13419_vm8, %v4722_v46, 0.0  ;;  %v4688_v25 = vadd.f32 %v13266_v59, %v3849_v29  ;;  %vm14841_vm7 = vnez %v14762_v58  ;;  %vm14847_vm8 = vmmov %vm14834_vm5  ;;  %10814 = vmatprep.mubr.msk.f32.mxu1 %vm14834_vm5, %v4945_v13 }
 0x33e   : > { %v14842_v49 = vsel %vm14841_vm7, %v13169_v55, %v13088_v8  ;;  %v13575_v16 = vmul.u32.u64.low 3817748708, %v13493_v7  ;;  %v13576_v2 = vmul.u32.u64.high 3817748708, %v13493_v7, %v13575_v16  ;;  %4874 = vst.msk [vmem:[#allocation2 + $0x43] sm:$0xff] %vm14847_vm8, %v4830_v30  ;;  %v4725_v58 = vmax.f32 %v4689_v10, 0.0  ;;  %v14849_v55 = vld [vmem:[#allocation3_spill] sm:$0xff]  ;;  %v10769_v10 = vpop.f32.mrb[10].mxu0  ;;  %10815 = vmatmul.mubr.msk.f32.gmra.mrb[4].mxu1 %vm14853_vm6, %v4946_v0  ;;  %vm14855_vm1 = vmmov %vm14834_vm5 }
 0x33f   : > { %vm13562_vm10 = vcmp.lt.s32.totalorder %v14842_v49, 16  ;;  %vm14848_vm7 = vnez %v14766_v28  ;;  %v4364_v31 = vshrl.u32 %v13481_v54, 4  ;;  %v13591_v46 = vadd.s32 224, %v12763_v15  ;;  %v14854_v28 = vld [vmem:[#allocation7_spill] sm:$0xff]  ;;  %vm14864_vm5 = vmmov %vm14855_vm1 }
 0x340   : > { %v14850_v8 = vsel %vm14848_vm7, %v13172_v42, %v14849_v55  ;;  %v13594_v51 = vadd.s32 248, %v12763_v15  ;;  %v4724_v33 = vmax.f32 %v4688_v25, 0.0  ;;  %v13602_v29 = vsub.s32 %v14854_v28, %v4310_v17  ;;  %v3859_v25 = vpop.f32.mrb[11].mxu0  ;;  %v4947_v26 = vld [vmem:[#allocation2 + $0x31] sm:$0xff]  ;;  %v14856_v55 = vld [vmem:[#allocation6_spill] sm:$0xff]  ;;  %vm14867_vm6 = vmmov %vm14855_vm1 }
 0x341   : > { %vm13585_vm9 = vcmp.lt.s32.totalorder %v14850_v8, 16  ;;  %v13605_v54 = vadd.s32 240, %v12763_v15  ;;  %v4833_v30 = vsel %vm13456_vm0, %v4725_v58, 0.0  ;;  %v4691_v13 = vadd.f32 %v10769_v10, %v13266_v59  ;;  %v4948_v58 = vld [vmem:[#allocation2 + $0x39] sm:$0xff]  ;;  %v14859_v10 = vld [vmem:[#allocation4_spill] sm:$0xff]  ;;  %10817 = vmatprep.mubr.msk.f32.mxu1 %vm14864_vm5, %v4947_v26 }
 0x342   : > { %v4624_v0 = vsel %vm13570_vm11, %v13540_v45, %v13477_v61  ;;  %v13615_v49 = vsub.s32 %v13298_v12, %v4343_v40  ;;  %4877 = vst.msk [vmem:[#allocation2 + $0x5b] sm:$0xff] %vm14855_vm1, %v4833_v30  ;;  %v4832_v17 = vsel %vm13472_vm15, %v4724_v33, 0.0  ;;  %v4690_v16 = vadd.f32 %v13266_v59, %v3859_v25  ;;  %v14858_v8 = vld [vmem:[#allocation5_spill] sm:$0xff]  ;;  %vm14863_vm15 = vmmov %vm14855_vm1  ;;  %10818 = vmatmul.mubr.msk.f32.gmra.mrb[6].mxu1 %vm14867_vm6, %v4948_v58 }
 0x343   : > { %vm14857_vm0 = vnez %v14856_v55  ;;  %v13631_v12 = vsub.s32 %v13305_v11, %v4332_v60  ;;  %v13634_v40 = vadd.s32 264, %v12763_v15  ;;  %4876 = vst.msk [vmem:[#allocation2 + $0x53] sm:$0xff] %vm14863_vm15, %v4832_v17  ;;  %v4727_v6 = vmax.f32 %v4691_v13, 0.0  ;;  %v10772_v55 = vpop.f32.mrb[12].mxu0 }
 0x344   : > { %v14860_v28 = vsel %vm14857_vm0, %v14858_v8, %v14859_v10  ;;  %vm13643_vm7 = vcmp.lt.s32.totalorder %v4615_v62, 16  ;;  %v4365_v30 = vmul.u32 18, %v4364_v31  ;;  %v4726_v25 = vmax.f32 %v4690_v16, 0.0  ;;  %v3869_v62 = vpop.f32.mrb[13].mxu0 }
 0x345   : > { %vm13626_vm8 = vcmp.lt.s32.totalorder %v14860_v28, 16  ;;  %v13648_v11 = vmul.u32.u64.low 3817748708, %v13496_v9  ;;  %v13649_v60 = vmul.u32.u64.high 3817748708, %v13496_v9, %v13648_v11  ;;  %vm4479_vm1 = vcmp.ne.s32.totalorder %v13602_v29, 0  ;;  %v4949_v17 = vld [vmem:[#allocation2 + $0x41] sm:$0xff]  ;;  %v4950_v16 = vld [vmem:[#allocation2 + $0x49] sm:$0xff] }
 0x346   : > { %vm4515_vm0 = vcmp.lt.s32.totalorder %v13602_v29, 0  ;;  %v13655_v56 = vadd.s32 18, %v13602_v29  ;;  %v4835_v24 = vsel %vm13512_vm4, %v4727_v6, 0.0  ;;  %v4693_v1 = vadd.f32 %v10772_v55, %v13266_v59  ;;  %v10775_v14 = vpop.f32.mrb[14].mxu0 }
 0x347   : > { %vm4482_vm12 = vcmp.ne.s32.totalorder %v13615_v49, 0  ;;  %4879 = vst.msk [vmem:[#allocation2 + $0x6b] sm:$0xff] %vm14864_vm5, %v4835_v24  ;;  %v4834_v31 = vsel %vm13525_vm2, %v4726_v25, 0.0  ;;  %v4692_v13 = vadd.f32 %v13266_v59, %v3869_v62  ;;  %vm13671_vm4 = vcmp.lt.s32.totalorder %v4618_v41, 16  ;;  %vm14870_vm2 = vmmov %vm14864_vm5  ;;  %v3879_v8 = vpop.f32.mrb[15].mxu0 }
 0x348   : > { %vm4481_vm6 = vcmp.ne.s32.totalorder %v13631_v12, 0  ;;  %v4353_v26 = vshrl.u32 %v13576_v2, 4  ;;  %4878 = vst.msk [vmem:[#allocation2 + $0x63] sm:$0xff] %vm14864_vm5, %v4834_v31  ;;  %v4729_v35 = vmax.f32 %v4693_v1, 0.0  ;;  %10820 = vmatprep.mubr.msk.f32.mxu1 %vm14870_vm2, %v4949_v17  ;;  %vm13684_vm15 = vcmp.lt.s32.totalorder %v4617_v34, 16  ;;  %vm13692_vm3 = vmand %vm4515_vm0, %vm4479_vm1  ;;  %v10778_v1 = vpop.f32.mrb[16].mxu0 }
 0x349   : > { %v13697_v5 = vsub.s32 %v13428_v57, %v4365_v30  ;;  %v13700_v32 = vmul.u32.u64.low 3817748708, %v13591_v46  ;;  %v13701_v41 = vmul.u32.u64.high 3817748708, %v13591_v46, %v13700_v32  ;;  %v4728_v43 = vmax.f32 %v4692_v13, 0.0  ;;  %vm14875_vm14 = vmmov %vm14870_vm2  ;;  %v3889_v13 = vpop.f32.mrb[17].mxu0 }
 0x34a   : > { %10821 = vmatmul.mubr.msk.f32.gmra.mrb[8].mxu1 %vm14875_vm14, %v4950_v16  ;;  %vm4517_vm5 = vcmp.lt.s32.totalorder %v13631_v12, 0  ;;  %v13706_v34 = vmul.u32.u64.low 3817748708, %v13594_v51  ;;  %v13707_v2 = vmul.u32.u64.high 3817748708, %v13594_v51, %v13706_v34  ;;  %v4837_v58 = vsel %vm13562_vm10, %v4729_v35, 0.0  ;;  %vm14876_vm1 = vmmov %vm14870_vm2  ;;  %v4951_v11 = vld [vmem:[#allocation2 + $0x51] sm:$0xff]  ;;  %v4952_v25 = vld [vmem:[#allocation2 + $0x59] sm:$0xff] }
 0x34b   : > { %v4695_v57 = vadd.f32 %v10775_v14, %v13266_v59  ;;  %v13713_v10 = vadd.s32 18, %v13615_v49  ;;  %v13716_v28 = vadd.s32 256, %v12763_v15  ;;  %4881 = vst.msk [vmem:[#allocation2 + $0x7b] sm:$0xff] %vm14876_vm1, %v4837_v58  ;;  %v4836_v6 = vsel %vm13585_vm9, %v4728_v43, 0.0  ;;  %vm14883_vm14 = vmmov %vm14876_vm1  ;;  %10823 = vmatprep.mubr.msk.f32.mxu1 %vm14876_vm1, %v4951_v11 }
 0x34c   : > { %v4694_v30 = vadd.f32 %v13266_v59, %v3879_v8  ;;  %vm13727_vm0 = vcmp.lt.s32.totalorder %v4620_v52, 16  ;;  %v4623_v55 = vsel %vm13692_vm3, %v13655_v56, %v13602_v29  ;;  %vm14880_vm9 = vcmp.lt.s32.totalorder %v13615_v49, 0  ;;  %4880 = vst.msk [vmem:[#allocation2 + $0x73] sm:$0xff] %vm14883_vm14, %v4836_v6  ;;  %vm14890_vm14 = vmmov %vm14876_vm1 }
 0x34d   : > { %vm13739_vm2 = vmand %vm14880_vm9, %vm4482_vm12  ;;  %v13744_v38 = vadd.s32 18, %v13631_v12  ;;  %v4731_v47 = vmax.f32 %v4695_v57, 0.0  ;;  %vm14884_vm10 = vnez %v14809_v20  ;;  %vm4484_vm9 = vcmp.ne.s32.totalorder %v13697_v5, 0 }
 0x34e   : > { %v14885_v4 = vsel %vm14884_vm10, %v13341_v3, %v13258_v22  ;;  %vm13761_vm12 = vmand %vm4517_vm5, %vm4481_vm6  ;;  %v4354_v56 = vmul.u32 18, %v4353_v26  ;;  %v4386_v20 = vshrl.u32 %v13649_v60, 4  ;;  %v4730_v24 = vmax.f32 %v4694_v30, 0.0  ;;  %10824 = vmatmul.mubr.msk.f32.gmra.mrb[10].mxu1 %vm14890_vm14, %v4952_v25 }
 0x34f   : > { %vm13753_vm3 = vcmp.lt.s32.totalorder %v14885_v4, 16  ;;  %vm4520_vm1 = vcmp.lt.s32.totalorder %v13697_v5, 0  ;;  %v13770_v22 = vmul.u32.u64.low 3817748708, %v13605_v54  ;;  %v13771_v3 = vmul.u32.u64.high 3817748708, %v13605_v54, %v13770_v22  ;;  %vm14891_vm6 = vmmov %vm14890_vm14  ;;  %v4953_v42 = vld [vmem:[#allocation2 + $0x61] sm:$0xff]  ;;  %v4954_v35 = vld [vmem:[#allocation2 + $0x69] sm:$0xff] }
 0x350   : > { %v4839_v62 = vsel %vm13626_vm8, %v4731_v47, 0.0  ;;  %v4697_v31 = vadd.f32 %v10778_v1, %v13266_v59  ;;  %v4626_v60 = vsel %vm13739_vm2, %v13713_v10, %v13615_v49  ;;  %v13781_v17 = vadd.s32 280, %v12763_v15  ;;  %vm14896_vm2 = vmmov %vm14891_vm6 }
 0x351   : > { %4883 = vst.msk [vmem:[#allocation2 + $0x8b] sm:$0xff] %vm14891_vm6, %v4839_v62  ;;  %v4838_v16 = vsel %vm13643_vm7, %v4730_v24, 0.0  ;;  %v4696_v26 = vadd.f32 %v13266_v59, %v3889_v13  ;;  %vm13792_vm5 = vcmp.lt.s32.totalorder %v4622_v19, 16  ;;  %v4625_v49 = vsel %vm13761_vm12, %v13744_v38, %v13631_v12  ;;  %vm14895_vm7 = vmmov %vm14891_vm6  ;;  %10826 = vmatprep.mubr.msk.f32.mxu1 %vm14896_vm2, %v4953_v42 }
 0x352   : > { %v13801_v33 = vadd.s32 18, %v13697_v5  ;;  %4882 = vst.msk [vmem:[#allocation2 + $0x83] sm:$0xff] %vm14895_vm7, %v4838_v16  ;;  %v4733_v32 = vmax.f32 %v4697_v31, 0.0  ;;  %v14897_v37 = vsel %vm13549_vm13, %v13537_v39, %v13464_v18  ;;  %vm13818_vm12 = vmand %vm4520_vm1, %vm4484_vm9  ;;  %v13823_v19 = vsub.s32 %v13493_v7, %v4354_v56  ;;  %v10781_v18 = vpop.f32.mrb[18].mxu0  ;;  %v11969_v16 = vld [vmem:[%s14709_s3 + $0x8] sm:$0xf] }
 0x353   : > { %vm13810_vm10 = vcmp.lt.s32.totalorder %v14897_v37, 16  ;;  %v4387_v12 = vmul.u32 18, %v4386_v20  ;;  %v4375_v53 = vshrl.u32 %v13701_v41, 4  ;;  %v4732_v43 = vmax.f32 %v4696_v26, 0.0  ;;  %vm14902_vm13 = vmmov %vm14896_vm2  ;;  %v3899_v7 = vpop.f32.mrb[19].mxu0  ;;  %v4955_v6 = vld [vmem:[#allocation2 + $0x71] sm:$0xff] }
 0x354   : > { %10827 = vmatmul.mubr.msk.f32.gmra.mrb[12].mxu1 %vm14902_vm13, %v4954_v35  ;;  %v4408_v39 = vshrl.u32 %v13707_v2, 4  ;;  %v13829_v14 = vmul.u32.u64.low 3817748708, %v13634_v40  ;;  %v13830_v34 = vmul.u32.u64.high 3817748708, %v13634_v40, %v13829_v14  ;;  %v4841_v58 = vsel %vm13671_vm4, %v4733_v32, 0.0  ;;  %vm14903_vm9 = vmmov %vm14896_vm2  ;;  %v4956_v30 = vld [vmem:[#allocation2 + $0x79] sm:$0xff] }
 0x355   : > { %v4699_v57 = vadd.f32 %v10781_v18, %v13266_v59  ;;  %v13836_v8 = vmul.u32.u64.low 3817748708, %v13716_v28  ;;  %v13837_v10 = vmul.u32.u64.high 3817748708, %v13716_v28, %v13836_v8  ;;  %4885 = vst.msk [vmem:[#allocation2 + $0x9b] sm:$0xff] %vm14903_vm9, %v4841_v58  ;;  %v4840_v41 = vsel %vm13684_vm15, %v4732_v43, 0.0  ;;  %vm14906_vm15 = vmmov %vm14896_vm2 }
 0x356   : > { %v4698_v2 = vadd.f32 %v13266_v59, %v3899_v7  ;;  %vm13848_vm4 = vcmp.lt.s32.totalorder %v4624_v0, 16  ;;  %v4628_v11 = vsel %vm13818_vm12, %v13801_v33, %v13697_v5  ;;  %4884 = vst.msk [vmem:[#allocation2 + $0x93] sm:$0xff] %vm14906_vm15, %v4840_v41  ;;  %vm14907_vm14 = vmmov %vm14896_vm2  ;;  %vm13861_vm1 = vcmp.lt.s32.totalorder %v4623_v55, 16  ;;  %v10784_v5 = vpop.f32.mrb[20].mxu0 }
 0x357   : > { %v4735_v25 = vmax.f32 %v4699_v57, 0.0  ;;  %10829 = vmatprep.mubr.msk.f32.mxu1 %vm14907_vm14, %v4955_v6  ;;  %vm4483_vm11 = vcmp.ne.s32.totalorder %v13823_v19, 0  ;;  %v13867_v61 = vsub.s32 %v13496_v9, %v4387_v12  ;;  %v4376_v45 = vmul.u32 18, %v4375_v53  ;;  %vm14910_vm6 = vmmov %vm14896_vm2  ;;  %v3909_v47 = vpop.f32.mrb[21].mxu0 }
 0x358   : > { %v4734_v0 = vmax.f32 %v4698_v2, 0.0  ;;  %10830 = vmatmul.mubr.msk.f32.gmra.mrb[14].mxu1 %vm14910_vm6, %v4956_v30  ;;  %vm4519_vm8 = vcmp.lt.s32.totalorder %v13823_v19, 0  ;;  %v4409_v15 = vmul.u32 18, %v4408_v39  ;;  %v4397_v36 = vshrl.u32 %v13771_v3, 4  ;;  %vm14911_vm7 = vmmov %vm14896_vm2 }
 0x359   : > { %v4843_v55 = vsel %vm13727_vm0, %v4735_v25, 0.0  ;;  %v4701_v38 = vadd.f32 %v10784_v5, %v13266_v59  ;;  %v13876_v4 = vmul.u32.u64.low 3817748708, %v13781_v17  ;;  %v13877_v9 = vmul.u32.u64.high 3817748708, %v13781_v17, %v13876_v4  ;;  %v4957_v20 = vld [vmem:[#allocation2 + $0x81] sm:$0xff]  ;;  %v4958_v24 = vld [vmem:[#allocation2 + $0x89] sm:$0xff]  ;;  %vm14914_vm0 = vmmov %vm14910_vm6 }
 0x35a   : > { %4887 = vst.msk [vmem:[#allocation2 + $0xab] sm:$0xff] %vm14911_vm7, %v4843_v55  ;;  %v4842_v29 = vsel %vm13753_vm3, %v4734_v0, 0.0  ;;  %v4700_v56 = vadd.f32 %v13266_v59, %v3909_v47  ;;  %vm13883_vm2 = vcmp.lt.s32.totalorder %v4626_v60, 16  ;;  %vm14915_vm12 = vmmov %vm14914_vm0  ;;  %vm13893_vm13 = vcmp.lt.s32.totalorder %v4625_v49, 16  ;;  %v10787_v60 = vpop.f32.mrb[22].mxu0  ;;  %v4920_v53 = vld [vmem:[#allocation2 + $0x80] sm:$0xff] }
 0x35b   : > { %v13888_v44 = vmul.u32.u64.low 3817748708, %v13857_v23  ;;  %v13889_v22 = vmul.u32.u64.high 3817748708, %v13857_v23, %v13888_v44  ;;  %4886 = vst.msk [vmem:[#allocation2 + $0xa3] sm:$0xff] %vm14914_vm0, %v4842_v29  ;;  %v4737_v3 = vmax.f32 %v4701_v38, 0.0  ;;  %10832 = vmatprep.mubr.msk.f32.mxu1 %vm14915_vm12, %v4957_v20  ;;  %v4591_v62 = vadd.s32 18, %v13823_v19  ;;  %vm14918_vm9 = vmmov %vm14914_vm0  ;;  %v3919_v33 = vpop.f32.mrb[23].mxu0 }
 0x35c   : > { %vm4486_vm3 = vcmp.ne.s32.totalorder %v13867_v61, 0  ;;  %v13900_v31 = vsub.s32 %v13591_v46, %v4376_v45  ;;  %v4736_v13 = vmax.f32 %v4700_v56, 0.0  ;;  %10833 = vmatmul.mubr.msk.f32.gmra.mrb[16].mxu1 %vm14918_vm9, %v4958_v24  ;;  %vm13907_vm15 = vmand %vm4519_vm8, %vm4483_vm11  ;;  %v13912_v26 = vsub.s32 %v13594_v51, %v4409_v15  ;;  %v10790_v39 = vpop.f32.mrb[24].mxu0 }
 0x35d   : > { %v4398_v42 = vmul.u32 18, %v4397_v36  ;;  %v4430_v35 = vshrl.u32 %v13830_v34, 4  ;;  %v4845_v46 = vsel %vm13792_vm5, %v4737_v3, 0.0  ;;  %v4703_v49 = vadd.f32 %v10787_v60, %v13266_v59  ;;  %vm14921_vm11 = vmmov %vm14914_vm0  ;;  %v4959_v21 = vld [vmem:[#allocation2 + $0x91] sm:$0xff]  ;;  %v4960_v12 = vld [vmem:[#allocation2 + $0x99] sm:$0xff]  ;;  %v3929_v7 = vpop.f32.mrb[25].mxu0 }
 0x35e   : > { %vm4522_vm14 = vcmp.lt.s32.totalorder %v13867_v61, 0  ;;  %v4419_v32 = vshrl.u32 %v13837_v10, 4  ;;  %4889 = vst.msk [vmem:[#allocation2 + $0xbb] sm:$0xff] %vm14921_vm11, %v4845_v46  ;;  %v4844_v37 = vsel %vm13810_vm10, %v4736_v13, 0.0  ;;  %v4702_v51 = vadd.f32 %v13266_v59, %v3919_v33  ;;  %vm14924_vm5 = vmmov %vm14914_vm0  ;;  %v10793_v0 = vpop.f32.mrb[26].mxu0 }
 0x35f   : > { %vm13924_vm6 = vcmp.lt.s32.totalorder %v4628_v11, 16  ;;  %v4594_v63 = vadd.s32 18, %v13867_v61  ;;  %4888 = vst.msk [vmem:[#allocation2 + $0xb3] sm:$0xff] %vm14924_vm5, %v4844_v37  ;;  %v4739_v43 = vmax.f32 %v4703_v49, 0.0  ;;  %vm14925_vm8 = vmmov %vm14914_vm0  ;;  %v4627_v48 = vsel %vm13907_vm15, %v4591_v62, %v13823_v19  ;;  %v3939_v38 = vpop.f32.mrb[27].mxu0 }
 0x360   : > { %10835 = vmatprep.mubr.msk.f32.mxu1 %vm14925_vm8, %v4959_v21  ;;  %vm4485_vm10 = vcmp.ne.s32.totalorder %v13900_v31, 0  ;;  %vm4521_vm7 = vcmp.lt.s32.totalorder %v13900_v31, 0  ;;  %v4738_v18 = vmax.f32 %v4702_v51, 0.0  ;;  %vm13941_vm12 = vmand %vm4522_vm14, %vm4486_vm3  ;;  %vm4488_vm9 = vcmp.ne.s32.totalorder %v13912_v26, 0  ;;  %v10796_v52 = vpop.f32.mrb[28].mxu0 }
 0x361   : > { %10836 = vmatmul.mubr.msk.f32.gmra.mrb[18].mxu1 %vm14914_vm0, %v4960_v12  ;;  %v13947_v19 = vsub.s32 %v13605_v54, %v4398_v42  ;;  %v4431_v34 = vmul.u32 18, %v4430_v35  ;;  %v4847_v58 = vsel %vm13848_vm4, %v4739_v43, 0.0  ;;  %v4705_v57 = vadd.f32 %v10790_v39, %v13266_v59  ;;  %vm14928_vm15 = vmmov %vm14914_vm0  ;;  %v4918_v12 = vld [vmem:[#allocation2 + $0x70] sm:$0xff] }
 0x362   : > { %v4420_v8 = vmul.u32 18, %v4419_v32  ;;  %v4452_v10 = vshrl.u32 %v13877_v9, 4  ;;  %4891 = vst.msk [vmem:[#allocation2 + $0xcb] sm:$0xff] %vm14928_vm15, %v4847_v58  ;;  %v4846_v41 = vsel %vm13861_vm1, %v4738_v18, 0.0  ;;  %v4704_v2 = vadd.f32 %v13266_v59, %v3929_v7  ;;  %v4961_v6 = vld [vmem:[#allocation2 + $0xa1] sm:$0xff]  ;;  %v4962_v54 = vld [vmem:[#allocation2 + $0xa9] sm:$0xff]  ;;  %vm14929_vm4 = vmmov %vm14914_vm0 }
 0x363   : > { %vm4524_vm3 = vcmp.lt.s32.totalorder %v13912_v26, 0  ;;  %v4441_v30 = vshrl.u32 %v13889_v22, 4  ;;  %4890 = vst.msk [vmem:[#allocation2 + $0xc3] sm:$0xff] %vm14929_vm4, %v4846_v41  ;;  %v4741_v50 = vmax.f32 %v4705_v57, 0.0  ;;  %vm14930_vm14 = vmmov %vm14914_vm0  ;;  %vm13961_vm11 = vcmp.lt.s32.totalorder %v4627_v48, 16  ;;  %v4925_v39 = vld [vmem:[#allocation2 + $0xa8] sm:$0xff] }
 0x364   : > { %10838 = vmatprep.mubr.msk.f32.mxu1 %vm14930_vm14, %v4961_v6  ;;  %v4630_v25 = vsel %vm13941_vm12, %v4594_v63, %v13867_v61  ;;  %v4593_v27 = vadd.s32 18, %v13900_v31  ;;  %v4740_v45 = vmax.f32 %v4704_v2, 0.0  ;;  %vm14933_vm1 = vmmov %vm14914_vm0  ;;  %v4596_v15 = vadd.s32 18, %v13912_v26 }
 0x365   : > { %10839 = vmatmul.mubr.msk.f32.gmra.mrb[20].mxu1 %vm14933_vm1, %v4962_v54  ;;  %vm13974_vm5 = vmand %vm4521_vm7, %vm4485_vm10  ;;  %vm4487_vm8 = vcmp.ne.s32.totalorder %v13947_v19, 0  ;;  %v13981_v61 = vsub.s32 %v13634_v40, %v4431_v34  ;;  %v4849_v36 = vsel %vm13883_vm2, %v4741_v50, 0.0  ;;  %v4707_v55 = vadd.f32 %v10793_v0, %v13266_v59 }
 0x366   : > { %vm13990_vm10 = vmand %vm4524_vm3, %vm4488_vm9  ;;  %v13995_v4 = vsub.s32 %v13716_v28, %v4420_v8  ;;  %v4453_v9 = vmul.u32 18, %v4452_v10  ;;  %v4848_v40 = vsel %vm13893_vm13, %v4740_v45, 0.0  ;;  %v4706_v29 = vadd.f32 %v13266_v59, %v3939_v38  ;;  %v4963_v56 = vld [vmem:[#allocation2 + $0xb1] sm:$0xff]  ;;  %v4964_v20 = vld [vmem:[#allocation2 + $0xb9] sm:$0xff] }
 0x367   : > { %vm14938_vm7 = vmmov %vm14914_vm0  ;;  %vm4523_vm2 = vcmp.lt.s32.totalorder %v13947_v19, 0  ;;  %v4442_v24 = vmul.u32 18, %v4441_v30  ;;  %4892 = vst.msk [vmem:[#allocation2 + $0xd3] sm:$0xff] %vm14914_vm0, %v4848_v40  ;;  %v4743_v1 = vmax.f32 %v4707_v55, 0.0  ;;  %vm14004_vm9 = vcmp.lt.s32.totalorder %v4630_v25, 16  ;;  %v5692_v25 = vld [vmem:[#allocation2 + $0xa] sm:$0xff] }
 0x368   : > { %4893 = vst.msk [vmem:[#allocation2 + $0xdb] sm:$0xff] %vm14938_vm7, %v4849_v36  ;;  %vm14939_vm12 = vmmov %vm14914_vm0  ;;  %v4629_v44 = vsel %vm13974_vm5, %v4593_v27, %v13900_v31  ;;  %v4595_v22 = vadd.s32 18, %v13947_v19  ;;  %v4742_v3 = vmax.f32 %v4706_v29, 0.0  ;;  %v4632_v62 = vsel %vm13990_vm10, %v4596_v15, %v13912_v26  ;;  %v3949_v31 = vpop.f32.mrb[29].mxu0 }
 0x369   : > { %10841 = vmatprep.mubr.msk.f32.mxu1 %vm14939_vm12, %v4963_v56  ;;  %vm14942_vm13 = vmmov %vm14914_vm0  ;;  %vm4490_vm15 = vcmp.ne.s32.totalorder %v13981_v61, 0  ;;  %vm4526_vm3 = vcmp.lt.s32.totalorder %v13981_v61, 0  ;;  %v4851_v13 = vsel %vm13924_vm6, %v4743_v1, 0.0  ;;  %v4709_v60 = vadd.f32 %v10796_v52, %v13266_v59  ;;  %v10799_v21 = vpop.f32.mrb[30].mxu0 }
 0x36a   : > { %10842 = vmatmul.mubr.msk.f32.gmra.mrb[22].mxu1 %vm14942_vm13, %v4964_v20  ;;  %vm14025_vm4 = vmand %vm4523_vm2, %vm4487_vm8  ;;  %vm4489_vm14 = vcmp.ne.s32.totalorder %v13995_v4, 0  ;;  %v14031_v26 = vsub.s32 %v13781_v17, %v4453_v9  ;;  %v4850_v42 = vsel %vm13961_vm11, %v4742_v3, 0.0  ;;  %v4708_v35 = vadd.f32 %v13266_v59, %v3949_v31  ;;  %v4965_v46 = vld [vmem:[#allocation2 + $0xc1] sm:$0xff]  ;;  %v4966_v49 = vld [vmem:[#allocation2 + $0xc9] sm:$0xff]  ;;  %v3959_v18 = vpop.f32.mrb[31].mxu0 }
 0x36b   : > { %vm14945_vm1 = vmmov %vm14914_vm0  ;;  %vm4525_vm6 = vcmp.lt.s32.totalorder %v13995_v4, 0  ;;  %v14039_v33 = vsub.s32 %v13857_v23, %v4442_v24  ;;  %v4745_v32 = vmax.f32 %v4709_v60, 0.0  ;;  %vm14042_vm8 = vcmp.lt.s32.totalorder %v4629_v44, 16  ;;  %v10802_v41 = vpop.f32.mrb[32].mxu0  ;;  %v14141_v60 = vld [vmem:[%s14709_s3 + $0xc] sm:$0xf] }
 0x36c   : > { %4895 = vst.msk [vmem:[#allocation2 + $0xeb] sm:$0xff] %vm14945_vm1, %v4851_v13  ;;  %vm14946_vm5 = vmmov %vm14914_vm0  ;;  %v4598_v37 = vadd.s32 18, %v13981_v61  ;;  %v4744_v51 = vmax.f32 %v4708_v35, 0.0  ;;  %vm14048_vm11 = vcmp.lt.s32.totalorder %v4632_v62, 16  ;;  %v4631_v23 = vsel %vm14025_vm4, %v4595_v22, %v13947_v19  ;;  %v3969_v11 = vpop.f32.mrb[33].mxu0  ;;  %v4904_v62 = vld [vmem:[#allocation2] sm:$0xff] }
 0x36d   : > { %4894 = vst.msk [vmem:[#allocation2 + $0xe3] sm:$0xff] %vm14946_vm5, %v4850_v42  ;;  %vm14949_vm10 = vmmov %vm14914_vm0  ;;  %v4597_v63 = vadd.s32 18, %v13995_v4  ;;  %v4853_v43 = vsel %vm14004_vm9, %v4745_v32, 0.0  ;;  %v4711_v48 = vadd.f32 %v10799_v21, %v13266_v59  ;;  %vm4492_vm12 = vcmp.ne.s32.totalorder %v14031_v26, 0  ;;  %v10805_v55 = vpop.f32.mrb[34].mxu0  ;;  %v4905_v13 = vld [vmem:[#allocation2 + $0x8] sm:$0xff] }
 0x36e   : > { %10844 = vmatprep.mubr.msk.f32.mxu1 %vm14949_vm10, %v4965_v46  ;;  %vm14952_vm7 = vmmov %vm14914_vm0  ;;  %vm4528_vm13 = vcmp.lt.s32.totalorder %v14031_v26, 0  ;;  %v4852_v14 = vsel %vm14042_vm8, %v4744_v51, 0.0  ;;  %v4710_v19 = vadd.f32 %v13266_v59, %v3959_v18  ;;  %v4967_v34 = vld [vmem:[#allocation2 + $0xd1] sm:$0xff]  ;;  %vm4491_vm9 = vcmp.ne.s32.totalorder %v14039_v33, 0  ;;  %v3979_v9 = vpop.f32.mrb[35].mxu0  ;;  %v4908_v42 = vld [vmem:[#allocation2 + $0x20] sm:$0xff] }
 0x36f   : > { %10845 = vmatmul.mubr.msk.f32.gmra.mrb[24].mxu1 %vm14952_vm7, %v4966_v49  ;;  %vm14060_vm2 = vmand %vm4526_vm3, %vm4490_vm15  ;;  %v4968_v58 = vld [vmem:[#allocation2 + $0xd9] sm:$0xff]  ;;  %vm4527_vm3 = vcmp.lt.s32.totalorder %v14039_v33, 0  ;;  %v4747_v57 = vmax.f32 %v4711_v48, 0.0  ;;  %v4600_v8 = vadd.s32 18, %v14031_v26  ;;  %v4599_v54 = vadd.s32 18, %v14039_v33  ;;  %v4906_v31 = vld [vmem:[#allocation2 + $0x10] sm:$0xff] }
 0x370   : > { %vm14072_vm0 = vmand %vm4525_vm6, %vm4489_vm14  ;;  %vm4667_vm14 = vcmp.lt.s32.totalorder %v4631_v23, 16  ;;  %10847 = vmatprep.mubr.msk.f32.mxu1 %vm14945_vm1, %v4967_v34  ;;  %v4634_v7 = vsel %vm14060_vm2, %v4598_v37, %v13981_v61  ;;  %v4746_v10 = vmax.f32 %v4710_v19, 0.0  ;;  %v4713_v50 = vadd.f32 %v10802_v41, %v13266_v59  ;;  %v4909_v35 = vld [vmem:[#allocation2 + $0x28] sm:$0xff]  ;;  %v4910_v46 = vld [vmem:[#allocation2 + $0x30] sm:$0xff] }
 0x371   : > { %vm14957_vm15 = vmmov %vm14945_vm1  ;;  %v4633_v2 = vsel %vm14072_vm0, %v4597_v63, %v13995_v4  ;;  %v4855_v30 = vsel %vm14048_vm11, %v4747_v57, 0.0  ;;  %vm4670_vm7 = vcmp.lt.s32.totalorder %v4634_v7, 16  ;;  %v4712_v45 = vadd.f32 %v13266_v59, %v3969_v11  ;;  %v4911_v49 = vld [vmem:[#allocation2 + $0x38] sm:$0xff]  ;;  %v4913_v32 = vld [vmem:[#allocation2 + $0x48] sm:$0xff] }
 0x372   : > { %4897 = vst.msk [vmem:[#allocation2 + $0xfb] sm:$0xff] %vm14957_vm15, %v4853_v43  ;;  %vm14958_vm4 = vmmov %vm14945_vm1  ;;  %v4854_v27 = vsel %vm4667_vm14, %v4746_v10, 0.0  ;;  %v4749_v15 = vmax.f32 %v4713_v50, 0.0  ;;  %vm4669_vm2 = vcmp.lt.s32.totalorder %v4633_v2, 16  ;;  %v4715_v4 = vadd.f32 %v10805_v55, %v13266_v59  ;;  %v4914_v17 = vld [vmem:[#allocation2 + $0x50] sm:$0xff]  ;;  %v4915_v37 = vld [vmem:[#allocation2 + $0x58] sm:$0xff] }
 0x373   : > { %4896 = vst.msk [vmem:[#allocation2 + $0xf3] sm:$0xff] %vm14958_vm4, %v4852_v14  ;;  %vm14959_vm6 = vmmov %vm14945_vm1  ;;  %v4748_v36 = vmax.f32 %v4712_v45, 0.0  ;;  %v4714_v29 = vadd.f32 %v13266_v59, %v3979_v9  ;;  %v4916_v51 = vld [vmem:[#allocation2 + $0x60] sm:$0xff]  ;;  %v4917_v21 = vld [vmem:[#allocation2 + $0x68] sm:$0xff] }
 0x374   : > { %10848 = vmatmul.mubr.msk.f32.gmra.mrb[26].mxu1 %vm14959_vm6, %v4968_v58  ;;  %vm14098_vm5 = vmand %vm4528_vm13, %vm4492_vm12  ;;  %v4969_v0 = vld [vmem:[#allocation2 + $0xe1] sm:$0xff]  ;;  %v4970_v5 = vld [vmem:[#allocation2 + $0xe9] sm:$0xff]  ;;  %v4857_v47 = vsel %vm4670_vm7, %v4749_v15, 0.0  ;;  %v4751_v24 = vmax.f32 %v4715_v4, 0.0 }
 0x375   : > { %vm14110_vm8 = vmand %vm4527_vm3, %vm4491_vm9  ;;  %v4636_v61 = vsel %vm14098_vm5, %v4600_v8, %v14031_v26  ;;  %v4856_v40 = vsel %vm4669_vm2, %v4748_v36, 0.0  ;;  %v4750_v1 = vmax.f32 %v4714_v29, 0.0  ;;  %v4907_v26 = vld [vmem:[#allocation2 + $0x18] sm:$0xff]  ;;  %v4921_v63 = vld [vmem:[#allocation2 + $0x88] sm:$0xff] }
 0x376   : > { %vm14964_vm10 = vmmov %vm14945_vm1  ;;  %v4635_v38 = vsel %vm14110_vm8, %v4599_v54, %v14039_v33  ;;  %vm4672_vm15 = vcmp.lt.s32.totalorder %v4636_v61, 16  ;;  %v4912_v33 = vld [vmem:[#allocation2 + $0x40] sm:$0xff]  ;;  %v4919_v23 = vld [vmem:[#allocation2 + $0x78] sm:$0xff] }
 0x377   : > { %4899 = vst.msk [vmem:[#allocation2 + $0x10b] sm:$0xff] %vm14964_vm10, %v4855_v30  ;;  %vm14965_vm11 = vmmov %vm14945_vm1  ;;  %vm4671_vm3 = vcmp.lt.s32.totalorder %v4635_v38, 16  ;;  %v4859_v28 = vsel %vm4672_vm15, %v4751_v24, 0.0  ;;  %v4922_v43 = vld [vmem:[#allocation2 + $0x90] sm:$0xff]  ;;  %v4923_v48 = vld [vmem:[#allocation2 + $0x98] sm:$0xff] }
 0x378   : > { %4898 = vst.msk [vmem:[#allocation2 + $0x103] sm:$0xff] %vm14965_vm11, %v4854_v27  ;;  %vm14966_vm0 = vmmov %vm14945_vm1  ;;  %v4858_v44 = vsel %vm4671_vm3, %v4750_v1, 0.0  ;;  %v4924_v18 = vld [vmem:[#allocation2 + $0xa0] sm:$0xff]  ;;  %v4926_v14 = vld [vmem:[#allocation2 + $0xb0] sm:$0xff] }
 0x379   : > { %10850 = vmatprep.mubr.msk.f32.mxu1 %vm14966_vm0, %v4969_v0  ;;  %vm14967_vm12 = vmmov %vm14966_vm0  ;;  %v4927_v19 = vld [vmem:[#allocation2 + $0xb8] sm:$0xff]  ;;  %v4928_v34 = vld [vmem:[#allocation2 + $0xc0] sm:$0xff] }
 0x37a   : > { %10851 = vmatmul.mubr.msk.f32.gmra.mrb[28].mxu1 %vm14967_vm12, %v4970_v5  ;;  %vm14968_vm13 = vmmov %vm14966_vm0  ;;  %v4971_v56 = vld [vmem:[#allocation2 + $0xf1] sm:$0xff]  ;;  %v4972_v20 = vld [vmem:[#allocation2 + $0xf9] sm:$0xff] }
 0x37b   : > { %4901 = vst.msk [vmem:[#allocation2 + $0x11b] sm:$0xff] %vm14968_vm13, %v4857_v47  ;;  %vm14969_vm9 = vmmov %vm14966_vm0  ;;  %v4929_v58 = vld [vmem:[#allocation2 + $0xc8] sm:$0xff]  ;;  %v4930_v57 = vld [vmem:[#allocation2 + $0xd0] sm:$0xff] }
 0x37c   : > { %4900 = vst.msk [vmem:[#allocation2 + $0x113] sm:$0xff] %vm14969_vm9, %v4856_v40  ;;  %vm14970_vm4 = vmmov %vm14966_vm0  ;;  %v4931_v7 = vld [vmem:[#allocation2 + $0xd8] sm:$0xff]  ;;  %v4932_v8 = vld [vmem:[#allocation2 + $0xe0] sm:$0xff] }
 0x37d   : > { %10853 = vmatprep.mubr.msk.f32.mxu1 %vm14970_vm4, %v4971_v56  ;;  %vm14971_vm14 = vmmov %vm14966_vm0  ;;  %v4933_v10 = vld [vmem:[#allocation2 + $0xe8] sm:$0xff]  ;;  %v4934_v41 = vld [vmem:[#allocation2 + $0xf0] sm:$0xff] }
 0x37e   : > { %10854 = vmatmul.mubr.msk.f32.gmra.mrb[30].mxu1 %vm14971_vm14, %v4972_v20  ;;  %vm14972_vm1 = vmmov %vm14966_vm0  ;;  %v4935_v2 = vld [vmem:[#allocation2 + $0xf8] sm:$0xff]  ;;  %v5691_v50 = vld [vmem:[#allocation2 + $0x2] sm:$0xff] }
 0x37f   : > { %4903 = vst.msk [vmem:[#allocation2 + $0x12b] sm:$0xff] %vm14972_vm1, %v4859_v28  ;;  %v4973_v22 = vld [vmem:[#allocation2 + $0x101] sm:$0xff]  ;;  %v4974_v3 = vld [vmem:[#allocation2 + $0x109] sm:$0xff]  ;;  %vm14973_vm6 = vmmov %vm14966_vm0 }
 0x380   : > { %4902 = vst.msk [vmem:[#allocation2 + $0x123] sm:$0xff] %vm14973_vm6, %v4858_v44  ;;  %vm14974_vm5 = vmmov %vm14966_vm0  ;;  %v4936_v6 = vld [vmem:[#allocation2 + $0x100] sm:$0xff]  ;;  %v4937_v54 = vld [vmem:[#allocation2 + $0x108] sm:$0xff] }
 0x381   : > { %10856 = vmatprep.mubr.msk.f32.mxu1 %vm14974_vm5, %v4973_v22  ;;  %vm14975_vm8 = vmmov %vm14966_vm0  ;;  %v14188_v27 = vld [vmem:[%s14709_s3 + $0x10] sm:$0xf]  ;;  %v14199_v0 = vld [vmem:[#allocation2 + $0x1a] sm:$0xff] }
 0x382   : > { %10857 = vmatmul.mubr.msk.f32.gmra.mrb[32].mxu1 %vm14975_vm8, %v4974_v3  ;;  %vm14976_vm10 = vmmov %vm14966_vm0  ;;  %v14191_v45 = vld [vmem:[#allocation2 + $0x12] sm:$0xff]  ;;  %v14203_v5 = vld [vmem:[#allocation2 + $0x22] sm:$0xff] }
 0x383   : > { %v4975_v59 = vld [vmem:[#allocation2 + $0x111] sm:$0xff]  ;;  %v4976_v52 = vld [vmem:[#allocation2 + $0x119] sm:$0xff]  ;;  %vm14977_vm7 = vmmov %vm14966_vm0 }
 0x384   : > { %10859 = vmatprep.mubr.msk.f32.mxu1 %vm14976_vm10, %v4975_v59  ;;  %vm14978_vm11 = vmmov %vm14966_vm0  ;;  %v4938_v30 = vld [vmem:[#allocation2 + $0x110] sm:$0xff]  ;;  %v4939_v11 = vld [vmem:[#allocation2 + $0x118] sm:$0xff] }
 0x385   : > { %vm14979_vm2 = vmmov %vm14966_vm0  ;;  %vm14980_vm0 = vcmask 1043456   ;;  %v14207_v15 = vld [vmem:[#allocation2 + $0x2a] sm:$0xff]  ;;  %v14211_v61 = vld [vmem:[#allocation2 + $0x32] sm:$0xff] }
 0x386   : > { %10860 = vmatmul.mubr.msk.f32.gmra.mrb[34].mxu1 %vm14977_vm7, %v4976_v52  ;;  %vm14981_vm12 = vmmov %vm14972_vm1  ;;  %v14215_v36 = vld [vmem:[#allocation2 + $0x3a] sm:$0xff]  ;;  %v14219_v55 = vld [vmem:[#allocation2 + $0x42] sm:$0xff] }
 0x387   : > { %10864 = vmatprep.mubr.msk.f32.mxu1 %vm14978_vm11, %v4904_v62  ;;  %vm14982_vm13 = vmmov %vm14980_vm0  ;;  %v14223_v38 = vld [vmem:[#allocation2 + $0x4a] sm:$0xff]  ;;  %v14227_v47 = vld [vmem:[#allocation2 + $0x52] sm:$0xff] }
 0x388   : > { %vm14983_vm15 = vmmov %vm14972_vm1  ;;  %v5702_v4 = vld [vmem:[#allocation2 + $0x5a] sm:$0xff]  ;;  %v5703_v9 = vld [vmem:[#allocation2 + $0x62] sm:$0xff] }
 0x389   : > { %vm14984_vm9 = vmmov %vm14972_vm1  ;;  %v5704_v40 = vld [vmem:[#allocation2 + $0x6a] sm:$0xff]  ;;  %v5705_v29 = vld [vmem:[#allocation2 + $0x72] sm:$0xff] }
 0x38a   : > { %10865 = vmatmul.mubr.msk.f32.vlgmr.msra.gmra.mrb[0].mxu1 %vm14979_vm2, %v4905_v13  ;;  %vm14985_vm3 = vmmov %vm14972_vm1  ;;  %v5706_v56 = vld [vmem:[#allocation2 + $0x7a] sm:$0xff]  ;;  %v5707_v20 = vld [vmem:[#allocation2 + $0x82] sm:$0xff] }
 0x38b   : > { %10919 = vmatpush3.msk.msra.mxu1 %vm14980_vm0, %v11969_v16  ;;  %10867 = vmatprep.mubr.msk.f32.mxu1 %vm14981_vm12, %v4906_v31  ;;  %vm14986_vm4 = vmmov %vm14972_vm1  ;;  %v5708_v24 = vld [vmem:[#allocation2 + $0x8a] sm:$0xff]  ;;  %v5709_v1 = vld [vmem:[#allocation2 + $0x92] sm:$0xff] }
 0x38c   : > { %10974 = vmatprep.subr.msk.mxu1 %vm14982_vm13, %v14141_v60  ;;  %vm14987_vm14 = vmmov %vm14972_vm1  ;;  %v5710_v28 = vld [vmem:[#allocation2 + $0x9a] sm:$0xff]  ;;  %v5711_v44 = vld [vmem:[#allocation2 + $0xa2] sm:$0xff] }
 0x38d   : > { %vm14988_vm6 = vmmov %vm14972_vm1  ;;  %v5712_v22 = vld [vmem:[#allocation2 + $0xaa] sm:$0xff]  ;;  %v5713_v3 = vld [vmem:[#allocation2 + $0xb2] sm:$0xff] }
 0x38e   : > { %10868 = vmatmul.mubr.msk.f32.gmra.mrb[2].mxu1 %vm14983_vm15, %v4907_v26  ;;  %vm14989_vm5 = vmmov %vm14972_vm1  ;;  %v5714_v59 = vld [vmem:[#allocation2 + $0xba] sm:$0xff]  ;;  %v5715_v52 = vld [vmem:[#allocation2 + $0xc2] sm:$0xff] }
 0x38f   : > { %10870 = vmatprep.mubr.msk.f32.mxu1 %vm14984_vm9, %v4908_v42  ;;  %vm14990_vm8 = vmmov %vm14972_vm1  ;;  %v5716_v62 = vld [vmem:[#allocation2 + $0xca] sm:$0xff]  ;;  %v5717_v13 = vld [vmem:[#allocation2 + $0xd2] sm:$0xff] }
 0x390   : > { %vm14991_vm10 = vmmov %vm14972_vm1  ;;  %v5719_v31 = vld [vmem:[#allocation2 + $0xe2] sm:$0xff]  ;;  %v5720_v16 = vld [vmem:[#allocation2 + $0xea] sm:$0xff] }
 0x391   : > { %vm14992_vm7 = vmmov %vm14972_vm1  ;;  %v5721_v26 = vld [vmem:[#allocation2 + $0xf2] sm:$0xff]  ;;  %v5722_v42 = vld [vmem:[#allocation2 + $0xfa] sm:$0xff] }
 0x392   : > { %10871 = vmatmul.mubr.msk.f32.gmra.mrb[4].mxu1 %vm14985_vm3, %v4909_v35  ;;  %vm14993_vm11 = vmmov %vm14972_vm1  ;;  %v5723_v35 = vld [vmem:[#allocation2 + $0x102] sm:$0xff] }
 0x393   : > { %10873 = vmatprep.mubr.msk.f32.mxu1 %vm14986_vm4, %v4910_v46  ;;  %vm14994_vm2 = vmmov %vm14972_vm1  ;;  %v5724_v46 = vld [vmem:[#allocation2 + $0x10a] sm:$0xff] }
 0x394   : > { %vm14995_vm0 = vmmov %vm14972_vm1 }
 0x395   : > { %vm14996_vm12 = vmmov %vm14995_vm0 }
 0x396   : > { %10874 = vmatmul.mubr.msk.f32.gmra.mrb[6].mxu1 %vm14987_vm14, %v4911_v49  ;;  %vm14997_vm13 = vmmov %vm14995_vm0  ;;  %v5725_v49 = vld [vmem:[#allocation2 + $0x112] sm:$0xff] }
 0x397   : > { %10876 = vmatprep.mubr.msk.f32.mxu1 %vm14972_vm1, %v4912_v33  ;;  %vm14998_vm15 = vmmov %vm14995_vm0  ;;  %v5726_v33 = vld [vmem:[#allocation2 + $0x11a] sm:$0xff] }
 0x398   : > { %vm14999_vm9 = vmmov %vm14995_vm0 }
 0x399   : > { %vm15000_vm3 = vmmov %vm14995_vm0 }
 0x39a   : > { %10877 = vmatmul.mubr.msk.f32.gmra.mrb[8].mxu1 %vm14988_vm6, %v4913_v32  ;;  %vm15001_vm4 = vmmov %vm14995_vm0  ;;  %v9481_v32 = vld [vmem:[%s14709_s3 + $0x14] sm:$0xf] }
 0x39b   : > { %10879 = vmatprep.mubr.msk.f32.mxu1 %vm14989_vm5, %v4914_v17  ;;  %vm15002_vm14 = vmmov %vm14995_vm0  ;;  %v6155_v17 = vld [vmem:[#allocation2 + $0x122] sm:$0xff] }
 0x39c   : > { %vm15003_vm1 = vmmov %vm14995_vm0 }
 0x39d   : > { %vm15004_vm6 = vmmov %vm14995_vm0 }
 0x39e   : > { %10880 = vmatmul.mubr.msk.f32.gmra.mrb[10].mxu1 %vm14990_vm8, %v4915_v37  ;;  %vm15005_vm5 = vmmov %vm14995_vm0  ;;  %v6156_v37 = vld [vmem:[#allocation2 + $0x12a] sm:$0xff] }
 0x39f   : > { %10882 = vmatprep.mubr.msk.f32.mxu1 %vm14991_vm10, %v4916_v51  ;;  %vm15006_vm8 = vmmov %vm14995_vm0  ;;  %v6551_v51 = vld [vmem:[#allocation2 + $0x13] sm:$0xff] }
 0x3a0   : > { %vm15007_vm10 = vmmov %vm14995_vm0 }
 0x3a2   : > { %10883 = vmatmul.mubr.msk.f32.gmra.mrb[12].mxu1 %vm14992_vm7, %v4917_v21  ;;  %vm15008_vm7 = vmmov %vm14995_vm0  ;;  %v6552_v21 = vld [vmem:[#allocation2 + $0x1b] sm:$0xff] }
 0x3a3   : > { %10885 = vmatprep.mubr.msk.f32.mxu1 %vm14993_vm11, %v4918_v12  ;;  %vm15009_vm11 = vmmov %vm14995_vm0  ;;  %v14311_v12 = vld [vmem:[%s14709_s3 + $0x18] sm:$0xf] }
 0x3a6   : > { %10886 = vmatmul.mubr.msk.f32.gmra.mrb[14].mxu1 %vm14994_vm2, %v4919_v23  ;;  %vm15010_vm2 = vmmov %vm14995_vm0  ;;  %v6553_v23 = vld [vmem:[#allocation2 + $0x23] sm:$0xff] }
 0x3a7   : > { %10888 = vmatprep.mubr.msk.f32.mxu1 %vm14995_vm0, %v4920_v53  ;;  %v6554_v53 = vld [vmem:[#allocation2 + $0x2b] sm:$0xff] }
 0x3aa   : > { %10889 = vmatmul.mubr.msk.f32.gmra.mrb[16].mxu1 %vm14996_vm12, %v4921_v63  ;;  %vm15011_vm12 = vmmov %vm14995_vm0  ;;  %v6555_v63 = vld [vmem:[#allocation2 + $0x33] sm:$0xff] }
 0x3ab   : > { %10891 = vmatprep.mubr.msk.f32.mxu1 %vm14997_vm13, %v4922_v43  ;;  %vm15012_vm13 = vmmov %vm14995_vm0  ;;  %v6556_v43 = vld [vmem:[#allocation2 + $0x3b] sm:$0xff] }
 0x3ae   : > { %10892 = vmatmul.mubr.msk.f32.gmra.mrb[18].mxu1 %vm14998_vm15, %v4923_v48  ;;  %vm15013_vm15 = vmmov %vm14995_vm0  ;;  %v6557_v48 = vld [vmem:[#allocation2 + $0x43] sm:$0xff] }
 0x3af   : > { %10894 = vmatprep.mubr.msk.f32.mxu1 %vm14999_vm9, %v4924_v18  ;;  %vm15014_vm9 = vmmov %vm14995_vm0  ;;  %v6558_v18 = vld [vmem:[#allocation2 + $0x4b] sm:$0xff] }
 0x3b2   : > { %10895 = vmatmul.mubr.msk.f32.gmra.mrb[20].mxu1 %vm15000_vm3, %v4925_v39  ;;  %vm15015_vm3 = vmmov %vm14995_vm0  ;;  %v6559_v39 = vld [vmem:[#allocation2 + $0x53] sm:$0xff] }
 0x3b3   : > { %10897 = vmatprep.mubr.msk.f32.mxu1 %vm15001_vm4, %v4926_v14  ;;  %vm15016_vm4 = vcmask 1043456   ;;  %v6560_v14 = vld [vmem:[#allocation2 + $0x5b] sm:$0xff] }
 0x3b6   : > { %10898 = vmatmul.mubr.msk.f32.gmra.mrb[22].mxu1 %vm15002_vm14, %v4927_v19  ;;  %vm15017_vm14 = vmmov %vm14995_vm0  ;;  %v6561_v19 = vld [vmem:[#allocation2 + $0x63] sm:$0xff] }
 0x3b7   : > { %10900 = vmatprep.mubr.msk.f32.mxu1 %vm15003_vm1, %v4928_v34  ;;  %vm15018_vm1 = vmmov %vm15016_vm4  ;;  %v6562_v34 = vld [vmem:[#allocation2 + $0x6b] sm:$0xff] }
 0x3ba   : > { %10901 = vmatmul.mubr.msk.f32.gmra.mrb[24].mxu1 %vm15004_vm6, %v4929_v58  ;;  %vm15019_vm6 = vmmov %vm14995_vm0  ;;  %v6563_v58 = vld [vmem:[#allocation2 + $0x73] sm:$0xff] }
 0x3bb   : > { %10903 = vmatprep.mubr.msk.f32.mxu1 %vm15005_vm5, %v4930_v57  ;;  %vm15020_vm5 = vmmov %vm14995_vm0  ;;  %v6564_v57 = vld [vmem:[#allocation2 + $0x7b] sm:$0xff] }
 0x3be   : > { %10904 = vmatmul.mubr.msk.f32.gmra.mrb[26].mxu1 %vm15006_vm8, %v4931_v7  ;;  %vm15021_vm8 = vmmov %vm14995_vm0  ;;  %v6565_v7 = vld [vmem:[#allocation2 + $0x83] sm:$0xff] }
 0x3bf   : > { %10906 = vmatprep.mubr.msk.f32.mxu1 %vm15007_vm10, %v4932_v8  ;;  %vm15022_vm10 = vmmov %vm14995_vm0  ;;  %v6566_v8 = vld [vmem:[#allocation2 + $0x8b] sm:$0xff] }
 0x3c2   : > { %10907 = vmatmul.mubr.msk.f32.gmra.mrb[28].mxu1 %vm15008_vm7, %v4933_v10  ;;  %vm15023_vm7 = vmmov %vm14995_vm0  ;;  %v6567_v10 = vld [vmem:[#allocation2 + $0x93] sm:$0xff] }
 0x3c3   : > { %10909 = vmatprep.mubr.msk.f32.mxu1 %vm15009_vm11, %v4934_v41  ;;  %vm15024_vm11 = vmmov %vm14995_vm0  ;;  %v6568_v41 = vld [vmem:[#allocation2 + $0x9b] sm:$0xff] }
 0x3c6   : > { %10910 = vmatmul.mubr.msk.f32.gmra.mrb[30].mxu1 %vm15010_vm2, %v4935_v2  ;;  %vm15025_vm2 = vmmov %vm14995_vm0  ;;  %v6569_v2 = vld [vmem:[#allocation2 + $0xa3] sm:$0xff] }
 0x3c7   : > { %10912 = vmatprep.mubr.msk.f32.mxu1 %vm14995_vm0, %v4936_v6  ;;  %v6570_v6 = vld [vmem:[#allocation2 + $0xab] sm:$0xff] }
 0x3ca   : > { %10913 = vmatmul.mubr.msk.f32.gmra.mrb[32].mxu1 %vm15011_vm12, %v4937_v54  ;;  %vm15026_vm12 = vmmov %vm14995_vm0  ;;  %v6571_v54 = vld [vmem:[#allocation2 + $0xb3] sm:$0xff] }
 0x3cb   : > { %10915 = vmatprep.mubr.msk.f32.mxu1 %vm15012_vm13, %v4938_v30  ;;  %vm15027_vm13 = vmmov %vm14995_vm0  ;;  %v6572_v30 = vld [vmem:[#allocation2 + $0xbb] sm:$0xff] }
 0x3ce   : > { %10916 = vmatmul.mubr.msk.f32.gmra.mrb[34].mxu1 %vm15013_vm15, %v4939_v11  ;;  %vm15028_vm15 = vmmov %vm14995_vm0  ;;  %v6574_v11 = vld [vmem:[#allocation2 + $0xcb] sm:$0xff] }
 0x3cf   : > { %10920 = vmatprep.mubr.msk.f32.mxu1 %vm15014_vm9, %v5691_v50  ;;  %vm15029_vm9 = vmmov %vm14995_vm0  ;;  %v6573_v50 = vld [vmem:[#allocation2 + $0xc3] sm:$0xff] }
 0x3d2   : > { %10921 = vmatmul.mubr.msk.f32.vlgmr.msra.gmra.mrb[0].mxu1 %vm15015_vm3, %v5692_v25  ;;  %vm15030_vm3 = vmmov %vm14995_vm0  ;;  %v6575_v25 = vld [vmem:[#allocation2 + $0xd3] sm:$0xff] }
 0x3d3   : > { %10975 = vmatpush3.msk.msra.mxu1 %vm15016_vm4, %v14141_v60  ;;  %10923 = vmatprep.mubr.msk.f32.mxu1 %vm15017_vm14, %v14191_v45  ;;  %vm15031_vm4 = vmmov %vm14995_vm0  ;;  %v5718_v60 = vld [vmem:[#allocation2 + $0xda] sm:$0xff] }
 0x3d4   : > { %11030 = vmatprep.subr.msk.mxu1 %vm15018_vm1, %v14188_v27  ;;  %vm15032_vm14 = vmmov %vm14995_vm0 }
 0x3d5   : > { %vm15033_vm1 = vmmov %vm14995_vm0 }
 0x3d6   : > { %10924 = vmatmul.mubr.msk.f32.gmra.mrb[2].mxu1 %vm15019_vm6, %v14199_v0  ;;  %vm15034_vm6 = vmmov %vm14995_vm0 }
 0x3d7   : > { %10926 = vmatprep.mubr.msk.f32.mxu1 %vm15020_vm5, %v14203_v5  ;;  %vm15035_vm5 = vmmov %vm14995_vm0 }
 0x3da   : > { %10927 = vmatmul.mubr.msk.f32.gmra.mrb[4].mxu1 %vm15021_vm8, %v14207_v15  ;;  %vm15036_vm8 = vmmov %vm14995_vm0 }
 0x3db   : > { %10929 = vmatprep.mubr.msk.f32.mxu1 %vm15022_vm10, %v14211_v61  ;;  %vm15037_vm10 = vmmov %vm14995_vm0 }
 0x3de   : > { %10930 = vmatmul.mubr.msk.f32.gmra.mrb[6].mxu1 %vm15023_vm7, %v14215_v36  ;;  %vm15038_vm7 = vmmov %vm14995_vm0 }
 0x3df   : > { %10932 = vmatprep.mubr.msk.f32.mxu1 %vm15024_vm11, %v14219_v55  ;;  %vm15039_vm11 = vmmov %vm14995_vm0 }
 0x3e2   : > { %10933 = vmatmul.mubr.msk.f32.gmra.mrb[8].mxu1 %vm15025_vm2, %v14223_v38  ;;  %vm15040_vm2 = vmmov %vm14995_vm0 }
 0x3e3   : > { %10935 = vmatprep.mubr.msk.f32.mxu1 %vm14995_vm0, %v14227_v47 }
 0x3e6   : > { %10936 = vmatmul.mubr.msk.f32.gmra.mrb[10].mxu1 %vm15026_vm12, %v5702_v4  ;;  %vm15041_vm12 = vmmov %vm14995_vm0 }
 0x3e7   : > { %10938 = vmatprep.mubr.msk.f32.mxu1 %vm15027_vm13, %v5703_v9  ;;  %vm15042_vm13 = vmmov %vm14995_vm0 }
 0x3ea   : > { %10939 = vmatmul.mubr.msk.f32.gmra.mrb[12].mxu1 %vm15028_vm15, %v5704_v40  ;;  %vm15043_vm15 = vmmov %vm14995_vm0 }
 0x3eb   : > { %10941 = vmatprep.mubr.msk.f32.mxu1 %vm15029_vm9, %v5705_v29  ;;  %vm15044_vm9 = vmmov %vm14995_vm0 }
 0x3ee   : > { %10942 = vmatmul.mubr.msk.f32.gmra.mrb[14].mxu1 %vm15030_vm3, %v5706_v56  ;;  %vm15045_vm3 = vmmov %vm14995_vm0 }
 0x3ef   : > { %10944 = vmatprep.mubr.msk.f32.mxu1 %vm15031_vm4, %v5707_v20  ;;  %vm15046_vm4 = vmmov %vm14995_vm0 }
 0x3f2   : > { %10945 = vmatmul.mubr.msk.f32.gmra.mrb[16].mxu1 %vm15032_vm14, %v5708_v24  ;;  %vm15047_vm14 = vmmov %vm14995_vm0 }
 0x3f3   : > { %10947 = vmatprep.mubr.msk.f32.mxu1 %vm15033_vm1, %v5709_v1  ;;  %vm15048_vm1 = vmmov %vm14995_vm0 }
 0x3f6   : > { %10948 = vmatmul.mubr.msk.f32.gmra.mrb[18].mxu1 %vm15034_vm6, %v5710_v28  ;;  %vm15049_vm6 = vmmov %vm14995_vm0 }
 0x3f7   : > { %10950 = vmatprep.mubr.msk.f32.mxu1 %vm15035_vm5, %v5711_v44  ;;  %vm15050_vm5 = vmmov %vm14995_vm0 }
 0x3fa   : > { %10951 = vmatmul.mubr.msk.f32.gmra.mrb[20].mxu1 %vm15036_vm8, %v5712_v22  ;;  %vm15051_vm8 = vmmov %vm14995_vm0 }
 0x3fb   : > { %10953 = vmatprep.mubr.msk.f32.mxu1 %vm15037_vm10, %v5713_v3  ;;  %vm15052_vm10 = vcmask 1043456  }
 0x3fe   : > { %10954 = vmatmul.mubr.msk.f32.gmra.mrb[22].mxu1 %vm15038_vm7, %v5714_v59  ;;  %vm15053_vm7 = vmmov %vm14995_vm0 }
 0x3ff   : > { %10956 = vmatprep.mubr.msk.f32.mxu1 %vm15039_vm11, %v5715_v52  ;;  %vm15054_vm11 = vmmov %vm15052_vm10 }
 0x402   : > { %10957 = vmatmul.mubr.msk.f32.gmra.mrb[24].mxu1 %vm15040_vm2, %v5716_v62  ;;  %vm15055_vm2 = vmmov %vm14995_vm0 }
 0x403   : > { %10959 = vmatprep.mubr.msk.f32.mxu1 %vm14995_vm0, %v5717_v13 }
 0x406   : > { %10960 = vmatmul.mubr.msk.f32.gmra.mrb[26].mxu1 %vm15041_vm12, %v5718_v60  ;;  %vm15056_vm12 = vmmov %vm14995_vm0 }
 0x407   : > { %10962 = vmatprep.mubr.msk.f32.mxu1 %vm15042_vm13, %v5719_v31  ;;  %vm15057_vm13 = vmmov %vm14995_vm0 }
 0x40a   : > { %10963 = vmatmul.mubr.msk.f32.gmra.mrb[28].mxu1 %vm15043_vm15, %v5720_v16  ;;  %vm15058_vm15 = vmmov %vm14995_vm0 }
 0x40b   : > { %10965 = vmatprep.mubr.msk.f32.mxu1 %vm15044_vm9, %v5721_v26  ;;  %vm15059_vm9 = vmmov %vm14995_vm0 }
 0x40e   : > { %10966 = vmatmul.mubr.msk.f32.gmra.mrb[30].mxu1 %vm15045_vm3, %v5722_v42  ;;  %vm15060_vm3 = vmmov %vm14995_vm0 }
 0x40f   : > { %10968 = vmatprep.mubr.msk.f32.mxu1 %vm15046_vm4, %v5723_v35  ;;  %vm15061_vm4 = vmmov %vm14995_vm0 }
 0x412   : > { %10969 = vmatmul.mubr.msk.f32.gmra.mrb[32].mxu1 %vm15047_vm14, %v5724_v46  ;;  %vm15062_vm14 = vmmov %vm14995_vm0 }
 0x413   : > { %10971 = vmatprep.mubr.msk.f32.mxu1 %vm15048_vm1, %v5725_v49  ;;  %vm15063_vm1 = vmmov %vm14995_vm0 }
 0x416   : > { %10972 = vmatmul.mubr.msk.f32.gmra.mrb[34].mxu1 %vm15049_vm6, %v5726_v33  ;;  %vm15064_vm6 = vmmov %vm14995_vm0 }
 0x417   : > { %10976 = vmatprep.mubr.msk.f32.mxu1 %vm15050_vm5, %v14191_v45  ;;  %vm15065_vm5 = vmmov %vm14995_vm0  ;;  %v6577_v45 = vld [vmem:[#allocation2 + $0xe3] sm:$0xff] }
 0x41a   : > { %10977 = vmatmul.mubr.msk.f32.vlgmr.msra.gmra.mrb[0].mxu1 %vm15051_vm8, %v14199_v0  ;;  %vm15066_vm8 = vmmov %vm14995_vm0  ;;  %v6578_v0 = vld [vmem:[#allocation2 + $0xeb] sm:$0xff] }
 0x41b   : > { %11031 = vmatpush3.msk.msra.mxu1 %vm15052_vm10, %v14188_v27  ;;  %10979 = vmatprep.mubr.msk.f32.mxu1 %vm15053_vm7, %v14203_v5  ;;  %vm15067_vm10 = vmmov %vm14995_vm0  ;;  %v6576_v27 = vld [vmem:[#allocation2 + $0xdb] sm:$0xff]  ;;  %v6579_v5 = vld [vmem:[#allocation2 + $0xf3] sm:$0xff] }
 0x41c   : > { %11086 = vmatprep.subr.msk.mxu1 %vm15054_vm11, %v9481_v32  ;;  %vm15068_vm7 = vmmov %vm14995_vm0 }
 0x41d   : > { %vm15069_vm11 = vmmov %vm14995_vm0 }
 0x41e   : > { %10980 = vmatmul.mubr.msk.f32.gmra.mrb[2].mxu1 %vm15055_vm2, %v14207_v15  ;;  %vm15070_vm2 = vmmov %vm14995_vm0  ;;  %v6580_v15 = vld [vmem:[#allocation2 + $0xfb] sm:$0xff] }
 0x41f   : > { %10982 = vmatprep.mubr.msk.f32.mxu1 %vm14995_vm0, %v14211_v61  ;;  %v6581_v61 = vld [vmem:[#allocation2 + $0x103] sm:$0xff] }
 0x422   : > { %10983 = vmatmul.mubr.msk.f32.gmra.mrb[4].mxu1 %vm15056_vm12, %v14215_v36  ;;  %vm15071_vm12 = vmmov %vm14995_vm0  ;;  %v6582_v36 = vld [vmem:[#allocation2 + $0x10b] sm:$0xff] }
 0x423   : > { %10985 = vmatprep.mubr.msk.f32.mxu1 %vm15057_vm13, %v14219_v55  ;;  %vm15072_vm13 = vmmov %vm14995_vm0  ;;  %v6583_v55 = vld [vmem:[#allocation2 + $0x113] sm:$0xff] }
 0x426   : > { %10986 = vmatmul.mubr.msk.f32.gmra.mrb[6].mxu1 %vm15058_vm15, %v14223_v38  ;;  %vm15073_vm15 = vmmov %vm14995_vm0  ;;  %v6584_v38 = vld [vmem:[#allocation2 + $0x11b] sm:$0xff] }
 0x427   : > { %10988 = vmatprep.mubr.msk.f32.mxu1 %vm15059_vm9, %v14227_v47  ;;  %vm15074_vm9 = vmmov %vm14995_vm0  ;;  %v6585_v47 = vld [vmem:[#allocation2 + $0x123] sm:$0xff] }
 0x42a   : > { %10989 = vmatmul.mubr.msk.f32.gmra.mrb[8].mxu1 %vm15060_vm3, %v5702_v4  ;;  %vm15075_vm3 = vmmov %vm14995_vm0  ;;  %v6586_v4 = vld [vmem:[#allocation2 + $0x12b] sm:$0xff] }
 0x42b   : > { %10991 = vmatprep.mubr.msk.f32.mxu1 %vm15061_vm4, %v5703_v9  ;;  %vm15076_vm4 = vmmov %vm14995_vm0  ;;  %v6981_v9 = vld [vmem:[#allocation2 + $0x14] sm:$0xff] }
 0x42e   : > { %10992 = vmatmul.mubr.msk.f32.gmra.mrb[10].mxu1 %vm15062_vm14, %v5704_v40  ;;  %vm15077_vm14 = vmmov %vm14995_vm0  ;;  %v6982_v40 = vld [vmem:[#allocation2 + $0x1c] sm:$0xff] }
 0x42f   : > { %10994 = vmatprep.mubr.msk.f32.mxu1 %vm15063_vm1, %v5705_v29  ;;  %vm15078_vm1 = vmmov %vm14995_vm0  ;;  %v14355_v29 = vld [vmem:[%s14709_s3 + $0x1c] sm:$0xf] }
 0x432   : > { %10995 = vmatmul.mubr.msk.f32.gmra.mrb[12].mxu1 %vm15064_vm6, %v5706_v56  ;;  %vm15079_vm6 = vmmov %vm14995_vm0  ;;  %v14358_v56 = vld [vmem:[#allocation2 + $0x24] sm:$0xff] }
 0x433   : > { %10997 = vmatprep.mubr.msk.f32.mxu1 %vm15065_vm5, %v5707_v20  ;;  %vm15080_vm5 = vmmov %vm14995_vm0  ;;  %v14366_v20 = vld [vmem:[#allocation2 + $0x2c] sm:$0xff] }
 0x436   : > { %10998 = vmatmul.mubr.msk.f32.gmra.mrb[14].mxu1 %vm15066_vm8, %v5708_v24  ;;  %vm15081_vm8 = vmmov %vm14995_vm0  ;;  %v14370_v24 = vld [vmem:[#allocation2 + $0x34] sm:$0xff] }
 0x437   : > { %11000 = vmatprep.mubr.msk.f32.mxu1 %vm15067_vm10, %v5709_v1  ;;  %vm15082_vm10 = vmmov %vm14995_vm0  ;;  %v14374_v1 = vld [vmem:[#allocation2 + $0x3c] sm:$0xff] }
 0x43a   : > { %11001 = vmatmul.mubr.msk.f32.gmra.mrb[16].mxu1 %vm15068_vm7, %v5710_v28  ;;  %vm15083_vm7 = vmmov %vm14995_vm0  ;;  %v14378_v28 = vld [vmem:[#allocation2 + $0x44] sm:$0xff] }
 0x43b   : > { %11003 = vmatprep.mubr.msk.f32.mxu1 %vm15069_vm11, %v5711_v44  ;;  %vm15084_vm11 = vmmov %vm14995_vm0  ;;  %v15130_v44 = vmov 0.0  }
 0x43e   : > { %11004 = vmatmul.mubr.msk.f32.gmra.mrb[18].mxu1 %vm15070_vm2, %v5712_v22  ;;  %vm15085_vm2 = vmmov %vm14995_vm0  ;;  %v14383_v22 = vld [vmem:[#allocation2 + $0x4c] sm:$0xff] }
 0x43f   : > { %11006 = vmatprep.mubr.msk.f32.mxu1 %vm14995_vm0, %v5713_v3  ;;  %v14387_v3 = vld [vmem:[#allocation2 + $0x54] sm:$0xff] }
 0x442   : > { %11007 = vmatmul.mubr.msk.f32.gmra.mrb[20].mxu1 %vm15071_vm12, %v5714_v59  ;;  %vm15086_vm12 = vmmov %vm14995_vm0  ;;  %v14391_v59 = vld [vmem:[#allocation2 + $0x5c] sm:$0xff] }
 0x443   : > { %11009 = vmatprep.mubr.msk.f32.mxu1 %vm15072_vm13, %v5715_v52  ;;  %vm15087_vm13 = vcmask 1043456   ;;  %v14395_v52 = vld [vmem:[#allocation2 + $0x64] sm:$0xff] }
 0x446   : > { %11010 = vmatmul.mubr.msk.f32.gmra.mrb[22].mxu1 %vm15073_vm15, %v5716_v62  ;;  %vm15088_vm15 = vmmov %vm14995_vm0  ;;  %v6992_v62 = vld [vmem:[#allocation2 + $0x6c] sm:$0xff] }
 0x447   : > { %11012 = vmatprep.mubr.msk.f32.mxu1 %vm15074_vm9, %v5717_v13  ;;  %vm15089_vm9 = vmmov %vm15087_vm13  ;;  %v6993_v13 = vld [vmem:[#allocation2 + $0x74] sm:$0xff] }
 0x44a   : > { %11013 = vmatmul.mubr.msk.f32.gmra.mrb[24].mxu1 %vm15075_vm3, %v5718_v60  ;;  %vm15090_vm3 = vmmov %vm14995_vm0  ;;  %v6994_v60 = vld [vmem:[#allocation2 + $0x7c] sm:$0xff] }
 0x44b   : > { %11015 = vmatprep.mubr.msk.f32.mxu1 %vm15076_vm4, %v5719_v31  ;;  %vm15091_vm4 = vmmov %vm14995_vm0  ;;  %v6995_v31 = vld [vmem:[#allocation2 + $0x84] sm:$0xff] }
 0x44e   : > { %11016 = vmatmul.mubr.msk.f32.gmra.mrb[26].mxu1 %vm15077_vm14, %v5720_v16  ;;  %vm15092_vm14 = vmmov %vm14995_vm0  ;;  %v6996_v16 = vld [vmem:[#allocation2 + $0x8c] sm:$0xff] }
 0x44f   : > { %11018 = vmatprep.mubr.msk.f32.mxu1 %vm15078_vm1, %v5721_v26  ;;  %vm15093_vm1 = vmmov %vm14995_vm0  ;;  %v6997_v26 = vld [vmem:[#allocation2 + $0x94] sm:$0xff] }
 0x452   : > { %11019 = vmatmul.mubr.msk.f32.gmra.mrb[28].mxu1 %vm15079_vm6, %v5722_v42  ;;  %vm15094_vm6 = vmmov %vm14995_vm0  ;;  %v6998_v42 = vld [vmem:[#allocation2 + $0x9c] sm:$0xff] }
 0x453   : > { %11021 = vmatprep.mubr.msk.f32.mxu1 %vm15080_vm5, %v5723_v35  ;;  %vm15095_vm5 = vmmov %vm14995_vm0  ;;  %v6999_v35 = vld [vmem:[#allocation2 + $0xa4] sm:$0xff] }
 0x456   : > { %11022 = vmatmul.mubr.msk.f32.gmra.mrb[30].mxu1 %vm15081_vm8, %v5724_v46  ;;  %vm15096_vm8 = vmmov %vm14995_vm0  ;;  %v7000_v46 = vld [vmem:[#allocation2 + $0xac] sm:$0xff] }
 0x457   : > { %11024 = vmatprep.mubr.msk.f32.mxu1 %vm15082_vm10, %v5725_v49  ;;  %vm15097_vm10 = vmmov %vm14995_vm0  ;;  %v7001_v49 = vld [vmem:[#allocation2 + $0xb4] sm:$0xff] }
 0x45a   : > { %11025 = vmatmul.mubr.msk.f32.gmra.mrb[32].mxu1 %vm15083_vm7, %v5726_v33  ;;  %vm15098_vm7 = vmmov %vm14995_vm0  ;;  %v7002_v33 = vld [vmem:[#allocation2 + $0xbc] sm:$0xff] }
 0x45b   : > { %11027 = vmatprep.mubr.msk.f32.mxu1 %vm15084_vm11, %v6155_v17  ;;  %vm15099_vm11 = vmmov %vm14995_vm0  ;;  %v7004_v17 = vld [vmem:[#allocation2 + $0xcc] sm:$0xff] }
 0x45e   : > { %11028 = vmatmul.mubr.msk.f32.gmra.mrb[34].mxu1 %vm15085_vm2, %v6156_v37  ;;  %vm15100_vm2 = vmmov %vm14995_vm0  ;;  %v7005_v37 = vld [vmem:[#allocation2 + $0xd4] sm:$0xff] }
 0x45f   : > { %11032 = vmatprep.mubr.msk.f32.mxu1 %vm14995_vm0, %v6551_v51  ;;  %v7006_v51 = vld [vmem:[#allocation2 + $0xdc] sm:$0xff] }
 0x462   : > { %11033 = vmatmul.mubr.msk.f32.vlgmr.msra.gmra.mrb[0].mxu1 %vm15086_vm12, %v6552_v21  ;;  %vm15101_vm12 = vmmov %vm14995_vm0  ;;  %v7007_v21 = vld [vmem:[#allocation2 + $0xe4] sm:$0xff] }
 0x463   : > { %11087 = vmatpush3.msk.msra.mxu1 %vm15087_vm13, %v9481_v32  ;;  %11035 = vmatprep.mubr.msk.f32.mxu1 %vm15088_vm15, %v6553_v23  ;;  %vm15102_vm13 = vmmov %vm14995_vm0  ;;  %v7003_v32 = vld [vmem:[#allocation2 + $0xc4] sm:$0xff]  ;;  %v7009_v23 = vld [vmem:[#allocation2 + $0xf4] sm:$0xff] }
 0x464   : > { %11142 = vmatprep.subr.msk.mxu1 %vm15089_vm9, %v14311_v12  ;;  %vm15103_vm15 = vmmov %vm14995_vm0 }
 0x465   : > { %vm15104_vm9 = vmmov %vm14995_vm0 }
 0x466   : > { %11036 = vmatmul.mubr.msk.f32.gmra.mrb[2].mxu1 %vm15090_vm3, %v6554_v53  ;;  %vm15105_vm3 = vmmov %vm14995_vm0  ;;  %v7010_v53 = vld [vmem:[#allocation2 + $0xfc] sm:$0xff] }
 0x467   : > { %11038 = vmatprep.mubr.msk.f32.mxu1 %vm15091_vm4, %v6555_v63  ;;  %vm15106_vm4 = vmmov %vm14995_vm0  ;;  %v7011_v63 = vld [vmem:[#allocation2 + $0x104] sm:$0xff] }
 0x46a   : > { %11039 = vmatmul.mubr.msk.f32.gmra.mrb[4].mxu1 %vm15092_vm14, %v6556_v43  ;;  %vm15107_vm14 = vmmov %vm14995_vm0  ;;  %v7012_v43 = vld [vmem:[#allocation2 + $0x10c] sm:$0xff] }
 0x46b   : > { %11041 = vmatprep.mubr.msk.f32.mxu1 %vm15093_vm1, %v6557_v48  ;;  %vm15108_vm1 = vmmov %vm14995_vm0  ;;  %v7013_v48 = vld [vmem:[#allocation2 + $0x114] sm:$0xff] }
 0x46e   : > { %11042 = vmatmul.mubr.msk.f32.gmra.mrb[6].mxu1 %vm15094_vm6, %v6558_v18  ;;  %vm15109_vm6 = vmmov %vm14995_vm0  ;;  %v7014_v18 = vld [vmem:[#allocation2 + $0x11c] sm:$0xff] }
 0x46f   : > { %11044 = vmatprep.mubr.msk.f32.mxu1 %vm15095_vm5, %v6559_v39  ;;  %vm15110_vm5 = vmmov %vm14995_vm0  ;;  %v7015_v39 = vld [vmem:[#allocation2 + $0x124] sm:$0xff] }
 0x472   : > { %11045 = vmatmul.mubr.msk.f32.gmra.mrb[8].mxu1 %vm15096_vm8, %v6560_v14  ;;  %vm15111_vm8 = vmmov %vm14995_vm0  ;;  %v7016_v14 = vld [vmem:[#allocation2 + $0x12c] sm:$0xff] }
 0x473   : > { %11047 = vmatprep.mubr.msk.f32.mxu1 %vm15097_vm10, %v6561_v19  ;;  %vm15112_vm10 = vmmov %vm14995_vm0  ;;  %v9595_v19 = vld [vmem:[%s14709_s3 + $0x20] sm:$0xf] }
 0x476   : > { %11048 = vmatmul.mubr.msk.f32.gmra.mrb[10].mxu1 %vm15098_vm7, %v6562_v34  ;;  %vm15113_vm7 = vmmov %vm14995_vm0  ;;  %v7445_v34 = vld [vmem:[#allocation2 + $0x134] sm:$0xff] }
 0x477   : > { %11050 = vmatprep.mubr.msk.f32.mxu1 %vm15099_vm11, %v6563_v58  ;;  %vm15114_vm11 = vmmov %vm14995_vm0 }
 0x47a   : > { %11051 = vmatmul.mubr.msk.f32.gmra.mrb[12].mxu1 %vm15100_vm2, %v6564_v57  ;;  %vm15115_vm2 = vmmov %vm14995_vm0  ;;  %v7841_v57 = vld [vmem:[#allocation2 + $0x25] sm:$0xff] }
 0x47b   : > { %11053 = vmatprep.mubr.msk.f32.mxu1 %vm14995_vm0, %v6565_v7  ;;  %v7842_v7 = vld [vmem:[#allocation2 + $0x2d] sm:$0xff] }
 0x47e   : > { %11054 = vmatmul.mubr.msk.f32.gmra.mrb[14].mxu1 %vm15101_vm12, %v6566_v8  ;;  %vm15116_vm12 = vmmov %vm14995_vm0  ;;  %v7843_v8 = vld [vmem:[#allocation2 + $0x35] sm:$0xff] }
 0x47f   : > { %11056 = vmatprep.mubr.msk.f32.mxu1 %vm15102_vm13, %v6567_v10  ;;  %vm15117_vm13 = vmmov %vm14995_vm0  ;;  %v7844_v10 = vld [vmem:[#allocation2 + $0x3d] sm:$0xff] }
 0x482   : > { %11057 = vmatmul.mubr.msk.f32.gmra.mrb[16].mxu1 %vm15103_vm15, %v6568_v41  ;;  %vm15118_vm15 = vmmov %vm14995_vm0  ;;  %v7845_v41 = vld [vmem:[#allocation2 + $0x45] sm:$0xff] }
 0x483   : > { %11059 = vmatprep.mubr.msk.f32.mxu1 %vm15104_vm9, %v6569_v2  ;;  %vm15119_vm9 = vmmov %vm14995_vm0  ;;  %v7846_v2 = vld [vmem:[#allocation2 + $0x4d] sm:$0xff] }
 0x486   : > { %11060 = vmatmul.mubr.msk.f32.gmra.mrb[18].mxu1 %vm15105_vm3, %v6570_v6  ;;  %vm15120_vm3 = vmmov %vm14995_vm0  ;;  %v7847_v6 = vld [vmem:[#allocation2 + $0x55] sm:$0xff] }
 0x487   : > { %11062 = vmatprep.mubr.msk.f32.mxu1 %vm15106_vm4, %v6571_v54  ;;  %vm15121_vm4 = vmmov %vm14995_vm0  ;;  %v7848_v54 = vld [vmem:[#allocation2 + $0x5d] sm:$0xff] }
 0x48a   : > { %11063 = vmatmul.mubr.msk.f32.gmra.mrb[20].mxu1 %vm15107_vm14, %v6572_v30  ;;  %vm15122_vm14 = vmmov %vm14995_vm0  ;;  %v7849_v30 = vld [vmem:[#allocation2 + $0x65] sm:$0xff] }
 0x48b   : > { %11065 = vmatprep.mubr.msk.f32.mxu1 %vm15108_vm1, %v6573_v50  ;;  %vm15123_vm1 = vcmask 1043456   ;;  %v7850_v50 = vld [vmem:[#allocation2 + $0x6d] sm:$0xff] }
 0x48e   : > { %11066 = vmatmul.mubr.msk.f32.gmra.mrb[22].mxu1 %vm15109_vm6, %v6574_v11  ;;  %vm15124_vm6 = vmmov %vm14995_vm0  ;;  %v7851_v11 = vld [vmem:[#allocation2 + $0x75] sm:$0xff] }
 0x48f   : > { %11068 = vmatprep.mubr.msk.f32.mxu1 %vm15110_vm5, %v6575_v25  ;;  %vm15125_vm5 = vmmov %vm15123_vm1  ;;  %v7852_v25 = vld [vmem:[#allocation2 + $0x7d] sm:$0xff] }
 0x492   : > { %11069 = vmatmul.mubr.msk.f32.gmra.mrb[24].mxu1 %vm15111_vm8, %v6576_v27  ;;  %vm15126_vm8 = vmmov %vm14995_vm0  ;;  %v7853_v27 = vld [vmem:[#allocation2 + $0x85] sm:$0xff] }
 0x493   : > { %11071 = vmatprep.mubr.msk.f32.mxu1 %vm15112_vm10, %v6577_v45  ;;  %vm15127_vm10 = vmmov %vm14995_vm0  ;;  %v7854_v45 = vld [vmem:[#allocation2 + $0x8d] sm:$0xff] }
 0x496   : > { %11072 = vmatmul.mubr.msk.f32.gmra.mrb[26].mxu1 %vm15113_vm7, %v6578_v0  ;;  %vm15128_vm7 = vmmov %vm14995_vm0  ;;  %v7855_v0 = vld [vmem:[#allocation2 + $0x95] sm:$0xff] }
 0x497   : > { %11074 = vmatprep.mubr.msk.f32.mxu1 %vm15114_vm11, %v6579_v5  ;;  %vm15129_vm11 = vmmov %vm14995_vm0  ;;  %v7856_v5 = vld [vmem:[#allocation2 + $0x9d] sm:$0xff] }
 0x49a   : > { %11075 = vmatmul.mubr.msk.f32.gmra.mrb[28].mxu1 %vm15115_vm2, %v6580_v15  ;;  %vm4866_vm2 = vcmask 28672   ;;  %v7857_v15 = vld [vmem:[#allocation2 + $0xa5] sm:$0xff] }
 0x49b   : > { %11077 = vmatprep.mubr.msk.f32.mxu1 %vm14995_vm0, %v6581_v61  ;;  %4867 = vst.msk [vmem:[#allocation2 + $0x143] sm:$0x1f] %vm4866_vm2, %v15130_v44  ;;  %vm15145_vm2 = vmmov %vm14995_vm0  ;;  %v7858_v61 = vld [vmem:[#allocation2 + $0xad] sm:$0xff]  ;;  %v7872_v44 = vld [vmem:[#allocation2 + $0x11d] sm:$0xff] }
 0x49e   : > { %11078 = vmatmul.mubr.msk.f32.gmra.mrb[30].mxu1 %vm15116_vm12, %v6582_v36  ;;  %vm15131_vm12 = vmmov %vm14995_vm0  ;;  %v7859_v36 = vld [vmem:[#allocation2 + $0xb5] sm:$0xff] }
 0x49f   : > { %11080 = vmatprep.mubr.msk.f32.mxu1 %vm15117_vm13, %v6583_v55  ;;  %vm15132_vm13 = vmmov %vm14995_vm0  ;;  %v7860_v55 = vld [vmem:[#allocation2 + $0xbd] sm:$0xff] }
 0x4a2   : > { %11081 = vmatmul.mubr.msk.f32.gmra.mrb[32].mxu1 %vm15118_vm15, %v6584_v38  ;;  %vm15133_vm15 = vmmov %vm14995_vm0  ;;  %v7446_v58 = vld [vmem:[#allocation2 + $0x13c] sm:$0xff]  ;;  %v7861_v38 = vld [vmem:[#allocation2 + $0xc5] sm:$0xff] }
 0x4a3   : > { %11083 = vmatprep.mubr.msk.f32.mxu1 %vm15119_vm9, %v6585_v47  ;;  %vm15134_vm9 = vmmov %vm14995_vm0  ;;  %v7862_v47 = vld [vmem:[#allocation2 + $0xcd] sm:$0xff] }
 0x4a6   : > { %11084 = vmatmul.mubr.msk.f32.gmra.mrb[34].mxu1 %vm15120_vm3, %v6586_v4  ;;  %vm15135_vm3 = vmmov %vm14995_vm0  ;;  %v7863_v4 = vld [vmem:[#allocation2 + $0xd5] sm:$0xff] }
 0x4a7   : > { %11088 = vmatprep.mubr.msk.f32.mxu1 %vm15121_vm4, %v6981_v9  ;;  %vm15136_vm4 = vmmov %vm14995_vm0  ;;  %v7864_v9 = vld [vmem:[#allocation2 + $0xdd] sm:$0xff] }
 0x4aa   : > { %11089 = vmatmul.mubr.msk.f32.vlgmr.msra.gmra.mrb[0].mxu1 %vm15122_vm14, %v6982_v40  ;;  %vm15137_vm14 = vmmov %vm14995_vm0  ;;  %v7865_v40 = vld [vmem:[#allocation2 + $0xe5] sm:$0xff] }
 0x4ab   : > { %11143 = vmatpush3.msk.msra.mxu1 %vm15123_vm1, %v14311_v12  ;;  %11091 = vmatprep.mubr.msk.f32.mxu1 %vm15124_vm6, %v14358_v56  ;;  %vm15138_vm1 = vmmov %vm14995_vm0  ;;  %v7008_v12 = vld [vmem:[#allocation2 + $0xec] sm:$0xff] }
 0x4ac   : > { %11198 = vmatprep.subr.msk.mxu1 %vm15125_vm5, %v14355_v29  ;;  %vm15139_vm6 = vmmov %vm14995_vm0 }
 0x4ad   : > { %vm15140_vm5 = vmmov %vm14995_vm0 }
 0x4ae   : > { %11092 = vmatmul.mubr.msk.f32.gmra.mrb[2].mxu1 %vm15126_vm8, %v14366_v20  ;;  %vm15141_vm8 = vmmov %vm14995_vm0 }
 0x4af   : > { %11094 = vmatprep.mubr.msk.f32.mxu1 %vm15127_vm10, %v14370_v24  ;;  %vm15142_vm10 = vmmov %vm14995_vm0 }
 0x4b2   : > { %11095 = vmatmul.mubr.msk.f32.gmra.mrb[4].mxu1 %vm15128_vm7, %v14374_v1  ;;  %vm15143_vm7 = vmmov %vm14995_vm0 }
 0x4b3   : > { %11097 = vmatprep.mubr.msk.f32.mxu1 %vm15129_vm11, %v14378_v28  ;;  %vm15144_vm11 = vmmov %vm14995_vm0 }
 0x4b6   : > { %11098 = vmatmul.mubr.msk.f32.gmra.mrb[6].mxu1 %vm14995_vm0, %v14383_v22 }
 0x4b7   : > { %11100 = vmatprep.mubr.msk.f32.mxu1 %vm15131_vm12, %v14387_v3  ;;  %vm15146_vm12 = vmmov %vm14995_vm0 }
 0x4ba   : > { %11101 = vmatmul.mubr.msk.f32.gmra.mrb[8].mxu1 %vm15132_vm13, %v14391_v59  ;;  %vm15147_vm13 = vmmov %vm14995_vm0 }
 0x4bb   : > { %11103 = vmatprep.mubr.msk.f32.mxu1 %vm15133_vm15, %v14395_v52  ;;  %vm15148_vm15 = vmmov %vm14995_vm0 }
 0x4be   : > { %11104 = vmatmul.mubr.msk.f32.gmra.mrb[10].mxu1 %vm15134_vm9, %v6992_v62  ;;  %vm15149_vm9 = vmmov %vm14995_vm0 }
 0x4bf   : > { %11106 = vmatprep.mubr.msk.f32.mxu1 %vm15135_vm3, %v6993_v13  ;;  %vm15150_vm3 = vmmov %vm14995_vm0 }
 0x4c2   : > { %11107 = vmatmul.mubr.msk.f32.gmra.mrb[12].mxu1 %vm15136_vm4, %v6994_v60  ;;  %vm15151_vm4 = vmmov %vm14995_vm0 }
 0x4c3   : > { %11109 = vmatprep.mubr.msk.f32.mxu1 %vm15137_vm14, %v6995_v31  ;;  %vm15152_vm14 = vmmov %vm14995_vm0 }
 0x4c6   : > { %11110 = vmatmul.mubr.msk.f32.gmra.mrb[14].mxu1 %vm15138_vm1, %v6996_v16  ;;  %vm15153_vm1 = vmmov %vm14995_vm0 }
 0x4c7   : > { %11112 = vmatprep.mubr.msk.f32.mxu1 %vm15139_vm6, %v6997_v26  ;;  %vm15154_vm6 = vmmov %vm14995_vm0 }
 0x4ca   : > { %11113 = vmatmul.mubr.msk.f32.gmra.mrb[16].mxu1 %vm15140_vm5, %v6998_v42  ;;  %vm15155_vm5 = vmmov %vm14995_vm0 }
 0x4cb   : > { %11115 = vmatprep.mubr.msk.f32.mxu1 %vm15141_vm8, %v6999_v35  ;;  %vm15156_vm8 = vmmov %vm14995_vm0 }
 0x4ce   : > { %11116 = vmatmul.mubr.msk.f32.gmra.mrb[18].mxu1 %vm15142_vm10, %v7000_v46  ;;  %vm15157_vm10 = vmmov %vm14995_vm0 }
 0x4cf   : > { %11118 = vmatprep.mubr.msk.f32.mxu1 %vm15143_vm7, %v7001_v49  ;;  %vm15158_vm7 = vmmov %vm14995_vm0 }
 0x4d2   : > { %11119 = vmatmul.mubr.msk.f32.gmra.mrb[20].mxu1 %vm15144_vm11, %v7002_v33  ;;  %vm15159_vm11 = vmmov %vm14995_vm0 }
 0x4d3   : > { %11121 = vmatprep.mubr.msk.f32.mxu1 %vm15145_vm2, %v7003_v32  ;;  %vm15160_vm2 = vcmask 1043456  }
 0x4d6   : > { %11122 = vmatmul.mubr.msk.f32.gmra.mrb[22].mxu1 %vm14995_vm0, %v7004_v17 }
 0x4d7   : > { %11124 = vmatprep.mubr.msk.f32.mxu1 %vm15146_vm12, %v7005_v37  ;;  %vm15161_vm12 = vmmov %vm15160_vm2 }
 0x4da   : > { %11125 = vmatmul.mubr.msk.f32.gmra.mrb[24].mxu1 %vm15147_vm13, %v7006_v51  ;;  %vm15162_vm13 = vmmov %vm14995_vm0 }
 0x4db   : > { %11127 = vmatprep.mubr.msk.f32.mxu1 %vm15148_vm15, %v7007_v21  ;;  %vm15163_vm15 = vmmov %vm14995_vm0 }
 0x4de   : > { %11128 = vmatmul.mubr.msk.f32.gmra.mrb[26].mxu1 %vm15149_vm9, %v7008_v12  ;;  %vm15164_vm9 = vmmov %vm14995_vm0 }
 0x4df   : > { %11130 = vmatprep.mubr.msk.f32.mxu1 %vm15150_vm3, %v7009_v23  ;;  %vm15165_vm3 = vmmov %vm14995_vm0 }
 0x4e2   : > { %11131 = vmatmul.mubr.msk.f32.gmra.mrb[28].mxu1 %vm15151_vm4, %v7010_v53  ;;  %vm15166_vm4 = vmmov %vm14995_vm0 }
 0x4e3   : > { %11133 = vmatprep.mubr.msk.f32.mxu1 %vm15152_vm14, %v7011_v63  ;;  %vm15167_vm14 = vmmov %vm14995_vm0 }
 0x4e6   : > { %11134 = vmatmul.mubr.msk.f32.gmra.mrb[30].mxu1 %vm15153_vm1, %v7012_v43  ;;  %vm15168_vm1 = vmmov %vm14995_vm0 }
 0x4e7   : > { %11136 = vmatprep.mubr.msk.f32.mxu1 %vm15154_vm6, %v7013_v48  ;;  %vm15169_vm6 = vmmov %vm14995_vm0 }
 0x4ea   : > { %11137 = vmatmul.mubr.msk.f32.gmra.mrb[32].mxu1 %vm15155_vm5, %v7014_v18  ;;  %vm15170_vm5 = vmmov %vm14995_vm0 }
 0x4eb   : > { %11139 = vmatprep.mubr.msk.f32.mxu1 %vm15156_vm8, %v7015_v39  ;;  %vm15171_vm8 = vmmov %vm14995_vm0 }
 0x4ee   : > { %11140 = vmatmul.mubr.msk.f32.gmra.mrb[34].mxu1 %vm15157_vm10, %v7016_v14  ;;  %vm15172_vm10 = vmmov %vm14995_vm0 }
 0x4ef   : > { %11144 = vmatprep.mubr.msk.f32.mxu1 %vm15158_vm7, %v14358_v56  ;;  %vm15173_vm7 = vmmov %vm14995_vm0  ;;  %v7867_v56 = vld [vmem:[#allocation2 + $0xf5] sm:$0xff] }
 0x4f2   : > { %11145 = vmatmul.mubr.msk.f32.vlgmr.msra.gmra.mrb[0].mxu1 %vm15159_vm11, %v14366_v20  ;;  %vm15174_vm11 = vmmov %vm14995_vm0  ;;  %v7868_v20 = vld [vmem:[#allocation2 + $0xfd] sm:$0xff] }
 0x4f3   : > { %11199 = vmatpush3.msk.msra.mxu1 %vm15160_vm2, %v14355_v29  ;;  %11147 = vmatprep.mubr.msk.f32.mxu1 %vm14995_vm0, %v14370_v24  ;;  %vm15175_vm2 = vmmov %vm14995_vm0  ;;  %v7866_v29 = vld [vmem:[#allocation2 + $0xed] sm:$0xff]  ;;  %v7869_v24 = vld [vmem:[#allocation2 + $0x105] sm:$0xff] }
 0x4f4   : > { %11254 = vmatprep.subr.msk.mxu1 %vm15161_vm12, %v9595_v19  ;;  %vm15176_vm12 = vmmov %vm14995_vm0 }
 0x4f6   : > { %11148 = vmatmul.mubr.msk.f32.gmra.mrb[2].mxu1 %vm15162_vm13, %v14374_v1  ;;  %vm15177_vm13 = vmmov %vm14995_vm0  ;;  %v7870_v1 = vld [vmem:[#allocation2 + $0x10d] sm:$0xff] }
 0x4f7   : > { %11150 = vmatprep.mubr.msk.f32.mxu1 %vm15163_vm15, %v14378_v28  ;;  %vm15178_vm15 = vmmov %vm14995_vm0  ;;  %v7871_v28 = vld [vmem:[#allocation2 + $0x115] sm:$0xff] }
 0x4fa   : > { %11151 = vmatmul.mubr.msk.f32.gmra.mrb[4].mxu1 %vm15164_vm9, %v14383_v22  ;;  %vm15179_vm9 = vmmov %vm14995_vm0  ;;  %v7873_v22 = vld [vmem:[#allocation2 + $0x125] sm:$0xff] }
 0x4fb   : > { %11153 = vmatprep.mubr.msk.f32.mxu1 %vm15165_vm3, %v14387_v3  ;;  %vm15180_vm3 = vmmov %vm14995_vm0  ;;  %v7875_v3 = vld [vmem:[#allocation2 + $0x135] sm:$0xff] }
 0x4fe   : > { %11154 = vmatmul.mubr.msk.f32.gmra.mrb[6].mxu1 %vm15166_vm4, %v14391_v59  ;;  %vm15181_vm4 = vmmov %vm14995_vm0  ;;  %v7874_v59 = vld [vmem:[#allocation2 + $0x12d] sm:$0xff] }
 0x4ff   : > { %11156 = vmatprep.mubr.msk.f32.mxu1 %vm15167_vm14, %v14395_v52  ;;  %vm15182_vm14 = vmmov %vm14995_vm0  ;;  %v7876_v52 = vld [vmem:[#allocation2 + $0x13d] sm:$0xff] }
 0x502   : > { %11157 = vmatmul.mubr.msk.f32.gmra.mrb[8].mxu1 %vm15168_vm1, %v6992_v62  ;;  %vm15183_vm1 = vmmov %vm14995_vm0  ;;  %v8271_v62 = vld [vmem:[#allocation2 + $0x26] sm:$0xff] }
 0x503   : > { %11159 = vmatprep.mubr.msk.f32.mxu1 %vm15169_vm6, %v6993_v13  ;;  %vm15184_vm6 = vmmov %vm14995_vm0  ;;  %v8272_v13 = vld [vmem:[#allocation2 + $0x2e] sm:$0xff] }
 0x506   : > { %11160 = vmatmul.mubr.msk.f32.gmra.mrb[10].mxu1 %vm15170_vm5, %v6994_v60  ;;  %vm15185_vm5 = vmmov %vm14995_vm0  ;;  %v8273_v60 = vld [vmem:[#allocation2 + $0x36] sm:$0xff] }
 0x507   : > { %11162 = vmatprep.mubr.msk.f32.mxu1 %vm15171_vm8, %v6995_v31  ;;  %vm15186_vm8 = vmmov %vm14995_vm0  ;;  %v8274_v31 = vld [vmem:[#allocation2 + $0x3e] sm:$0xff] }
 0x50a   : > { %11163 = vmatmul.mubr.msk.f32.gmra.mrb[12].mxu1 %vm15172_vm10, %v6996_v16  ;;  %vm15187_vm10 = vmmov %vm14995_vm0  ;;  %v8275_v16 = vld [vmem:[#allocation2 + $0x46] sm:$0xff] }
 0x50b   : > { %11165 = vmatprep.mubr.msk.f32.mxu1 %vm15173_vm7, %v6997_v26  ;;  %vm15188_vm7 = vmmov %vm14995_vm0  ;;  %v8276_v26 = vld [vmem:[#allocation2 + $0x4e] sm:$0xff] }
 0x50e   : > { %11166 = vmatmul.mubr.msk.f32.gmra.mrb[14].mxu1 %vm15174_vm11, %v6998_v42  ;;  %vm15189_vm11 = vmmov %vm14995_vm0  ;;  %v8277_v42 = vld [vmem:[#allocation2 + $0x56] sm:$0xff] }
 0x50f   : > { %11168 = vmatprep.mubr.msk.f32.mxu1 %vm15175_vm2, %v6999_v35  ;;  %vm15190_vm2 = vmmov %vm14995_vm0  ;;  %v8278_v35 = vld [vmem:[#allocation2 + $0x5e] sm:$0xff] }
 0x512   : > { %11169 = vmatmul.mubr.msk.f32.gmra.mrb[16].mxu1 %vm14995_vm0, %v7000_v46  ;;  %v8279_v46 = vld [vmem:[#allocation2 + $0x66] sm:$0xff] }
 0x513   : > { %11171 = vmatprep.mubr.msk.f32.mxu1 %vm15176_vm12, %v7001_v49  ;;  %vm15191_vm12 = vmmov %vm14995_vm0  ;;  %v8280_v49 = vld [vmem:[#allocation2 + $0x6e] sm:$0xff] }
 0x516   : > { %11172 = vmatmul.mubr.msk.f32.gmra.mrb[18].mxu1 %vm15177_vm13, %v7002_v33  ;;  %vm15192_vm13 = vmmov %vm14995_vm0  ;;  %v8281_v33 = vld [vmem:[#allocation2 + $0x76] sm:$0xff] }
 0x517   : > { %11174 = vmatprep.mubr.msk.f32.mxu1 %vm15178_vm15, %v7003_v32  ;;  %vm15193_vm15 = vmmov %vm14995_vm0  ;;  %v8282_v32 = vld [vmem:[#allocation2 + $0x7e] sm:$0xff] }
 0x51a   : > { %11175 = vmatmul.mubr.msk.f32.gmra.mrb[20].mxu1 %vm15179_vm9, %v7004_v17  ;;  %vm15194_vm9 = vmmov %vm14995_vm0  ;;  %v8283_v17 = vld [vmem:[#allocation2 + $0x86] sm:$0xff] }
 0x51b   : > { %11177 = vmatprep.mubr.msk.f32.mxu1 %vm15180_vm3, %v7005_v37  ;;  %vm15195_vm3 = vcmask 1043456   ;;  %v8284_v37 = vld [vmem:[#allocation2 + $0x8e] sm:$0xff] }
 0x51e   : > { %11178 = vmatmul.mubr.msk.f32.gmra.mrb[22].mxu1 %vm15181_vm4, %v7006_v51  ;;  %vm15196_vm4 = vmmov %vm14995_vm0  ;;  %v8285_v51 = vld [vmem:[#allocation2 + $0x96] sm:$0xff] }
 0x51f   : > { %11180 = vmatprep.mubr.msk.f32.mxu1 %vm15182_vm14, %v7007_v21  ;;  %vm15197_vm14 = vmmov %vm14995_vm0  ;;  %v8286_v21 = vld [vmem:[#allocation2 + $0x9e] sm:$0xff] }
 0x522   : > { %11181 = vmatmul.mubr.msk.f32.gmra.mrb[24].mxu1 %vm15183_vm1, %v7008_v12  ;;  %vm15198_vm1 = vmmov %vm14995_vm0  ;;  %v8287_v12 = vld [vmem:[#allocation2 + $0xa6] sm:$0xff] }
 0x523   : > { %11183 = vmatprep.mubr.msk.f32.mxu1 %vm15184_vm6, %v7009_v23  ;;  %vm15199_vm6 = vmmov %vm14995_vm0  ;;  %v8288_v23 = vld [vmem:[#allocation2 + $0xae] sm:$0xff] }
 0x526   : > { %11184 = vmatmul.mubr.msk.f32.gmra.mrb[26].mxu1 %vm15185_vm5, %v7010_v53  ;;  %vm15200_vm5 = vmmov %vm14995_vm0  ;;  %v8289_v53 = vld [vmem:[#allocation2 + $0xb6] sm:$0xff] }
 0x527   : > { %11186 = vmatprep.mubr.msk.f32.mxu1 %vm15186_vm8, %v7011_v63  ;;  %vm15201_vm8 = vmmov %vm14995_vm0  ;;  %v8290_v63 = vld [vmem:[#allocation2 + $0xbe] sm:$0xff] }
 0x52a   : > { %11187 = vmatmul.mubr.msk.f32.gmra.mrb[28].mxu1 %vm15187_vm10, %v7012_v43  ;;  %vm15202_vm10 = vmmov %vm14995_vm0  ;;  %v8291_v43 = vld [vmem:[#allocation2 + $0xc6] sm:$0xff] }
 0x52b   : > { %11189 = vmatprep.mubr.msk.f32.mxu1 %vm15188_vm7, %v7013_v48  ;;  %vm15203_vm7 = vmmov %vm14995_vm0  ;;  %v8292_v48 = vld [vmem:[#allocation2 + $0xce] sm:$0xff] }
 0x52e   : > { %11190 = vmatmul.mubr.msk.f32.gmra.mrb[30].mxu1 %vm15189_vm11, %v7014_v18  ;;  %vm15204_vm11 = vmmov %vm14995_vm0  ;;  %v8293_v18 = vld [vmem:[#allocation2 + $0xd6] sm:$0xff] }
 0x52f   : > { %11192 = vmatprep.mubr.msk.f32.mxu1 %vm15190_vm2, %v7015_v39  ;;  %vm15205_vm2 = vmmov %vm14995_vm0  ;;  %v8294_v39 = vld [vmem:[#allocation2 + $0xde] sm:$0xff] }
 0x532   : > { %11193 = vmatmul.mubr.msk.f32.gmra.mrb[32].mxu1 %vm14995_vm0, %v7016_v14  ;;  %v8295_v14 = vld [vmem:[#allocation2 + $0xe6] sm:$0xff] }
 0x533   : > { %11195 = vmatprep.mubr.msk.f32.mxu1 %vm15191_vm12, %v7445_v34  ;;  %vm15206_vm12 = vmmov %vm14995_vm0  ;;  %v8297_v34 = vld [vmem:[#allocation2 + $0xf6] sm:$0xff] }
 0x536   : > { %11196 = vmatmul.mubr.msk.f32.gmra.mrb[34].mxu1 %vm15192_vm13, %v7446_v58  ;;  %vm15207_vm13 = vmmov %vm14995_vm0  ;;  %v8298_v58 = vld [vmem:[#allocation2 + $0xfe] sm:$0xff] }
 0x537   : > { %11200 = vmatprep.mubr.msk.f32.mxu1 %vm15193_vm15, %v7841_v57  ;;  %vm15208_vm15 = vmmov %vm14995_vm0  ;;  %v8299_v57 = vld [vmem:[#allocation2 + $0x106] sm:$0xff] }
 0x53a   : > { %11201 = vmatmul.mubr.msk.f32.vlgmr.msra.gmra.mrb[0].mxu1 %vm15194_vm9, %v7842_v7  ;;  %vm15209_vm9 = vmmov %vm14995_vm0  ;;  %v8300_v7 = vld [vmem:[#allocation2 + $0x10e] sm:$0xff] }
 0x53b   : > { %11255 = vmatpush3.msk.msra.mxu1 %vm15195_vm3, %v9595_v19  ;;  %11203 = vmatprep.mubr.msk.f32.mxu1 %vm15196_vm4, %v7843_v8  ;;  %vm15210_vm3 = vmmov %vm14995_vm0  ;;  %v8296_v19 = vld [vmem:[#allocation2 + $0xee] sm:$0xff]  ;;  %v8301_v8 = vld [vmem:[#allocation2 + $0x116] sm:$0xff] }
 0x53c   : > { %vm15211_vm4 = vmmov %vm14995_vm0 }
 0x53e   : > { %11204 = vmatmul.mubr.msk.f32.gmra.mrb[2].mxu1 %vm15197_vm14, %v7844_v10  ;;  %vm15212_vm14 = vmmov %vm14995_vm0  ;;  %v8302_v10 = vld [vmem:[#allocation2 + $0x11e] sm:$0xff] }
 0x53f   : > { %11206 = vmatprep.mubr.msk.f32.mxu1 %vm15198_vm1, %v7845_v41  ;;  %vm15213_vm1 = vmmov %vm14995_vm0  ;;  %v8303_v41 = vld [vmem:[#allocation2 + $0x126] sm:$0xff] }
 0x542   : > { %11207 = vmatmul.mubr.msk.f32.gmra.mrb[4].mxu1 %vm15199_vm6, %v7846_v2  ;;  %vm15214_vm6 = vmmov %vm14995_vm0  ;;  %v8305_v2 = vld [vmem:[#allocation2 + $0x136] sm:$0xff] }
 0x543   : > { %11209 = vmatprep.mubr.msk.f32.mxu1 %vm15200_vm5, %v7847_v6  ;;  %vm15215_vm5 = vmmov %vm14995_vm0  ;;  %v8304_v6 = vld [vmem:[#allocation2 + $0x12e] sm:$0xff] }
 0x546   : > { %11210 = vmatmul.mubr.msk.f32.gmra.mrb[6].mxu1 %vm15201_vm8, %v7848_v54  ;;  %vm15216_vm8 = vmmov %vm14995_vm0  ;;  %v8306_v54 = vld [vmem:[#allocation2 + $0x13e] sm:$0xff] }
 0x547   : > { %11212 = vmatprep.mubr.msk.f32.mxu1 %vm15202_vm10, %v7849_v30  ;;  %vm15217_vm10 = vmmov %vm14995_vm0  ;;  %v14551_v30 = vld [vmem:[%s14710_s4] ss:$0 sm:$0xff] }
 0x54a   : > { %11213 = vmatmul.mubr.msk.f32.gmra.mrb[8].mxu1 %vm15203_vm7, %v7850_v50  ;;  %vm15218_vm7 = vmmov %vm14995_vm0 }
 0x54b   : > { %11215 = vmatprep.mubr.msk.f32.mxu1 %vm15204_vm11, %v7851_v11  ;;  %vm15219_vm11 = vmmov %vm14995_vm0 }
 0x54e   : > { %11216 = vmatmul.mubr.msk.f32.gmra.mrb[10].mxu1 %vm15205_vm2, %v7852_v25  ;;  %vm15220_vm2 = vmmov %vm14995_vm0 }
 0x54f   : > { %11218 = vmatprep.mubr.msk.f32.mxu1 %vm14995_vm0, %v7853_v27  ;;  %v8781_v27 = vld [vmem:[%s12032_s27 + $0x1b] sm:$0xff] }
 0x552   : > { %11219 = vmatmul.mubr.msk.f32.gmra.mrb[12].mxu1 %vm15206_vm12, %v7854_v45  ;;  %vm15221_vm12 = vmmov %vm14995_vm0 }
 0x553   : > { %11221 = vmatprep.mubr.msk.f32.mxu1 %vm15207_vm13, %v7855_v0  ;;  %vm15222_vm13 = vmmov %vm14995_vm0 }
 0x556   : > { %11222 = vmatmul.mubr.msk.f32.gmra.mrb[14].mxu1 %vm15208_vm15, %v7856_v5  ;;  %vm15223_vm15 = vmmov %vm14995_vm0  ;;  %v8780_v5 = vld [vmem:[%s12032_s27 + $0x13] sm:$0xff] }
 0x557   : > { %11224 = vmatprep.mubr.msk.f32.mxu1 %vm15209_vm9, %v7857_v15  ;;  %vm15224_vm9 = vmmov %vm14995_vm0 }
 0x55a   : > { %11225 = vmatmul.mubr.msk.f32.gmra.mrb[16].mxu1 %vm15210_vm3, %v7858_v61  ;;  %vm15225_vm3 = vmmov %vm14995_vm0 }
 0x55b   : > { %11227 = vmatprep.mubr.msk.f32.mxu1 %vm15211_vm4, %v7859_v36  ;;  %vm15226_vm4 = vmmov %vm14995_vm0 }
 0x55e   : > { %11228 = vmatmul.mubr.msk.f32.gmra.mrb[18].mxu1 %vm15212_vm14, %v7860_v55  ;;  %vm15227_vm14 = vmmov %vm14995_vm0 }
 0x55f   : > { %11230 = vmatprep.mubr.msk.f32.mxu1 %vm15213_vm1, %v7861_v38  ;;  %vm15228_vm1 = vmmov %vm14995_vm0 }
 0x562   : > { %11231 = vmatmul.mubr.msk.f32.gmra.mrb[20].mxu1 %vm15214_vm6, %v7862_v47  ;;  %vm15229_vm6 = vmmov %vm14995_vm0 }
 0x563   : > { %11233 = vmatprep.mubr.msk.f32.mxu1 %vm15215_vm5, %v7863_v4  ;;  %vm15230_vm5 = vmmov %vm14995_vm0  ;;  %v8783_v4 = vld [vmem:[%s12032_s27 + $0x2b] sm:$0xff] }
 0x566   : > { %11234 = vmatmul.mubr.msk.f32.gmra.mrb[22].mxu1 %vm15216_vm8, %v7864_v9  ;;  %vm15231_vm8 = vmmov %vm14995_vm0 }
 0x567   : > { %11236 = vmatprep.mubr.msk.f32.mxu1 %vm15217_vm10, %v7865_v40  ;;  %vm15232_vm10 = vmmov %vm14995_vm0 }
 0x56a   : > { %11237 = vmatmul.mubr.msk.f32.gmra.mrb[24].mxu1 %vm15218_vm7, %v7866_v29  ;;  %vm15233_vm7 = vmmov %vm14995_vm0  ;;  %v8782_v29 = vld [vmem:[%s12032_s27 + $0x23] sm:$0xff] }
 0x56b   : > { %11239 = vmatprep.mubr.msk.f32.mxu1 %vm15219_vm11, %v7867_v56  ;;  %vm15234_vm11 = vmmov %vm14995_vm0 }
 0x56e   : > { %11240 = vmatmul.mubr.msk.f32.gmra.mrb[26].mxu1 %vm15220_vm2, %v7868_v20  ;;  %vm15235_vm2 = vmmov %vm14995_vm0 }
 0x56f   : > { %11242 = vmatprep.mubr.msk.f32.mxu1 %vm14995_vm0, %v7869_v24 }
 0x572   : > { %11243 = vmatmul.mubr.msk.f32.gmra.mrb[28].mxu1 %vm15221_vm12, %v7870_v1  ;;  %vm15236_vm12 = vmmov %vm14995_vm0 }
 0x573   : > { %11245 = vmatprep.mubr.msk.f32.mxu1 %vm15222_vm13, %v7871_v28  ;;  %vm15237_vm13 = vmmov %vm14995_vm0 }
 0x576   : > { %11246 = vmatmul.mubr.msk.f32.gmra.mrb[30].mxu1 %vm15223_vm15, %v7872_v44  ;;  %vm15238_vm15 = vmmov %vm14995_vm0 }
 0x577   : > { %11248 = vmatprep.mubr.msk.f32.mxu1 %vm15224_vm9, %v7873_v22  ;;  %vm15239_vm9 = vmmov %vm14995_vm0  ;;  %v8785_v22 = vld [vmem:[%s12032_s27 + $0x3b] sm:$0xff] }
 0x57a   : > { %11249 = vmatmul.mubr.msk.f32.gmra.mrb[32].mxu1 %vm15225_vm3, %v7874_v59  ;;  %vm15240_vm3 = vmmov %vm14995_vm0 }
 0x57b   : > { %11251 = vmatprep.mubr.msk.f32.mxu1 %vm15226_vm4, %v7875_v3  ;;  %vm15241_vm4 = vmmov %vm14995_vm0 }
 0x57e   : > { %11252 = vmatmul.mubr.msk.f32.gmra.mrb[34].mxu1 %vm15227_vm14, %v7876_v52  ;;  %vm15242_vm14 = vmmov %vm14995_vm0  ;;  %v8784_v52 = vld [vmem:[%s12032_s27 + $0x33] sm:$0xff] }
 0x57f   : > { %11256 = vmatprep.mubr.msk.f32.mxu1 %vm15228_vm1, %v8271_v62  ;;  %vm15243_vm1 = vmmov %vm14995_vm0 }
 0x582   : > { %11257 = vmatmul.mubr.msk.f32.vlgmr.msra.gmra.mrb[0].mxu1 %vm15229_vm6, %v8272_v13  ;;  %vm15244_vm6 = vmmov %vm14995_vm0 }
 0x583   : > { %11259 = vmatprep.mubr.msk.f32.mxu1 %vm15230_vm5, %v8273_v60  ;;  %vm15245_vm5 = vmmov %vm14995_vm0 }
 0x586   : > { %11260 = vmatmul.mubr.msk.f32.gmra.mrb[2].mxu1 %vm15231_vm8, %v8274_v31  ;;  %vm15246_vm8 = vmmov %vm14995_vm0 }
 0x587   : > { %11262 = vmatprep.mubr.msk.f32.mxu1 %vm15232_vm10, %v8275_v16  ;;  %vm15247_vm10 = vmmov %vm14995_vm0 }
 0x58a   : > { %11263 = vmatmul.mubr.msk.f32.gmra.mrb[4].mxu1 %vm15233_vm7, %v8276_v26  ;;  %vm15248_vm7 = vmmov %vm14995_vm0 }
 0x58b   : > { %11265 = vmatprep.mubr.msk.f32.mxu1 %vm15234_vm11, %v8277_v42  ;;  %vm15249_vm11 = vmmov %vm14995_vm0  ;;  %v8787_v42 = vld [vmem:[%s12032_s27 + $0x4b] sm:$0xff] }
 0x58e   : > { %11266 = vmatmul.mubr.msk.f32.gmra.mrb[6].mxu1 %vm15235_vm2, %v8278_v35  ;;  %vm15250_vm2 = vmmov %vm14995_vm0 }
 0x58f   : > { %11268 = vmatprep.mubr.msk.f32.mxu1 %vm14995_vm0, %v8279_v46 }
 0x592   : > { %11269 = vmatmul.mubr.msk.f32.gmra.mrb[8].mxu1 %vm15236_vm12, %v8280_v49  ;;  %vm15251_vm12 = vmmov %vm14995_vm0  ;;  %v8786_v49 = vld [vmem:[%s12032_s27 + $0x43] sm:$0xff] }
 0x593   : > { %11271 = vmatprep.mubr.msk.f32.mxu1 %vm15237_vm13, %v8281_v33  ;;  %vm15252_vm13 = vmmov %vm14995_vm0 }
 0x596   : > { %11272 = vmatmul.mubr.msk.f32.gmra.mrb[10].mxu1 %vm15238_vm15, %v8282_v32  ;;  %vm15253_vm15 = vmmov %vm14995_vm0 }
 0x597   : > { %11274 = vmatprep.mubr.msk.f32.mxu1 %vm15239_vm9, %v8283_v17  ;;  %vm15254_vm9 = vmmov %vm14995_vm0 }
 0x59a   : > { %11275 = vmatmul.mubr.msk.f32.gmra.mrb[12].mxu1 %vm15240_vm3, %v8284_v37  ;;  %vm15255_vm3 = vmmov %vm14995_vm0 }
 0x59b   : > { %11277 = vmatprep.mubr.msk.f32.mxu1 %vm15241_vm4, %v8285_v51  ;;  %vm15256_vm4 = vmmov %vm14995_vm0 }
 0x59e   : > { %11278 = vmatmul.mubr.msk.f32.gmra.mrb[14].mxu1 %vm15242_vm14, %v8286_v21  ;;  %vm15257_vm14 = vmmov %vm14995_vm0 }
 0x59f   : > { %11280 = vmatprep.mubr.msk.f32.mxu1 %vm15243_vm1, %v8287_v12  ;;  %vm15258_vm1 = vmmov %vm14995_vm0  ;;  %v8789_v12 = vld [vmem:[%s12032_s27 + $0x5b] sm:$0xff] }
 0x5a2   : > { %11281 = vmatmul.mubr.msk.f32.gmra.mrb[16].mxu1 %vm15244_vm6, %v8288_v23  ;;  %vm15259_vm6 = vmmov %vm14995_vm0 }
 0x5a3   : > { %11283 = vmatprep.mubr.msk.f32.mxu1 %vm15245_vm5, %v8289_v53  ;;  %vm15260_vm5 = vmmov %vm14995_vm0 }
 0x5a6   : > { %11284 = vmatmul.mubr.msk.f32.gmra.mrb[18].mxu1 %vm15246_vm8, %v8290_v63  ;;  %vm15261_vm8 = vmmov %vm14995_vm0  ;;  %v8788_v63 = vld [vmem:[%s12032_s27 + $0x53] sm:$0xff] }
 0x5a7   : > { %11286 = vmatprep.mubr.msk.f32.mxu1 %vm15247_vm10, %v8291_v43  ;;  %vm15262_vm10 = vmmov %vm14995_vm0 }
 0x5aa   : > { %11287 = vmatmul.mubr.msk.f32.gmra.mrb[20].mxu1 %vm15248_vm7, %v8292_v48  ;;  %vm15263_vm7 = vmmov %vm14995_vm0 }
 0x5ab   : > { %11289 = vmatprep.mubr.msk.f32.mxu1 %vm15249_vm11, %v8293_v18  ;;  %vm15264_vm11 = vmmov %vm14995_vm0 }
 0x5ae   : > { %11290 = vmatmul.mubr.msk.f32.gmra.mrb[22].mxu1 %vm15250_vm2, %v8294_v39  ;;  %vm15265_vm2 = vmmov %vm14995_vm0 }
 0x5af   : > { %11292 = vmatprep.mubr.msk.f32.mxu1 %vm14995_vm0, %v8295_v14 }
 0x5b2   : > { %11293 = vmatmul.mubr.msk.f32.gmra.mrb[24].mxu1 %vm15251_vm12, %v8296_v19  ;;  %vm15266_vm12 = vmmov %vm14995_vm0 }
 0x5b3   : > { %11295 = vmatprep.mubr.msk.f32.mxu1 %vm15252_vm13, %v8297_v34  ;;  %vm15267_vm13 = vmmov %vm14995_vm0  ;;  %v8791_v34 = vld [vmem:[%s12032_s27 + $0x6b] sm:$0xff] }
 0x5b6   : > { %11296 = vmatmul.mubr.msk.f32.gmra.mrb[26].mxu1 %vm15253_vm15, %v8298_v58  ;;  %vm15268_vm15 = vmmov %vm14995_vm0 }
 0x5b7   : > { %11298 = vmatprep.mubr.msk.f32.mxu1 %vm15254_vm9, %v8299_v57  ;;  %vm15269_vm9 = vmmov %vm14995_vm0 }
 0x5ba   : > { %11299 = vmatmul.mubr.msk.f32.gmra.mrb[28].mxu1 %vm15255_vm3, %v8300_v7  ;;  %v8790_v7 = vld [vmem:[%s12032_s27 + $0x63] sm:$0xff]  ;;  %vm15270_vm3 = vmmov %vm14995_vm0 }
 0x5bb   : > { %11301 = vmatprep.mubr.msk.f32.mxu1 %vm15256_vm4, %v8301_v8  ;;  %vm15271_vm4 = vmmov %vm14995_vm0 }
 0x5be   : > { %11302 = vmatmul.mubr.msk.f32.gmra.mrb[30].mxu1 %vm15257_vm14, %v8302_v10  ;;  %vm15272_vm14 = vmmov %vm14995_vm0 }
 0x5bf   : > { %11304 = vmatprep.mubr.msk.f32.mxu1 %vm15258_vm1, %v8303_v41  ;;  %vm15273_vm1 = vmmov %vm14995_vm0 }
 0x5c2   : > { %11305 = vmatmul.mubr.msk.f32.gmra.mrb[32].mxu1 %vm15259_vm6, %v8304_v6  ;;  %vm15274_vm6 = vmmov %vm14995_vm0 }
 0x5c3   : > { %11307 = vmatprep.mubr.msk.f32.mxu1 %vm15260_vm5, %v8305_v2  ;;  %vm15275_vm5 = vmmov %vm14995_vm0 }
 0x5c6   : > { %11308 = vmatmul.mubr.msk.f32.gmra.mrb[34].mxu1 %vm15261_vm8, %v8306_v54  ;;  %vm15276_vm8 = vmmov %vm14995_vm0 }
 0x655   : > { %v11258_v50 = vpop.f32.mrb[0].mxu1 }
 0x656   : > { %v8709_v11 = vadd.f32 %v11258_v50, %v14551_v30  ;;  %v8486_v25 = vpop.f32.mrb[1].mxu1  ;;  %v8793_v50 = vld [vmem:[%s12032_s27 + $0x7b] sm:$0xff] }
 0x657   : > { %v8708_v45 = vadd.f32 %v14551_v30, %v8486_v25 }
 0x658   : > { %v8745_v0 = vmax.f32 %v8709_v11, 0.0 }
 0x659   : > { %v8744_v15 = vmax.f32 %v8708_v45, 0.0  ;;  %v11261_v61 = vpop.f32.mrb[2].mxu1 }
 0x65a   : > { %v8817_v36 = vadd.f32 %v8781_v27, %v8745_v0  ;;  %v8711_v55 = vadd.f32 %v11261_v61, %v14551_v30  ;;  %v8496_v38 = vpop.f32.mrb[3].mxu1  ;;  %v8792_v27 = vld [vmem:[%s12032_s27 + $0x73] sm:$0xff] }
 0x65b   : > { %v8816_v47 = vadd.f32 %v8780_v5, %v8744_v15  ;;  %v8710_v9 = vadd.f32 %v14551_v30, %v8496_v38 }
 0x65c   : > { %8853 = vst.msk [vmem:[%s14561_s24 + $0x8] sm:$0xff] %vm15262_vm10, %v8817_v36  ;;  %v8747_v40 = vmax.f32 %v8711_v55, 0.0  ;;  %v8795_v55 = vld [vmem:[%s12032_s27 + $0x8b] sm:$0xff]  ;;  %vm15277_vm10 = vmmov %vm14995_vm0 }
 0x65d   : > { %8852 = vst.msk [vmem:[%s14561_s24] sm:$0xff] %vm15263_vm7, %v8816_v47  ;;  %v8746_v56 = vmax.f32 %v8710_v9, 0.0  ;;  %v11264_v20 = vpop.f32.mrb[4].mxu1  ;;  %vm15278_vm7 = vmmov %vm14995_vm0 }
 0x65e   : > { %v8819_v24 = vadd.f32 %v8783_v4, %v8747_v40  ;;  %v8713_v1 = vadd.f32 %v11264_v20, %v14551_v30  ;;  %v8506_v28 = vpop.f32.mrb[5].mxu1  ;;  %v8794_v4 = vld [vmem:[%s12032_s27 + $0x83] sm:$0xff] }
 0x65f   : > { %v8818_v44 = vadd.f32 %v8782_v29, %v8746_v56  ;;  %v8712_v3 = vadd.f32 %v14551_v30, %v8506_v28 }
 0x660   : > { %8855 = vst.msk [vmem:[%s14561_s24 + $0x18] sm:$0xff] %vm15264_vm11, %v8819_v24  ;;  %v8749_v59 = vmax.f32 %v8713_v1, 0.0  ;;  %v8797_v1 = vld [vmem:[%s12032_s27 + $0x9b] sm:$0xff]  ;;  %vm15279_vm11 = vmmov %vm14995_vm0 }
 0x661   : > { %8854 = vst.msk [vmem:[%s14561_s24 + $0x10] sm:$0xff] %vm15265_vm2, %v8818_v44  ;;  %v8748_v62 = vmax.f32 %v8712_v3, 0.0  ;;  %v11267_v13 = vpop.f32.mrb[6].mxu1  ;;  %vm15280_vm2 = vmmov %vm14995_vm0 }
 0x662   : > { %v8821_v60 = vadd.f32 %v8785_v22, %v8749_v59  ;;  %v8715_v31 = vadd.f32 %v11267_v13, %v14551_v30  ;;  %v8516_v16 = vpop.f32.mrb[7].mxu1  ;;  %v8796_v22 = vld [vmem:[%s12032_s27 + $0x93] sm:$0xff] }
 0x663   : > { %v8820_v26 = vadd.f32 %v8784_v52, %v8748_v62  ;;  %v8714_v35 = vadd.f32 %v14551_v30, %v8516_v16 }
 0x664   : > { %8857 = vst.msk [vmem:[%s14561_s24 + $0x28] sm:$0xff] %vm14995_vm0, %v8821_v60  ;;  %v8751_v46 = vmax.f32 %v8715_v31, 0.0  ;;  %v8799_v31 = vld [vmem:[%s12032_s27 + $0xab] sm:$0xff] }
 0x665   : > { %8856 = vst.msk [vmem:[%s14561_s24 + $0x20] sm:$0xff] %vm15266_vm12, %v8820_v26  ;;  %v8750_v33 = vmax.f32 %v8714_v35, 0.0  ;;  %v11270_v32 = vpop.f32.mrb[8].mxu1  ;;  %vm15281_vm12 = vmmov %vm14995_vm0 }
 0x666   : > { %v8823_v17 = vadd.f32 %v8787_v42, %v8751_v46  ;;  %v8717_v37 = vadd.f32 %v11270_v32, %v14551_v30  ;;  %v8526_v51 = vpop.f32.mrb[9].mxu1  ;;  %v8798_v42 = vld [vmem:[%s12032_s27 + $0xa3] sm:$0xff] }
 0x667   : > { %v8822_v21 = vadd.f32 %v8786_v49, %v8750_v33  ;;  %v8716_v23 = vadd.f32 %v14551_v30, %v8526_v51 }
 0x668   : > { %8859 = vst.msk [vmem:[%s14561_s24 + $0x38] sm:$0xff] %vm15267_vm13, %v8823_v17  ;;  %v8753_v53 = vmax.f32 %v8717_v37, 0.0  ;;  %v8801_v37 = vld [vmem:[%s12032_s27 + $0xbb] sm:$0xff]  ;;  %vm15282_vm13 = vmmov %vm14995_vm0 }
 0x669   : > { %8858 = vst.msk [vmem:[%s14561_s24 + $0x30] sm:$0xff] %vm15268_vm15, %v8822_v21  ;;  %v8752_v43 = vmax.f32 %v8716_v23, 0.0  ;;  %v11273_v48 = vpop.f32.mrb[10].mxu1  ;;  %vm15283_vm15 = vmmov %vm14995_vm0 }
 0x66a   : > { %v8825_v18 = vadd.f32 %v8789_v12, %v8753_v53  ;;  %v8719_v39 = vadd.f32 %v11273_v48, %v14551_v30  ;;  %v8536_v14 = vpop.f32.mrb[11].mxu1  ;;  %v8800_v12 = vld [vmem:[%s12032_s27 + $0xb3] sm:$0xff] }
 0x66b   : > { %v8824_v19 = vadd.f32 %v8788_v63, %v8752_v43  ;;  %v8718_v58 = vadd.f32 %v14551_v30, %v8536_v14 }
 0x66c   : > { %8861 = vst.msk [vmem:[%s14561_s24 + $0x48] sm:$0xff] %vm15269_vm9, %v8825_v18  ;;  %v8755_v57 = vmax.f32 %v8719_v39, 0.0  ;;  %v8803_v39 = vld [vmem:[%s12032_s27 + $0xcb] sm:$0xff]  ;;  %vm15284_vm9 = vmmov %vm14995_vm0 }
 0x66d   : > { %8860 = vst.msk [vmem:[%s14561_s24 + $0x40] sm:$0xff] %vm15270_vm3, %v8824_v19  ;;  %v8754_v8 = vmax.f32 %v8718_v58, 0.0  ;;  %v11276_v10 = vpop.f32.mrb[12].mxu1  ;;  %vm15285_vm3 = vmmov %vm14995_vm0 }
 0x66e   : > { %v8827_v41 = vadd.f32 %v8791_v34, %v8755_v57  ;;  %v8721_v2 = vadd.f32 %v11276_v10, %v14551_v30  ;;  %v8546_v6 = vpop.f32.mrb[13].mxu1  ;;  %v8802_v34 = vld [vmem:[%s12032_s27 + $0xc3] sm:$0xff] }
 0x66f   : > { %v8826_v54 = vadd.f32 %v8790_v7, %v8754_v8  ;;  %v8720_v11 = vadd.f32 %v14551_v30, %v8546_v6 }
 0x670   : > { %8863 = vst.msk [vmem:[%s14561_s24 + $0x58] sm:$0xff] %vm15271_vm4, %v8827_v41  ;;  %v8757_v25 = vmax.f32 %v8721_v2, 0.0  ;;  %v8805_v2 = vld [vmem:[%s12032_s27 + $0xdb] sm:$0xff]  ;;  %vm15286_vm4 = vmmov %vm14995_vm0 }
 0x671   : > { %8862 = vst.msk [vmem:[%s14561_s24 + $0x50] sm:$0xff] %vm15272_vm14, %v8826_v54  ;;  %v8756_v45 = vmax.f32 %v8720_v11, 0.0  ;;  %v11279_v0 = vpop.f32.mrb[14].mxu1  ;;  %vm15287_vm14 = vmmov %vm14995_vm0 }
 0x672   : > { %v8829_v5 = vadd.f32 %v8793_v50, %v8757_v25  ;;  %v8723_v15 = vadd.f32 %v11279_v0, %v14551_v30  ;;  %v8556_v61 = vpop.f32.mrb[15].mxu1  ;;  %v8804_v50 = vld [vmem:[%s12032_s27 + $0xd3] sm:$0xff] }
 0x673   : > { %v8828_v36 = vadd.f32 %v8792_v27, %v8756_v45  ;;  %v8722_v38 = vadd.f32 %v14551_v30, %v8556_v61 }
 0x674   : > { %8865 = vst.msk [vmem:[%s14561_s24 + $0x68] sm:$0xff] %vm15273_vm1, %v8829_v5  ;;  %v8759_v47 = vmax.f32 %v8723_v15, 0.0  ;;  %v8807_v15 = vld [vmem:[%s12032_s27 + $0xeb] sm:$0xff]  ;;  %vm15288_vm1 = vmmov %vm14995_vm0 }
 0x675   : > { %8864 = vst.msk [vmem:[%s14561_s24 + $0x60] sm:$0xff] %vm15274_vm6, %v8828_v36  ;;  %v8758_v9 = vmax.f32 %v8722_v38, 0.0  ;;  %v11282_v40 = vpop.f32.mrb[16].mxu1  ;;  %vm15289_vm6 = vmmov %vm14995_vm0 }
 0x676   : > { %v8831_v29 = vadd.f32 %v8795_v55, %v8759_v47  ;;  %v8725_v56 = vadd.f32 %v11282_v40, %v14551_v30  ;;  %v8566_v20 = vpop.f32.mrb[17].mxu1  ;;  %v8806_v55 = vld [vmem:[%s12032_s27 + $0xe3] sm:$0xff] }
 0x677   : > { %v8830_v24 = vadd.f32 %v8794_v4, %v8758_v9  ;;  %v8724_v28 = vadd.f32 %v14551_v30, %v8566_v20 }
 0x678   : > { %8867 = vst.msk [vmem:[%s14561_s24 + $0x78] sm:$0xff] %vm15275_vm5, %v8831_v29  ;;  %v8761_v44 = vmax.f32 %v8725_v56, 0.0  ;;  %v8809_v56 = vld [vmem:[%s12032_s27 + $0xfb] sm:$0xff]  ;;  %vm15290_vm5 = vmmov %vm14995_vm0 }
 0x679   : > { %8866 = vst.msk [vmem:[%s14561_s24 + $0x70] sm:$0xff] %vm15276_vm8, %v8830_v24  ;;  %v8760_v3 = vmax.f32 %v8724_v28, 0.0  ;;  %v11285_v59 = vpop.f32.mrb[18].mxu1  ;;  %vm15291_vm8 = vmmov %vm14995_vm0 }
 0x67a   : > { %v8833_v52 = vadd.f32 %v8797_v1, %v8761_v44  ;;  %v8727_v62 = vadd.f32 %v11285_v59, %v14551_v30  ;;  %v8576_v13 = vpop.f32.mrb[19].mxu1  ;;  %v8808_v1 = vld [vmem:[%s12032_s27 + $0xf3] sm:$0xff] }
 0x67b   : > { %v8832_v60 = vadd.f32 %v8796_v22, %v8760_v3  ;;  %v8726_v16 = vadd.f32 %v14551_v30, %v8576_v13 }
 0x67c   : > { %8869 = vst.msk [vmem:[%s14561_s24 + $0x88] sm:$0xff] %vm15277_vm10, %v8833_v52  ;;  %v8763_v26 = vmax.f32 %v8727_v62, 0.0  ;;  %v8811_v62 = vld [vmem:[%s12032_s27 + $0x10b] sm:$0xff]  ;;  %vm15292_vm10 = vmmov %vm14995_vm0 }
 0x67d   : > { %8868 = vst.msk [vmem:[%s14561_s24 + $0x80] sm:$0xff] %vm15278_vm7, %v8832_v60  ;;  %v8762_v35 = vmax.f32 %v8726_v16, 0.0  ;;  %v11288_v46 = vpop.f32.mrb[20].mxu1  ;;  %vm15293_vm7 = vmmov %vm14995_vm0 }
 0x67e   : > { %v8835_v49 = vadd.f32 %v8799_v31, %v8763_v26  ;;  %v8729_v33 = vadd.f32 %v11288_v46, %v14551_v30  ;;  %v8586_v32 = vpop.f32.mrb[21].mxu1  ;;  %v8810_v31 = vld [vmem:[%s12032_s27 + $0x103] sm:$0xff] }
 0x67f   : > { %v8834_v17 = vadd.f32 %v8798_v42, %v8762_v35  ;;  %v8728_v51 = vadd.f32 %v14551_v30, %v8586_v32 }
 0x680   : > { %8871 = vst.msk [vmem:[%s14561_s24 + $0x98] sm:$0xff] %vm15279_vm11, %v8835_v49  ;;  %v8765_v21 = vmax.f32 %v8729_v33, 0.0  ;;  %v8813_v33 = vld [vmem:[%s12032_s27 + $0x11b] sm:$0xff]  ;;  %vm15294_vm11 = vmmov %vm14995_vm0 }
 0x681   : > { %8870 = vst.msk [vmem:[%s14561_s24 + $0x90] sm:$0xff] %vm15280_vm2, %v8834_v17  ;;  %v8764_v23 = vmax.f32 %v8728_v51, 0.0  ;;  %v11291_v53 = vpop.f32.mrb[22].mxu1  ;;  %vm15295_vm2 = vmmov %vm14995_vm0 }
 0x682   : > { %v8837_v63 = vadd.f32 %v8801_v37, %v8765_v21  ;;  %v8731_v43 = vadd.f32 %v11291_v53, %v14551_v30  ;;  %v8596_v48 = vpop.f32.mrb[23].mxu1  ;;  %v8812_v37 = vld [vmem:[%s12032_s27 + $0x113] sm:$0xff] }
 0x683   : > { %v8836_v18 = vadd.f32 %v8800_v12, %v8764_v23  ;;  %v8730_v14 = vadd.f32 %v14551_v30, %v8596_v48 }
 0x684   : > { %8873 = vst.msk [vmem:[%s14561_s24 + $0xa8] sm:$0xff] %vm14995_vm0, %v8837_v63  ;;  %v8767_v19 = vmax.f32 %v8731_v43, 0.0  ;;  %v8815_v43 = vld [vmem:[%s12032_s27 + $0x12b] sm:$0xff] }
 0x685   : > { %8872 = vst.msk [vmem:[%s14561_s24 + $0xa0] sm:$0xff] %vm15281_vm12, %v8836_v18  ;;  %v8766_v58 = vmax.f32 %v8730_v14, 0.0  ;;  %v11294_v57 = vpop.f32.mrb[24].mxu1 }
 0x686   : > { %v8839_v7 = vadd.f32 %v8803_v39, %v8767_v19  ;;  %v8733_v8 = vadd.f32 %v11294_v57, %v14551_v30  ;;  %v8606_v10 = vpop.f32.mrb[25].mxu1  ;;  %v8814_v39 = vld [vmem:[%s12032_s27 + $0x123] sm:$0xff] }
 0x687   : > { %v8838_v41 = vadd.f32 %v8802_v34, %v8766_v58  ;;  %v8732_v6 = vadd.f32 %v14551_v30, %v8606_v10 }
 0x688   : > { %8875 = vst.msk [vmem:[%s14561_s24 + $0xb8] sm:$0xff] %vm15282_vm13, %v8839_v7  ;;  %v8769_v54 = vmax.f32 %v8733_v8, 0.0 }
 0x689   : > { %8874 = vst.msk [vmem:[%s14561_s24 + $0xb0] sm:$0xff] %vm15283_vm15, %v8838_v41  ;;  %v8768_v11 = vmax.f32 %v8732_v6, 0.0  ;;  %v11297_v25 = vpop.f32.mrb[26].mxu1 }
 0x68a   : > { %v8841_v27 = vadd.f32 %v8805_v2, %v8769_v54  ;;  %v8735_v45 = vadd.f32 %v11297_v25, %v14551_v30  ;;  %v8616_v0 = vpop.f32.mrb[27].mxu1 }
 0x68b   : > { %v8840_v5 = vadd.f32 %v8804_v50, %v8768_v11  ;;  %v8734_v61 = vadd.f32 %v14551_v30, %v8616_v0 }
 0x68c   : > { %8877 = vst.msk [vmem:[%s14561_s24 + $0xc8] sm:$0xff] %vm15284_vm9, %v8841_v27  ;;  %v8771_v36 = vmax.f32 %v8735_v45, 0.0 }
 0x68d   : > { %8876 = vst.msk [vmem:[%s14561_s24 + $0xc0] sm:$0xff] %vm15285_vm3, %v8840_v5  ;;  %v8770_v38 = vmax.f32 %v8734_v61, 0.0  ;;  %v11300_v47 = vpop.f32.mrb[28].mxu1 }
 0x68e   : > { %v8843_v4 = vadd.f32 %v8807_v15, %v8771_v36  ;;  %v8737_v9 = vadd.f32 %v11300_v47, %v14551_v30  ;;  %v8626_v40 = vpop.f32.mrb[29].mxu1 }
 0x68f   : > { %v8842_v29 = vadd.f32 %v8806_v55, %v8770_v38  ;;  %v8736_v20 = vadd.f32 %v14551_v30, %v8626_v40 }
 0x690   : > { %8879 = vst.msk [vmem:[%s14561_s24 + $0xd8] sm:$0xff] %vm15286_vm4, %v8843_v4  ;;  %v8773_v24 = vmax.f32 %v8737_v9, 0.0 }
 0x691   : > { %8878 = vst.msk [vmem:[%s14561_s24 + $0xd0] sm:$0xff] %vm15287_vm14, %v8842_v29  ;;  %v8772_v28 = vmax.f32 %v8736_v20, 0.0  ;;  %v11303_v44 = vpop.f32.mrb[30].mxu1 }
 0x692   : > { %v8845_v22 = vadd.f32 %v8809_v56, %v8773_v24  ;;  %v8739_v3 = vadd.f32 %v11303_v44, %v14551_v30  ;;  %v8636_v59 = vpop.f32.mrb[31].mxu1 }
 0x693   : > { %v8844_v52 = vadd.f32 %v8808_v1, %v8772_v28  ;;  %v8738_v13 = vadd.f32 %v14551_v30, %v8636_v59 }
 0x694   : > { %8881 = vst.msk [vmem:[%s14561_s24 + $0xe8] sm:$0xff] %vm15288_vm1, %v8845_v22  ;;  %v8775_v60 = vmax.f32 %v8739_v3, 0.0 }
 0x695   : > { %8880 = vst.msk [vmem:[%s14561_s24 + $0xe0] sm:$0xff] %vm15289_vm6, %v8844_v52  ;;  %v8774_v16 = vmax.f32 %v8738_v13, 0.0  ;;  %v11306_v26 = vpop.f32.mrb[32].mxu1 }
 0x696   : > { %v8847_v42 = vadd.f32 %v8811_v62, %v8775_v60  ;;  %v8741_v35 = vadd.f32 %v11306_v26, %v14551_v30  ;;  %v8646_v46 = vpop.f32.mrb[33].mxu1 }
 0x697   : > { %v8846_v49 = vadd.f32 %v8810_v31, %v8774_v16  ;;  %v8740_v32 = vadd.f32 %v14551_v30, %v8646_v46 }
 0x698   : > { %8883 = vst.msk [vmem:[%s14561_s24 + $0xf8] sm:$0xff] %vm15290_vm5, %v8847_v42  ;;  %v8777_v17 = vmax.f32 %v8741_v35, 0.0 }
 0x699   : > { %8882 = vst.msk [vmem:[%s14561_s24 + $0xf0] sm:$0xff] %vm15291_vm8, %v8846_v49  ;;  %v8776_v51 = vmax.f32 %v8740_v32, 0.0  ;;  %v11309_v21 = vpop.f32.mrb[34].mxu1 }
 0x69a   : > { %v8849_v12 = vadd.f32 %v8813_v33, %v8777_v17  ;;  %v8743_v23 = vadd.f32 %v11309_v21, %v14551_v30  ;;  %v8656_v53 = vpop.f32.mrb[35].mxu1 }
 0x69b   : > { %v8848_v63 = vadd.f32 %v8812_v37, %v8776_v51  ;;  %v8742_v48 = vadd.f32 %v14551_v30, %v8656_v53 }
 0x69c   : > { %8885 = vst.msk [vmem:[%s14561_s24 + $0x108] sm:$0xff] %vm15292_vm10, %v8849_v12  ;;  %v8779_v18 = vmax.f32 %v8743_v23, 0.0 }
 0x69d   : > { %8884 = vst.msk [vmem:[%s14561_s24 + $0x100] sm:$0xff] %vm15293_vm7, %v8848_v63  ;;  %v8778_v14 = vmax.f32 %v8742_v48, 0.0 }
 0x69e   : > { %v8851_v19 = vadd.f32 %v8815_v43, %v8779_v18 }
 0x69f   : > { %v8850_v34 = vadd.f32 %v8814_v39, %v8778_v14 }
 0x6a0   : > { %8887 = vst.msk [vmem:[%s14561_s24 + $0x118] sm:$0xff] %vm15294_vm11, %v8851_v19 }
 0x6a1   : > { %8886 = vst.msk [vmem:[%s14561_s24 + $0x110] sm:$0xff] %vm15295_vm2, %v8850_v34 }
 0x6a2 PF: > { %s15_s18 = sadd.s32 1, %s11976_s18  }
 0x6a3   : > { %p12_p4 = scmp.ge.s32.totalorder %s15_s18, 4  }
 0x6a5   :  { %14 = sbr.rel (!%p12_p4) target bundleno = 1 (0x1), region = 86 }

</bundles_post_ra>
